<compile_context>
chip_gen: v7x
topology: tpu7x:2x2x1
jax: 0.10.0
libtpu: 0.0.40
codegen_flags: <defaults>
</compile_context>

<pallas_src>
import functools

import numpy as np
import jax
import jax.numpy as jnp
from jax.experimental import pallas as pl
from jax.experimental.pallas import tpu as pltpu

LANE = 128        # final logits padded to a lane-dense multiple of 128
ROW_GROUP = 8     # conv1 stride (4) * conv2 stride (2): rows grouped mod 8


def _round_up(x, m):
    return (x + m - 1) // m * m


def _conv_out(n, k, s):
    return (n - k) // s + 1


# ---------------------------------------------------------------------------
# Fused forward kernel: conv1 -> conv2 -> conv3 -> fc1 -> fc2, all in VMEM.
# ---------------------------------------------------------------------------
def _dqn_kernel(x_ref, m1_ref, bc1_ref, m2_ref, bc2_ref, m3_ref, bc3_ref,
                fw1_ref, fb1_ref, fw2_ref, fb2_ref, o_ref,
                *, imgs, o1h, o2h, o3h, kh1, s1, kh2, kh3):
    n_even = (o1h + 1) // 2          # conv1 output rows with even index
    n_odd = o1h // 2                 # ... and with odd index
    for g in range(imgs):
        # conv1 (k=8, s=4) + ReLU.  Output rows are produced already split by
        # parity so conv2's stride-2 row selection is a unit-stride slice.
        groups = []
        for e, n_rows in ((0, n_even), (1, n_odd)):
            acc = None
            for i in range(kh1):
                off = s1 * e + i                       # input row = 8*q + off
                r, q0 = off % ROW_GROUP, off // ROW_GROUP
                a = x_ref[g, r, q0:q0 + n_rows, :]
                t = jnp.dot(a, m1_ref[i], preferred_element_type=jnp.float32)
                acc = t if acc is None else acc + t
            groups.append(jnp.maximum(acc + bc1_ref[...], 0.0)
                          .astype(jnp.bfloat16))
        # conv2 (k=4, s=2) + ReLU: input row 2*z + i -> parity i%2, offset i//2.
        acc = None
        for i in range(kh2):
            src = groups[i % 2]
            t = jnp.dot(src[i // 2:i // 2 + o2h, :], m2_ref[i],
                        preferred_element_type=jnp.float32)
            acc = t if acc is None else acc + t
        a2 = jnp.maximum(acc + bc2_ref[...], 0.0).astype(jnp.bfloat16)
        # conv3 (k=3, s=1) + ReLU.
        acc = None
        for i in range(kh3):
            t = jnp.dot(a2[i:i + o3h, :], m3_ref[i],
                        preferred_element_type=jnp.float32)
            acc = t if acc is None else acc + t
        a3 = jnp.maximum(acc + bc3_ref[...], 0.0).astype(jnp.bfloat16)
        # FC tail; hidden activations and the final matmul stay in f32.
        h = fb1_ref[...]
        for y in range(o3h):
            h = h + jnp.dot(a3[y:y + 1, :], fw1_ref[y],
                            preferred_element_type=jnp.float32)
        h = jnp.maximum(h, 0.0)
        logits = jnp.dot(h, fw2_ref[...],
                         preferred_element_type=jnp.float32) + fb2_ref[...]
        o_ref[g] = logits


# ---------------------------------------------------------------------------
# Forward wrapper: host-side layout prep + one pallas_call.
# ---------------------------------------------------------------------------
@jax.jit
def dqn_forward(p, x_nchw):
    """Returns lane-padded logits (N, n_pad); slice [:, :n_outputs] outside."""
    N, C, H, W = x_nchw.shape
    WC = W * C
    o1h = _conv_out(H, 8, 4)
    o2h = _conv_out(o1h, 4, 2)
    o3h = _conv_out(o2h, 3, 1)
    assert p["m1"].shape[1] == WC, "params prepared for a different obs shape"

    # Image rows flattened as (W, C) lanes, grouped by row index mod 8 so the
    # stride-4 / stride-2 row selection is static slicing inside the kernel.
    x = jnp.transpose(x_nchw, (0, 2, 3, 1)).reshape(N, H, WC)
    Hp = _round_up(H, ROW_GROUP)
    if Hp != H:
        x = jnp.pad(x, ((0, 0), (0, Hp - H), (0, 0)))
    x = x.reshape(N, Hp // ROW_GROUP, ROW_GROUP, WC)
    x = jnp.transpose(x, (0, 2, 1, 3)).astype(jnp.bfloat16)   # (N, 8, Hp/8, WC)

    imgs = max(1, min(8, N // 2))     # >=2 grid steps at N>=2 (v7x: both TCs)
    Np = _round_up(N, imgs)
    if Np != N:
        x = jnp.pad(x, ((0, Np - N), (0, 0), (0, 0), (0, 0)))

    qrows = Hp // ROW_GROUP
    o1f, o2f, o3f = p["m1"].shape[2], p["m2"].shape[2], p["m3"].shape[2]
    hidden, n_pad = p["fw2"].shape

    kernel = functools.partial(
        _dqn_kernel, imgs=imgs, o1h=o1h, o2h=o2h, o3h=o3h,
        kh1=8, s1=4, kh2=4, kh3=3)

    out = pl.pallas_call(
        kernel,
        out_shape=jax.ShapeDtypeStruct((Np, 1, n_pad), jnp.float32),
        grid=(Np // imgs,),
        in_specs=[
            pl.BlockSpec((imgs, ROW_GROUP, qrows, WC), lambda n: (n, 0, 0, 0)),
            pl.BlockSpec((8, WC, o1f), lambda n: (0, 0, 0)),      # conv1 row mats
            pl.BlockSpec((1, o1f), lambda n: (0, 0)),             # conv1 bias row
            pl.BlockSpec((4, o1f, o2f), lambda n: (0, 0, 0)),     # conv2 row mats
            pl.BlockSpec((1, o2f), lambda n: (0, 0)),
            pl.BlockSpec((3, o2f, o3f), lambda n: (0, 0, 0)),     # conv3 row mats
            pl.BlockSpec((1, o3f), lambda n: (0, 0)),
            pl.BlockSpec((o3h, o3f, hidden), lambda n: (0, 0, 0)),  # fc1 per row
            pl.BlockSpec((1, hidden), lambda n: (0, 0)),
            pl.BlockSpec((hidden, n_pad), lambda n: (0, 0)),        # fc2 (f32)
            pl.BlockSpec((1, n_pad), lambda n: (0, 0)),
        ],
        out_specs=pl.BlockSpec((imgs, 1, n_pad), lambda n: (n, 0, 0)),
        compiler_params=pltpu.CompilerParams(
            dimension_semantics=("parallel",)),
    )(x, p["m1"], p["bc1"], p["m2"], p["bc2"], p["m3"], p["bc3"],
      p["fw1"], p["fb1"], p["fw2"], p["fb2"])
    return out.reshape(Np, n_pad)[:N]


# ---------------------------------------------------------------------------
# One-time parameter preparation (torch layout -> kernel-ready, numpy).
# ---------------------------------------------------------------------------
def _conv_row_mats(w_oihw, stride, in_w):
    """M[i] (in_w*C, out_w*O): width/channel part of the conv for kernel row i.
    M[i][w*C + c, x*O + o] = W[o, c, i, w - stride*x] (zero elsewhere)."""
    w = np.asarray(w_oihw, np.float32)
    O, C, KH, KW = w.shape
    out_w = _conv_out(in_w, KW, stride)
    m = np.zeros((KH, in_w * C, out_w * O), np.float32)
    for i in range(KH):
        for x in range(out_w):
            for j in range(KW):
                col = stride * x + j
                m[i, col * C:(col + 1) * C, x * O:(x + 1) * O] = w[:, :, i, j].T
    return m


def prepare_params(params, obs_shape):
    C, H, W = obs_shape
    o1h, o1w = _conv_out(H, 8, 4), _conv_out(W, 8, 4)
    o2h, o2w = _conv_out(o1h, 4, 2), _conv_out(o1w, 4, 2)
    o3h, o3w = _conv_out(o2h, 3, 1), _conv_out(o2w, 3, 1)

    def bias_row(b, reps):                        # lane layout x*O + o
        return np.tile(np.asarray(b, np.float32), reps)[None, :]

    # fc1: reorder rows from torch's NCHW flatten (o, y, x) to the kernel's
    # per-row (y) x lane (x*O + o) layout.
    o3ch = params["w3"].shape[0]
    fw1 = np.asarray(params["fw1"], np.float32)   # (hidden, o3ch*o3h*o3w)
    hidden = fw1.shape[0]
    fw1 = fw1.reshape(hidden, o3ch, o3h, o3w)
    fw1 = np.transpose(fw1, (2, 3, 1, 0)).reshape(o3h, o3w * o3ch, hidden)

    fw2 = np.asarray(params["fw2"], np.float32)   # (n_outputs, hidden)
    n_out = fw2.shape[0]
    n_pad = _round_up(n_out, LANE)
    fw2 = np.pad(fw2.T, ((0, 0), (0, n_pad - n_out)))
    fb2 = np.pad(np.asarray(params["fb2"], np.float32),
                 (0, n_pad - n_out))[None, :]

    p = {
        "m1": jnp.asarray(_conv_row_mats(params["w1"], 4, W), jnp.bfloat16),
        "bc1": jnp.asarray(bias_row(params["b1"], o1w)),
        "m2": jnp.asarray(_conv_row_mats(params["w2"], 2, o1w), jnp.bfloat16),
        "bc2": jnp.asarray(bias_row(params["b2"], o2w)),
        "m3": jnp.asarray(_conv_row_mats(params["w3"], 1, o2w), jnp.bfloat16),
        "bc3": jnp.asarray(bias_row(params["b3"], o3w)),
        "fw1": jnp.asarray(fw1, jnp.bfloat16),
        "fb1": jnp.asarray(np.asarray(params["fb1"], np.float32)[None, :]),
        "fw2": jnp.asarray(fw2, jnp.float32),
        "fb2": jnp.asarray(fb2),
    }
    return p, n_out


# ---------------------------------------------------------------------------
# Pure-JAX reference and parameter init.
# ---------------------------------------------------------------------------
def dqn_reference(params, x):
    def conv(x, w, b, s):
        y = jax.lax.conv_general_dilated(
            x, w, (s, s), "VALID",
            dimension_numbers=("NCHW", "OIHW", "NCHW"))
        return jax.nn.relu(y + b[None, :, None, None])

    x = conv(x, params["w1"], params["b1"], 4)
    x = conv(x, params["w2"], params["b2"], 2)
    x = conv(x, params["w3"], params["b3"], 1)
    x = x.reshape(x.shape[0], -1)
    x = jax.nn.relu(x @ params["fw1"].T + params["fb1"])
    return x @ params["fw2"].T + params["fb2"]


def init_params(key, ch, w, h, n_outputs):
    o1, o1h = _conv_out(w, 8, 4), _conv_out(h, 8, 4)
    o2, o2h = _conv_out(o1, 4, 2), _conv_out(o1h, 4, 2)
    o3, o3h = _conv_out(o2, 3, 1), _conv_out(o2h, 3, 1)
    conv_out = 64 * o3 * o3h
    ks = jax.random.split(key, 10)
    s = 0.05
    params = {
        "w1": s * jax.random.normal(ks[0], (32, ch, 8, 8), jnp.float32),
        "b1": s * jax.random.normal(ks[1], (32,), jnp.float32),
        "w2": s * jax.random.normal(ks[2], (64, 32, 4, 4), jnp.float32),
        "b2": s * jax.random.normal(ks[3], (64,), jnp.float32),
        "w3": s * jax.random.normal(ks[4], (64, 64, 3, 3), jnp.float32),
        "b3": s * jax.random.normal(ks[5], (64,), jnp.float32),
        "fw1": s * jax.random.normal(ks[6], (512, conv_out), jnp.float32),
        "fb1": s * jax.random.normal(ks[7], (512,), jnp.float32),
        "fw2": s * jax.random.normal(ks[8], (n_outputs, 512), jnp.float32),
        "fb2": s * jax.random.normal(ks[9], (n_outputs,), jnp.float32),
    }
    return params, conv_out


if __name__ == "__main__":
    key = jax.random.PRNGKey(0)
    batch, ch, w, h = 2, 4, 44, 44      # smallest obs valid for the 8/4/3 stack
    n_outputs = 6

    k_p, k_x = jax.random.split(key)
    params, conv_out = init_params(k_p, ch, w, h, n_outputs)
    x = jax.random.normal(k_x, (batch, ch, w, h), jnp.float32)

    prepped, n_out = prepare_params(params, (ch, w, h))
    out = jax.block_until_ready(dqn_forward(prepped, x))[:, :n_out]
    assert out.shape == (batch, n_outputs), out.shape

    ref = jax.block_until_ready(dqn_reference(params, x))
    max_diff = jnp.max(jnp.abs(out - ref))
    assert jnp.allclose(out, ref, rtol=3e-2, atol=3e-2), (
        f"mismatch: max abs diff {max_diff}")

    print("KERNEL_OK")
</pallas_src>

<mosaic_0001>
module attributes {stable_mosaic.version = 11 : i64} {
  func.func @_dqn_kernel(%arg0: i32, %arg1: memref<1x8x6x176xbf16, #tpu.memory_space<vmem>>, %arg2: memref<8x176x320xbf16, #tpu.memory_space<vmem>>, %arg3: memref<1x320xf32, #tpu.memory_space<vmem>>, %arg4: memref<4x320x256xbf16, #tpu.memory_space<vmem>>, %arg5: memref<1x256xf32, #tpu.memory_space<vmem>>, %arg6: memref<3x256x128xbf16, #tpu.memory_space<vmem>>, %arg7: memref<1x128xf32, #tpu.memory_space<vmem>>, %arg8: memref<2x128x512xbf16, #tpu.memory_space<vmem>>, %arg9: memref<1x512xf32, #tpu.memory_space<vmem>>, %arg10: memref<512x128xf32, #tpu.memory_space<vmem>>, %arg11: memref<1x128xf32, #tpu.memory_space<vmem>>, %arg12: memref<1x1x128xf32, #tpu.memory_space<vmem>>) attributes {dimension_semantics = [#tpu.dimension_semantics<parallel>], iteration_bounds = array<i64: 2>, scalar_prefetch = 0 : i64, scratch_operands = 0 : i64, tpu.core_type = #tpu.core_type<tc>, window_params = [{transform_indices = @transform_0, window_bounds = array<i64: 1, 8, 6, 176>}, {pipeline_mode = #tpu.pipeline_mode<synchronous>, transform_indices = @transform_1, window_bounds = array<i64: 8, 176, 320>}, {pipeline_mode = #tpu.pipeline_mode<synchronous>, transform_indices = @transform_2, window_bounds = array<i64: 1, 320>}, {pipeline_mode = #tpu.pipeline_mode<synchronous>, transform_indices = @transform_3, window_bounds = array<i64: 4, 320, 256>}, {pipeline_mode = #tpu.pipeline_mode<synchronous>, transform_indices = @transform_4, window_bounds = array<i64: 1, 256>}, {pipeline_mode = #tpu.pipeline_mode<synchronous>, transform_indices = @transform_5, window_bounds = array<i64: 3, 256, 128>}, {pipeline_mode = #tpu.pipeline_mode<synchronous>, transform_indices = @transform_6, window_bounds = array<i64: 1, 128>}, {pipeline_mode = #tpu.pipeline_mode<synchronous>, transform_indices = @transform_7, window_bounds = array<i64: 2, 128, 512>}, {pipeline_mode = #tpu.pipeline_mode<synchronous>, transform_indices = @transform_8, window_bounds = array<i64: 1, 512>}, {pipeline_mode = #tpu.pipeline_mode<synchronous>, transform_indices = @transform_9, window_bounds = array<i64: 512, 128>}, {pipeline_mode = #tpu.pipeline_mode<synchronous>, transform_indices = @transform_10, window_bounds = array<i64: 1, 128>}, {transform_indices = @transform_11, window_bounds = array<i64: 1, 1, 128>}]} {
    %c0 = arith.constant 0 : index
    %c0_0 = arith.constant 0 : index
    %c0_1 = arith.constant 0 : index
    %c0_2 = arith.constant 0 : index
    %0 = vector.load %arg1[%c0, %c0_0, %c0_1, %c0_2] : memref<1x8x6x176xbf16, #tpu.memory_space<vmem>>, vector<1x1x5x176xbf16>
    %1 = vector.shape_cast %0 : vector<1x1x5x176xbf16> to vector<5x176xbf16>
    %c0_3 = arith.constant 0 : index
    %c0_4 = arith.constant 0 : index
    %c0_5 = arith.constant 0 : index
    %2 = vector.load %arg2[%c0_3, %c0_4, %c0_5] : memref<8x176x320xbf16, #tpu.memory_space<vmem>>, vector<1x176x320xbf16>
    %3 = vector.shape_cast %2 : vector<1x176x320xbf16> to vector<176x320xbf16>
    %cst = arith.constant dense<0.000000e+00> : vector<5x320xf32>
    %4 = tpu.matmul %1, %3, %cst {dimension_numbers = #tpu.dot_dimension_numbers<[1], [0], [0], [1], [0, 0, 1, 1], [], []>} : vector<5x176xbf16>, vector<176x320xbf16>, vector<5x320xf32> -> vector<5x320xf32>
    %c0_6 = arith.constant 0 : index
    %c1 = arith.constant 1 : index
    %c0_7 = arith.constant 0 : index
    %c0_8 = arith.constant 0 : index
    %5 = vector.load %arg1[%c0_6, %c1, %c0_7, %c0_8] : memref<1x8x6x176xbf16, #tpu.memory_space<vmem>>, vector<1x1x5x176xbf16>
    %6 = vector.shape_cast %5 : vector<1x1x5x176xbf16> to vector<5x176xbf16>
    %c1_9 = arith.constant 1 : index
    %c0_10 = arith.constant 0 : index
    %c0_11 = arith.constant 0 : index
    %7 = vector.load %arg2[%c1_9, %c0_10, %c0_11] : memref<8x176x320xbf16, #tpu.memory_space<vmem>>, vector<1x176x320xbf16>
    %8 = vector.shape_cast %7 : vector<1x176x320xbf16> to vector<176x320xbf16>
    %cst_12 = arith.constant dense<0.000000e+00> : vector<5x320xf32>
    %9 = tpu.matmul %6, %8, %cst_12 {dimension_numbers = #tpu.dot_dimension_numbers<[1], [0], [0], [1], [0, 0, 1, 1], [], []>} : vector<5x176xbf16>, vector<176x320xbf16>, vector<5x320xf32> -> vector<5x320xf32>
    %10 = arith.addf %4, %9 : vector<5x320xf32>
    %c0_13 = arith.constant 0 : index
    %c2 = arith.constant 2 : index
    %c0_14 = arith.constant 0 : index
    %c0_15 = arith.constant 0 : index
    %11 = vector.load %arg1[%c0_13, %c2, %c0_14, %c0_15] : memref<1x8x6x176xbf16, #tpu.memory_space<vmem>>, vector<1x1x5x176xbf16>
    %12 = vector.shape_cast %11 : vector<1x1x5x176xbf16> to vector<5x176xbf16>
    %c2_16 = arith.constant 2 : index
    %c0_17 = arith.constant 0 : index
    %c0_18 = arith.constant 0 : index
    %13 = vector.load %arg2[%c2_16, %c0_17, %c0_18] : memref<8x176x320xbf16, #tpu.memory_space<vmem>>, vector<1x176x320xbf16>
    %14 = vector.shape_cast %13 : vector<1x176x320xbf16> to vector<176x320xbf16>
    %cst_19 = arith.constant dense<0.000000e+00> : vector<5x320xf32>
    %15 = tpu.matmul %12, %14, %cst_19 {dimension_numbers = #tpu.dot_dimension_numbers<[1], [0], [0], [1], [0, 0, 1, 1], [], []>} : vector<5x176xbf16>, vector<176x320xbf16>, vector<5x320xf32> -> vector<5x320xf32>
    %16 = arith.addf %10, %15 : vector<5x320xf32>
    %c0_20 = arith.constant 0 : index
    %c3 = arith.constant 3 : index
    %c0_21 = arith.constant 0 : index
    %c0_22 = arith.constant 0 : index
    %17 = vector.load %arg1[%c0_20, %c3, %c0_21, %c0_22] : memref<1x8x6x176xbf16, #tpu.memory_space<vmem>>, vector<1x1x5x176xbf16>
    %18 = vector.shape_cast %17 : vector<1x1x5x176xbf16> to vector<5x176xbf16>
    %c3_23 = arith.constant 3 : index
    %c0_24 = arith.constant 0 : index
    %c0_25 = arith.constant 0 : index
    %19 = vector.load %arg2[%c3_23, %c0_24, %c0_25] : memref<8x176x320xbf16, #tpu.memory_space<vmem>>, vector<1x176x320xbf16>
    %20 = vector.shape_cast %19 : vector<1x176x320xbf16> to vector<176x320xbf16>
    %cst_26 = arith.constant dense<0.000000e+00> : vector<5x320xf32>
    %21 = tpu.matmul %18, %20, %cst_26 {dimension_numbers = #tpu.dot_dimension_numbers<[1], [0], [0], [1], [0, 0, 1, 1], [], []>} : vector<5x176xbf16>, vector<176x320xbf16>, vector<5x320xf32> -> vector<5x320xf32>
    %22 = arith.addf %16, %21 : vector<5x320xf32>
    %c0_27 = arith.constant 0 : index
    %c4 = arith.constant 4 : index
    %c0_28 = arith.constant 0 : index
    %c0_29 = arith.constant 0 : index
    %23 = vector.load %arg1[%c0_27, %c4, %c0_28, %c0_29] : memref<1x8x6x176xbf16, #tpu.memory_space<vmem>>, vector<1x1x5x176xbf16>
    %24 = vector.shape_cast %23 : vector<1x1x5x176xbf16> to vector<5x176xbf16>
    %c4_30 = arith.constant 4 : index
    %c0_31 = arith.constant 0 : index
    %c0_32 = arith.constant 0 : index
    %25 = vector.load %arg2[%c4_30, %c0_31, %c0_32] : memref<8x176x320xbf16, #tpu.memory_space<vmem>>, vector<1x176x320xbf16>
    %26 = vector.shape_cast %25 : vector<1x176x320xbf16> to vector<176x320xbf16>
    %cst_33 = arith.constant dense<0.000000e+00> : vector<5x320xf32>
    %27 = tpu.matmul %24, %26, %cst_33 {dimension_numbers = #tpu.dot_dimension_numbers<[1], [0], [0], [1], [0, 0, 1, 1], [], []>} : vector<5x176xbf16>, vector<176x320xbf16>, vector<5x320xf32> -> vector<5x320xf32>
    %28 = arith.addf %22, %27 : vector<5x320xf32>
    %c0_34 = arith.constant 0 : index
    %c5 = arith.constant 5 : index
    %c0_35 = arith.constant 0 : index
    %c0_36 = arith.constant 0 : index
    %29 = vector.load %arg1[%c0_34, %c5, %c0_35, %c0_36] : memref<1x8x6x176xbf16, #tpu.memory_space<vmem>>, vector<1x1x5x176xbf16>
    %30 = vector.shape_cast %29 : vector<1x1x5x176xbf16> to vector<5x176xbf16>
    %c5_37 = arith.constant 5 : index
    %c0_38 = arith.constant 0 : index
    %c0_39 = arith.constant 0 : index
    %31 = vector.load %arg2[%c5_37, %c0_38, %c0_39] : memref<8x176x320xbf16, #tpu.memory_space<vmem>>, vector<1x176x320xbf16>
    %32 = vector.shape_cast %31 : vector<1x176x320xbf16> to vector<176x320xbf16>
    %cst_40 = arith.constant dense<0.000000e+00> : vector<5x320xf32>
    %33 = tpu.matmul %30, %32, %cst_40 {dimension_numbers = #tpu.dot_dimension_numbers<[1], [0], [0], [1], [0, 0, 1, 1], [], []>} : vector<5x176xbf16>, vector<176x320xbf16>, vector<5x320xf32> -> vector<5x320xf32>
    %34 = arith.addf %28, %33 : vector<5x320xf32>
    %c0_41 = arith.constant 0 : index
    %c6 = arith.constant 6 : index
    %c0_42 = arith.constant 0 : index
    %c0_43 = arith.constant 0 : index
    %35 = vector.load %arg1[%c0_41, %c6, %c0_42, %c0_43] : memref<1x8x6x176xbf16, #tpu.memory_space<vmem>>, vector<1x1x5x176xbf16>
    %36 = vector.shape_cast %35 : vector<1x1x5x176xbf16> to vector<5x176xbf16>
    %c6_44 = arith.constant 6 : index
    %c0_45 = arith.constant 0 : index
    %c0_46 = arith.constant 0 : index
    %37 = vector.load %arg2[%c6_44, %c0_45, %c0_46] : memref<8x176x320xbf16, #tpu.memory_space<vmem>>, vector<1x176x320xbf16>
    %38 = vector.shape_cast %37 : vector<1x176x320xbf16> to vector<176x320xbf16>
    %cst_47 = arith.constant dense<0.000000e+00> : vector<5x320xf32>
    %39 = tpu.matmul %36, %38, %cst_47 {dimension_numbers = #tpu.dot_dimension_numbers<[1], [0], [0], [1], [0, 0, 1, 1], [], []>} : vector<5x176xbf16>, vector<176x320xbf16>, vector<5x320xf32> -> vector<5x320xf32>
    %40 = arith.addf %34, %39 : vector<5x320xf32>
    %c0_48 = arith.constant 0 : index
    %c7 = arith.constant 7 : index
    %c0_49 = arith.constant 0 : index
    %c0_50 = arith.constant 0 : index
    %41 = vector.load %arg1[%c0_48, %c7, %c0_49, %c0_50] : memref<1x8x6x176xbf16, #tpu.memory_space<vmem>>, vector<1x1x5x176xbf16>
    %42 = vector.shape_cast %41 : vector<1x1x5x176xbf16> to vector<5x176xbf16>
    %c7_51 = arith.constant 7 : index
    %c0_52 = arith.constant 0 : index
    %c0_53 = arith.constant 0 : index
    %43 = vector.load %arg2[%c7_51, %c0_52, %c0_53] : memref<8x176x320xbf16, #tpu.memory_space<vmem>>, vector<1x176x320xbf16>
    %44 = vector.shape_cast %43 : vector<1x176x320xbf16> to vector<176x320xbf16>
    %cst_54 = arith.constant dense<0.000000e+00> : vector<5x320xf32>
    %45 = tpu.matmul %42, %44, %cst_54 {dimension_numbers = #tpu.dot_dimension_numbers<[1], [0], [0], [1], [0, 0, 1, 1], [], []>} : vector<5x176xbf16>, vector<176x320xbf16>, vector<5x320xf32> -> vector<5x320xf32>
    %46 = arith.addf %40, %45 : vector<5x320xf32>
    %c0_55 = arith.constant 0 : index
    %c0_56 = arith.constant 0 : index
    %47 = vector.load %arg3[%c0_55, %c0_56] : memref<1x320xf32, #tpu.memory_space<vmem>>, vector<1x320xf32>
    %48 = vector.broadcast %47 : vector<1x320xf32> to vector<5x320xf32>
    %49 = arith.addf %46, %48 : vector<5x320xf32>
    %cst_57 = arith.constant 0.000000e+00 : f32
    %50 = vector.broadcast %cst_57 : f32 to vector<5x320xf32>
    %51 = arith.maximumf %49, %50 : vector<5x320xf32>
    %52 = arith.truncf %51 : vector<5x320xf32> to vector<5x320xbf16>
    %c0_58 = arith.constant 0 : index
    %c4_59 = arith.constant 4 : index
    %c0_60 = arith.constant 0 : index
    %c0_61 = arith.constant 0 : index
    %53 = vector.load %arg1[%c0_58, %c4_59, %c0_60, %c0_61] : memref<1x8x6x176xbf16, #tpu.memory_space<vmem>>, vector<1x1x5x176xbf16>
    %54 = vector.shape_cast %53 : vector<1x1x5x176xbf16> to vector<5x176xbf16>
    %c0_62 = arith.constant 0 : index
    %c0_63 = arith.constant 0 : index
    %c0_64 = arith.constant 0 : index
    %55 = vector.load %arg2[%c0_62, %c0_63, %c0_64] : memref<8x176x320xbf16, #tpu.memory_space<vmem>>, vector<1x176x320xbf16>
    %56 = vector.shape_cast %55 : vector<1x176x320xbf16> to vector<176x320xbf16>
    %cst_65 = arith.constant dense<0.000000e+00> : vector<5x320xf32>
    %57 = tpu.matmul %54, %56, %cst_65 {dimension_numbers = #tpu.dot_dimension_numbers<[1], [0], [0], [1], [0, 0, 1, 1], [], []>} : vector<5x176xbf16>, vector<176x320xbf16>, vector<5x320xf32> -> vector<5x320xf32>
    %c0_66 = arith.constant 0 : index
    %c5_67 = arith.constant 5 : index
    %c0_68 = arith.constant 0 : index
    %c0_69 = arith.constant 0 : index
    %58 = vector.load %arg1[%c0_66, %c5_67, %c0_68, %c0_69] : memref<1x8x6x176xbf16, #tpu.memory_space<vmem>>, vector<1x1x5x176xbf16>
    %59 = vector.shape_cast %58 : vector<1x1x5x176xbf16> to vector<5x176xbf16>
    %c1_70 = arith.constant 1 : index
    %c0_71 = arith.constant 0 : index
    %c0_72 = arith.constant 0 : index
    %60 = vector.load %arg2[%c1_70, %c0_71, %c0_72] : memref<8x176x320xbf16, #tpu.memory_space<vmem>>, vector<1x176x320xbf16>
    %61 = vector.shape_cast %60 : vector<1x176x320xbf16> to vector<176x320xbf16>
    %cst_73 = arith.constant dense<0.000000e+00> : vector<5x320xf32>
    %62 = tpu.matmul %59, %61, %cst_73 {dimension_numbers = #tpu.dot_dimension_numbers<[1], [0], [0], [1], [0, 0, 1, 1], [], []>} : vector<5x176xbf16>, vector<176x320xbf16>, vector<5x320xf32> -> vector<5x320xf32>
    %63 = arith.addf %57, %62 : vector<5x320xf32>
    %c0_74 = arith.constant 0 : index
    %c6_75 = arith.constant 6 : index
    %c0_76 = arith.constant 0 : index
    %c0_77 = arith.constant 0 : index
    %64 = vector.load %arg1[%c0_74, %c6_75, %c0_76, %c0_77] : memref<1x8x6x176xbf16, #tpu.memory_space<vmem>>, vector<1x1x5x176xbf16>
    %65 = vector.shape_cast %64 : vector<1x1x5x176xbf16> to vector<5x176xbf16>
    %c2_78 = arith.constant 2 : index
    %c0_79 = arith.constant 0 : index
    %c0_80 = arith.constant 0 : index
    %66 = vector.load %arg2[%c2_78, %c0_79, %c0_80] : memref<8x176x320xbf16, #tpu.memory_space<vmem>>, vector<1x176x320xbf16>
    %67 = vector.shape_cast %66 : vector<1x176x320xbf16> to vector<176x320xbf16>
    %cst_81 = arith.constant dense<0.000000e+00> : vector<5x320xf32>
    %68 = tpu.matmul %65, %67, %cst_81 {dimension_numbers = #tpu.dot_dimension_numbers<[1], [0], [0], [1], [0, 0, 1, 1], [], []>} : vector<5x176xbf16>, vector<176x320xbf16>, vector<5x320xf32> -> vector<5x320xf32>
    %69 = arith.addf %63, %68 : vector<5x320xf32>
    %c0_82 = arith.constant 0 : index
    %c7_83 = arith.constant 7 : index
    %c0_84 = arith.constant 0 : index
    %c0_85 = arith.constant 0 : index
    %70 = vector.load %arg1[%c0_82, %c7_83, %c0_84, %c0_85] : memref<1x8x6x176xbf16, #tpu.memory_space<vmem>>, vector<1x1x5x176xbf16>
    %71 = vector.shape_cast %70 : vector<1x1x5x176xbf16> to vector<5x176xbf16>
    %c3_86 = arith.constant 3 : index
    %c0_87 = arith.constant 0 : index
    %c0_88 = arith.constant 0 : index
    %72 = vector.load %arg2[%c3_86, %c0_87, %c0_88] : memref<8x176x320xbf16, #tpu.memory_space<vmem>>, vector<1x176x320xbf16>
    %73 = vector.shape_cast %72 : vector<1x176x320xbf16> to vector<176x320xbf16>
    %cst_89 = arith.constant dense<0.000000e+00> : vector<5x320xf32>
    %74 = tpu.matmul %71, %73, %cst_89 {dimension_numbers = #tpu.dot_dimension_numbers<[1], [0], [0], [1], [0, 0, 1, 1], [], []>} : vector<5x176xbf16>, vector<176x320xbf16>, vector<5x320xf32> -> vector<5x320xf32>
    %75 = arith.addf %69, %74 : vector<5x320xf32>
    %c0_90 = arith.constant 0 : index
    %c0_91 = arith.constant 0 : index
    %c1_92 = arith.constant 1 : index
    %c0_93 = arith.constant 0 : index
    %76 = vector.load %arg1[%c0_90, %c0_91, %c1_92, %c0_93] : memref<1x8x6x176xbf16, #tpu.memory_space<vmem>>, vector<1x1x5x176xbf16>
    %77 = vector.shape_cast %76 : vector<1x1x5x176xbf16> to vector<5x176xbf16>
    %c4_94 = arith.constant 4 : index
    %c0_95 = arith.constant 0 : index
    %c0_96 = arith.constant 0 : index
    %78 = vector.load %arg2[%c4_94, %c0_95, %c0_96] : memref<8x176x320xbf16, #tpu.memory_space<vmem>>, vector<1x176x320xbf16>
    %79 = vector.shape_cast %78 : vector<1x176x320xbf16> to vector<176x320xbf16>
    %cst_97 = arith.constant dense<0.000000e+00> : vector<5x320xf32>
    %80 = tpu.matmul %77, %79, %cst_97 {dimension_numbers = #tpu.dot_dimension_numbers<[1], [0], [0], [1], [0, 0, 1, 1], [], []>} : vector<5x176xbf16>, vector<176x320xbf16>, vector<5x320xf32> -> vector<5x320xf32>
    %81 = arith.addf %75, %80 : vector<5x320xf32>
    %c0_98 = arith.constant 0 : index
    %c1_99 = arith.constant 1 : index
    %c1_100 = arith.constant 1 : index
    %c0_101 = arith.constant 0 : index
    %82 = vector.load %arg1[%c0_98, %c1_99, %c1_100, %c0_101] : memref<1x8x6x176xbf16, #tpu.memory_space<vmem>>, vector<1x1x5x176xbf16>
    %83 = vector.shape_cast %82 : vector<1x1x5x176xbf16> to vector<5x176xbf16>
    %c5_102 = arith.constant 5 : index
    %c0_103 = arith.constant 0 : index
    %c0_104 = arith.constant 0 : index
    %84 = vector.load %arg2[%c5_102, %c0_103, %c0_104] : memref<8x176x320xbf16, #tpu.memory_space<vmem>>, vector<1x176x320xbf16>
    %85 = vector.shape_cast %84 : vector<1x176x320xbf16> to vector<176x320xbf16>
    %cst_105 = arith.constant dense<0.000000e+00> : vector<5x320xf32>
    %86 = tpu.matmul %83, %85, %cst_105 {dimension_numbers = #tpu.dot_dimension_numbers<[1], [0], [0], [1], [0, 0, 1, 1], [], []>} : vector<5x176xbf16>, vector<176x320xbf16>, vector<5x320xf32> -> vector<5x320xf32>
    %87 = arith.addf %81, %86 : vector<5x320xf32>
    %c0_106 = arith.constant 0 : index
    %c2_107 = arith.constant 2 : index
    %c1_108 = arith.constant 1 : index
    %c0_109 = arith.constant 0 : index
    %88 = vector.load %arg1[%c0_106, %c2_107, %c1_108, %c0_109] : memref<1x8x6x176xbf16, #tpu.memory_space<vmem>>, vector<1x1x5x176xbf16>
    %89 = vector.shape_cast %88 : vector<1x1x5x176xbf16> to vector<5x176xbf16>
    %c6_110 = arith.constant 6 : index
    %c0_111 = arith.constant 0 : index
    %c0_112 = arith.constant 0 : index
    %90 = vector.load %arg2[%c6_110, %c0_111, %c0_112] : memref<8x176x320xbf16, #tpu.memory_space<vmem>>, vector<1x176x320xbf16>
    %91 = vector.shape_cast %90 : vector<1x176x320xbf16> to vector<176x320xbf16>
    %cst_113 = arith.constant dense<0.000000e+00> : vector<5x320xf32>
    %92 = tpu.matmul %89, %91, %cst_113 {dimension_numbers = #tpu.dot_dimension_numbers<[1], [0], [0], [1], [0, 0, 1, 1], [], []>} : vector<5x176xbf16>, vector<176x320xbf16>, vector<5x320xf32> -> vector<5x320xf32>
    %93 = arith.addf %87, %92 : vector<5x320xf32>
    %c0_114 = arith.constant 0 : index
    %c3_115 = arith.constant 3 : index
    %c1_116 = arith.constant 1 : index
    %c0_117 = arith.constant 0 : index
    %94 = vector.load %arg1[%c0_114, %c3_115, %c1_116, %c0_117] : memref<1x8x6x176xbf16, #tpu.memory_space<vmem>>, vector<1x1x5x176xbf16>
    %95 = vector.shape_cast %94 : vector<1x1x5x176xbf16> to vector<5x176xbf16>
    %c7_118 = arith.constant 7 : index
    %c0_119 = arith.constant 0 : index
    %c0_120 = arith.constant 0 : index
    %96 = vector.load %arg2[%c7_118, %c0_119, %c0_120] : memref<8x176x320xbf16, #tpu.memory_space<vmem>>, vector<1x176x320xbf16>
    %97 = vector.shape_cast %96 : vector<1x176x320xbf16> to vector<176x320xbf16>
    %cst_121 = arith.constant dense<0.000000e+00> : vector<5x320xf32>
    %98 = tpu.matmul %95, %97, %cst_121 {dimension_numbers = #tpu.dot_dimension_numbers<[1], [0], [0], [1], [0, 0, 1, 1], [], []>} : vector<5x176xbf16>, vector<176x320xbf16>, vector<5x320xf32> -> vector<5x320xf32>
    %99 = arith.addf %93, %98 : vector<5x320xf32>
    %c0_122 = arith.constant 0 : index
    %c0_123 = arith.constant 0 : index
    %100 = vector.load %arg3[%c0_122, %c0_123] : memref<1x320xf32, #tpu.memory_space<vmem>>, vector<1x320xf32>
    %101 = vector.broadcast %100 : vector<1x320xf32> to vector<5x320xf32>
    %102 = arith.addf %99, %101 : vector<5x320xf32>
    %cst_124 = arith.constant 0.000000e+00 : f32
    %103 = vector.broadcast %cst_124 : f32 to vector<5x320xf32>
    %104 = arith.maximumf %102, %103 : vector<5x320xf32>
    %105 = arith.truncf %104 : vector<5x320xf32> to vector<5x320xbf16>
    %106 = vector.extract_strided_slice %52 {offsets = [0, 0], sizes = [4, 320], strides = [1, 1]} : vector<5x320xbf16> to vector<4x320xbf16>
    %c0_125 = arith.constant 0 : index
    %c0_126 = arith.constant 0 : index
    %c0_127 = arith.constant 0 : index
    %107 = vector.load %arg4[%c0_125, %c0_126, %c0_127] : memref<4x320x256xbf16, #tpu.memory_space<vmem>>, vector<1x320x256xbf16>
    %108 = vector.shape_cast %107 : vector<1x320x256xbf16> to vector<320x256xbf16>
    %cst_128 = arith.constant dense<0.000000e+00> : vector<4x256xf32>
    %109 = tpu.matmul %106, %108, %cst_128 {dimension_numbers = #tpu.dot_dimension_numbers<[1], [0], [0], [1], [0, 0, 1, 1], [], []>} : vector<4x320xbf16>, vector<320x256xbf16>, vector<4x256xf32> -> vector<4x256xf32>
    %110 = vector.extract_strided_slice %105 {offsets = [0, 0], sizes = [4, 320], strides = [1, 1]} : vector<5x320xbf16> to vector<4x320xbf16>
    %c1_129 = arith.constant 1 : index
    %c0_130 = arith.constant 0 : index
    %c0_131 = arith.constant 0 : index
    %111 = vector.load %arg4[%c1_129, %c0_130, %c0_131] : memref<4x320x256xbf16, #tpu.memory_space<vmem>>, vector<1x320x256xbf16>
    %112 = vector.shape_cast %111 : vector<1x320x256xbf16> to vector<320x256xbf16>
    %cst_132 = arith.constant dense<0.000000e+00> : vector<4x256xf32>
    %113 = tpu.matmul %110, %112, %cst_132 {dimension_numbers = #tpu.dot_dimension_numbers<[1], [0], [0], [1], [0, 0, 1, 1], [], []>} : vector<4x320xbf16>, vector<320x256xbf16>, vector<4x256xf32> -> vector<4x256xf32>
    %114 = arith.addf %109, %113 : vector<4x256xf32>
    %115 = vector.extract_strided_slice %52 {offsets = [1, 0], sizes = [4, 320], strides = [1, 1]} : vector<5x320xbf16> to vector<4x320xbf16>
    %c2_133 = arith.constant 2 : index
    %c0_134 = arith.constant 0 : index
    %c0_135 = arith.constant 0 : index
    %116 = vector.load %arg4[%c2_133, %c0_134, %c0_135] : memref<4x320x256xbf16, #tpu.memory_space<vmem>>, vector<1x320x256xbf16>
    %117 = vector.shape_cast %116 : vector<1x320x256xbf16> to vector<320x256xbf16>
    %cst_136 = arith.constant dense<0.000000e+00> : vector<4x256xf32>
    %118 = tpu.matmul %115, %117, %cst_136 {dimension_numbers = #tpu.dot_dimension_numbers<[1], [0], [0], [1], [0, 0, 1, 1], [], []>} : vector<4x320xbf16>, vector<320x256xbf16>, vector<4x256xf32> -> vector<4x256xf32>
    %119 = arith.addf %114, %118 : vector<4x256xf32>
    %120 = vector.extract_strided_slice %105 {offsets = [1, 0], sizes = [4, 320], strides = [1, 1]} : vector<5x320xbf16> to vector<4x320xbf16>
    %c3_137 = arith.constant 3 : index
    %c0_138 = arith.constant 0 : index
    %c0_139 = arith.constant 0 : index
    %121 = vector.load %arg4[%c3_137, %c0_138, %c0_139] : memref<4x320x256xbf16, #tpu.memory_space<vmem>>, vector<1x320x256xbf16>
    %122 = vector.shape_cast %121 : vector<1x320x256xbf16> to vector<320x256xbf16>
    %cst_140 = arith.constant dense<0.000000e+00> : vector<4x256xf32>
    %123 = tpu.matmul %120, %122, %cst_140 {dimension_numbers = #tpu.dot_dimension_numbers<[1], [0], [0], [1], [0, 0, 1, 1], [], []>} : vector<4x320xbf16>, vector<320x256xbf16>, vector<4x256xf32> -> vector<4x256xf32>
    %124 = arith.addf %119, %123 : vector<4x256xf32>
    %c0_141 = arith.constant 0 : index
    %c0_142 = arith.constant 0 : index
    %125 = vector.load %arg5[%c0_141, %c0_142] : memref<1x256xf32, #tpu.memory_space<vmem>>, vector<1x256xf32>
    %126 = vector.broadcast %125 : vector<1x256xf32> to vector<4x256xf32>
    %127 = arith.addf %124, %126 : vector<4x256xf32>
    %cst_143 = arith.constant 0.000000e+00 : f32
    %128 = vector.broadcast %cst_143 : f32 to vector<4x256xf32>
    %129 = arith.maximumf %127, %128 : vector<4x256xf32>
    %130 = arith.truncf %129 : vector<4x256xf32> to vector<4x256xbf16>
    %131 = vector.extract_strided_slice %130 {offsets = [0, 0], sizes = [2, 256], strides = [1, 1]} : vector<4x256xbf16> to vector<2x256xbf16>
    %c0_144 = arith.constant 0 : index
    %c0_145 = arith.constant 0 : index
    %c0_146 = arith.constant 0 : index
    %132 = vector.load %arg6[%c0_144, %c0_145, %c0_146] : memref<3x256x128xbf16, #tpu.memory_space<vmem>>, vector<1x256x128xbf16>
    %133 = vector.shape_cast %132 : vector<1x256x128xbf16> to vector<256x128xbf16>
    %cst_147 = arith.constant dense<0.000000e+00> : vector<2x128xf32>
    %134 = tpu.matmul %131, %133, %cst_147 {dimension_numbers = #tpu.dot_dimension_numbers<[1], [0], [0], [1], [0, 0, 1, 1], [], []>} : vector<2x256xbf16>, vector<256x128xbf16>, vector<2x128xf32> -> vector<2x128xf32>
    %135 = vector.extract_strided_slice %130 {offsets = [1, 0], sizes = [2, 256], strides = [1, 1]} : vector<4x256xbf16> to vector<2x256xbf16>
    %c1_148 = arith.constant 1 : index
    %c0_149 = arith.constant 0 : index
    %c0_150 = arith.constant 0 : index
    %136 = vector.load %arg6[%c1_148, %c0_149, %c0_150] : memref<3x256x128xbf16, #tpu.memory_space<vmem>>, vector<1x256x128xbf16>
    %137 = vector.shape_cast %136 : vector<1x256x128xbf16> to vector<256x128xbf16>
    %cst_151 = arith.constant dense<0.000000e+00> : vector<2x128xf32>
    %138 = tpu.matmul %135, %137, %cst_151 {dimension_numbers = #tpu.dot_dimension_numbers<[1], [0], [0], [1], [0, 0, 1, 1], [], []>} : vector<2x256xbf16>, vector<256x128xbf16>, vector<2x128xf32> -> vector<2x128xf32>
    %139 = arith.addf %134, %138 : vector<2x128xf32>
    %140 = vector.extract_strided_slice %130 {offsets = [2, 0], sizes = [2, 256], strides = [1, 1]} : vector<4x256xbf16> to vector<2x256xbf16>
    %c2_152 = arith.constant 2 : index
    %c0_153 = arith.constant 0 : index
    %c0_154 = arith.constant 0 : index
    %141 = vector.load %arg6[%c2_152, %c0_153, %c0_154] : memref<3x256x128xbf16, #tpu.memory_space<vmem>>, vector<1x256x128xbf16>
    %142 = vector.shape_cast %141 : vector<1x256x128xbf16> to vector<256x128xbf16>
    %cst_155 = arith.constant dense<0.000000e+00> : vector<2x128xf32>
    %143 = tpu.matmul %140, %142, %cst_155 {dimension_numbers = #tpu.dot_dimension_numbers<[1], [0], [0], [1], [0, 0, 1, 1], [], []>} : vector<2x256xbf16>, vector<256x128xbf16>, vector<2x128xf32> -> vector<2x128xf32>
    %144 = arith.addf %139, %143 : vector<2x128xf32>
    %c0_156 = arith.constant 0 : index
    %c0_157 = arith.constant 0 : index
    %145 = vector.load %arg7[%c0_156, %c0_157] : memref<1x128xf32, #tpu.memory_space<vmem>>, vector<1x128xf32>
    %146 = vector.broadcast %145 : vector<1x128xf32> to vector<2x128xf32>
    %147 = arith.addf %144, %146 : vector<2x128xf32>
    %cst_158 = arith.constant 0.000000e+00 : f32
    %148 = vector.broadcast %cst_158 : f32 to vector<2x128xf32>
    %149 = arith.maximumf %147, %148 : vector<2x128xf32>
    %150 = arith.truncf %149 : vector<2x128xf32> to vector<2x128xbf16>
    %c0_159 = arith.constant 0 : index
    %c0_160 = arith.constant 0 : index
    %151 = vector.load %arg9[%c0_159, %c0_160] : memref<1x512xf32, #tpu.memory_space<vmem>>, vector<1x512xf32>
    %152 = vector.extract_strided_slice %150 {offsets = [0, 0], sizes = [1, 128], strides = [1, 1]} : vector<2x128xbf16> to vector<1x128xbf16>
    %c0_161 = arith.constant 0 : index
    %c0_162 = arith.constant 0 : index
    %c0_163 = arith.constant 0 : index
    %153 = vector.load %arg8[%c0_161, %c0_162, %c0_163] : memref<2x128x512xbf16, #tpu.memory_space<vmem>>, vector<1x128x512xbf16>
    %154 = vector.shape_cast %153 : vector<1x128x512xbf16> to vector<128x512xbf16>
    %cst_164 = arith.constant dense<0.000000e+00> : vector<1x512xf32>
    %155 = tpu.matmul %152, %154, %cst_164 {dimension_numbers = #tpu.dot_dimension_numbers<[1], [0], [0], [1], [0, 0, 1, 1], [], []>} : vector<1x128xbf16>, vector<128x512xbf16>, vector<1x512xf32> -> vector<1x512xf32>
    %156 = arith.addf %151, %155 : vector<1x512xf32>
    %157 = vector.extract_strided_slice %150 {offsets = [1, 0], sizes = [1, 128], strides = [1, 1]} : vector<2x128xbf16> to vector<1x128xbf16>
    %c1_165 = arith.constant 1 : index
    %c0_166 = arith.constant 0 : index
    %c0_167 = arith.constant 0 : index
    %158 = vector.load %arg8[%c1_165, %c0_166, %c0_167] : memref<2x128x512xbf16, #tpu.memory_space<vmem>>, vector<1x128x512xbf16>
    %159 = vector.shape_cast %158 : vector<1x128x512xbf16> to vector<128x512xbf16>
    %cst_168 = arith.constant dense<0.000000e+00> : vector<1x512xf32>
    %160 = tpu.matmul %157, %159, %cst_168 {dimension_numbers = #tpu.dot_dimension_numbers<[1], [0], [0], [1], [0, 0, 1, 1], [], []>} : vector<1x128xbf16>, vector<128x512xbf16>, vector<1x512xf32> -> vector<1x512xf32>
    %161 = arith.addf %156, %160 : vector<1x512xf32>
    %cst_169 = arith.constant 0.000000e+00 : f32
    %162 = vector.broadcast %cst_169 : f32 to vector<1x512xf32>
    %163 = arith.maximumf %161, %162 : vector<1x512xf32>
    %c0_170 = arith.constant 0 : index
    %c0_171 = arith.constant 0 : index
    %164 = vector.load %arg10[%c0_170, %c0_171] : memref<512x128xf32, #tpu.memory_space<vmem>>, vector<512x128xf32>
    %cst_172 = arith.constant dense<0.000000e+00> : vector<1x128xf32>
    %165 = tpu.matmul %163, %164, %cst_172 {dimension_numbers = #tpu.dot_dimension_numbers<[1], [0], [0], [1], [0, 0, 1, 1], [], []>} : vector<1x512xf32>, vector<512x128xf32>, vector<1x128xf32> -> vector<1x128xf32>
    %c0_173 = arith.constant 0 : index
    %c0_174 = arith.constant 0 : index
    %166 = vector.load %arg11[%c0_173, %c0_174] : memref<1x128xf32, #tpu.memory_space<vmem>>, vector<1x128xf32>
    %167 = arith.addf %165, %166 : vector<1x128xf32>
    %c0_175 = arith.constant 0 : index
    %c0_176 = arith.constant 0 : index
    %c0_177 = arith.constant 0 : index
    %168 = vector.load %arg12[%c0_175, %c0_176, %c0_177] : memref<1x1x128xf32, #tpu.memory_space<vmem>>, vector<1x1x128xf32>
    %169 = vector.shape_cast %168 : vector<1x1x128xf32> to vector<1x128xf32>
    %170 = vector.shape_cast %167 : vector<1x128xf32> to vector<1x1x128xf32>
    tpu.vector_store %arg12[%c0_175, %c0_176, %c0_177], %170 {strides = array<i32>} : memref<1x1x128xf32, #tpu.memory_space<vmem>>, vector<1x1x128xf32>,
    return
  }
  func.func @transform_0(%arg0: i32) -> (i32, i32, i32, i32) {
    %c0_i32 = arith.constant 0 : i32
    %c0_i32_0 = arith.constant 0 : i32
    %c0_i32_1 = arith.constant 0 : i32
    %c0_i32_2 = arith.constant 0 : i32
    return %arg0, %c0_i32, %c0_i32_0, %c0_i32_1 : i32, i32, i32, i32
  }
  func.func @transform_1(%arg0: i32) -> (i32, i32, i32) {
    %c0_i32 = arith.constant 0 : i32
    %c0_i32_0 = arith.constant 0 : i32
    %c0_i32_1 = arith.constant 0 : i32
    %c0_i32_2 = arith.constant 0 : i32
    return %c0_i32, %c0_i32_0, %c0_i32_1 : i32, i32, i32
  }
  func.func @transform_2(%arg0: i32) -> (i32, i32) {
    %c0_i32 = arith.constant 0 : i32
    %c0_i32_0 = arith.constant 0 : i32
    %c0_i32_1 = arith.constant 0 : i32
    return %c0_i32, %c0_i32_0 : i32, i32
  }
  func.func @transform_3(%arg0: i32) -> (i32, i32, i32) {
    %c0_i32 = arith.constant 0 : i32
    %c0_i32_0 = arith.constant 0 : i32
    %c0_i32_1 = arith.constant 0 : i32
    %c0_i32_2 = arith.constant 0 : i32
    return %c0_i32, %c0_i32_0, %c0_i32_1 : i32, i32, i32
  }
  func.func @transform_4(%arg0: i32) -> (i32, i32) {
    %c0_i32 = arith.constant 0 : i32
    %c0_i32_0 = arith.constant 0 : i32
    %c0_i32_1 = arith.constant 0 : i32
    return %c0_i32, %c0_i32_0 : i32, i32
  }
  func.func @transform_5(%arg0: i32) -> (i32, i32, i32) {
    %c0_i32 = arith.constant 0 : i32
    %c0_i32_0 = arith.constant 0 : i32
    %c0_i32_1 = arith.constant 0 : i32
    %c0_i32_2 = arith.constant 0 : i32
    return %c0_i32, %c0_i32_0, %c0_i32_1 : i32, i32, i32
  }
  func.func @transform_6(%arg0: i32) -> (i32, i32) {
    %c0_i32 = arith.constant 0 : i32
    %c0_i32_0 = arith.constant 0 : i32
    %c0_i32_1 = arith.constant 0 : i32
    return %c0_i32, %c0_i32_0 : i32, i32
  }
  func.func @transform_7(%arg0: i32) -> (i32, i32, i32) {
    %c0_i32 = arith.constant 0 : i32
    %c0_i32_0 = arith.constant 0 : i32
    %c0_i32_1 = arith.constant 0 : i32
    %c0_i32_2 = arith.constant 0 : i32
    return %c0_i32, %c0_i32_0, %c0_i32_1 : i32, i32, i32
  }
  func.func @transform_8(%arg0: i32) -> (i32, i32) {
    %c0_i32 = arith.constant 0 : i32
    %c0_i32_0 = arith.constant 0 : i32
    %c0_i32_1 = arith.constant 0 : i32
    return %c0_i32, %c0_i32_0 : i32, i32
  }
  func.func @transform_9(%arg0: i32) -> (i32, i32) {
    %c0_i32 = arith.constant 0 : i32
    %c0_i32_0 = arith.constant 0 : i32
    %c0_i32_1 = arith.constant 0 : i32
    return %c0_i32, %c0_i32_0 : i32, i32
  }
  func.func @transform_10(%arg0: i32) -> (i32, i32) {
    %c0_i32 = arith.constant 0 : i32
    %c0_i32_0 = arith.constant 0 : i32
    %c0_i32_1 = arith.constant 0 : i32
    return %c0_i32, %c0_i32_0 : i32, i32
  }
  func.func @transform_11(%arg0: i32) -> (i32, i32, i32) {
    %c0_i32 = arith.constant 0 : i32
    %c0_i32_0 = arith.constant 0 : i32
    %c0_i32_1 = arith.constant 0 : i32
    return %arg0, %c0_i32, %c0_i32_0 : i32, i32, i32
  }
}

</mosaic_0001>

<bundles_post_ra>
// kernel: dqn_forward.1
= control target key start
LH: loop header
LB: loop body
LE: loop exit
PB: predicated region body
PF: predicated region fallthrough
CT: control target
= control target key end

     0   :  { %s10543_s0 = inlined_call_operand.vmem [shape: bf16[2,8,6,176], index: 0, kind: input, shape index: {}]   ;;  %s10544_s1 = inlined_call_operand.hbm [shape: bf16[8,176,320], index: 1, kind: input, shape index: {}]   ;;  %s10545_s2 = inlined_call_operand.hbm [shape: f32[1,320], index: 2, kind: input, shape index: {}]   ;;  %s10546_s3 = inlined_call_operand.vmem [shape: bf16[4,320,256], index: 3, kind: input, shape index: {}]   ;;  %s10547_s4 = inlined_call_operand.hbm [shape: f32[1,256], index: 4, kind: input, shape index: {}]   ;;  %s10548_s5 = inlined_call_operand.hbm [shape: bf16[3,256,128], index: 5, kind: input, shape index: {}]   ;;  %s10549_s6 = inlined_call_operand.hbm [shape: f32[1,128], index: 6, kind: input, shape index: {}]   ;;  %s10550_s7 = inlined_call_operand.hbm [shape: bf16[2,128,512], index: 7, kind: input, shape index: {}]   ;;  %s10551_s8 = inlined_call_operand.hbm [shape: f32[1,512], index: 8, kind: input, shape index: {}]   ;;  %s10552_s9 = inlined_call_operand.hbm [shape: f32[512,128], index: 9, kind: input, shape index: {}]   ;;  %s10553_s10 = inlined_call_operand.hbm [shape: f32[1,128], index: 10, kind: input, shape index: {}]   ;;  %s10554_s11 = inlined_call_operand.hbm [shape: f32[2,1,128], index: 11, kind: output, shape index: {}]  }
   0x1   :  { %10563 = sst [smem:[#allocation29_spill]] %s10545_s2 }
   0x2   :  { %10564 = sst [smem:[#allocation30_spill]] %s10548_s5 }
   0x3   :  { %10565 = sst [smem:[#allocation31_spill]] %s10550_s7 }
   0x4   :  { %10566 = sst [smem:[#allocation32_spill]] %s10552_s9 }
   0x5   :  { %16 = vsyncpa [#allocation3], 0 }
   0x6   :  { %17 = vsyncpa [#allocation6], 0 }
   0x7   :  { %18 = vsyncpa [#allocation9], 0 }
   0x8   :  { %19 = vsyncpa [#allocation12], 0 }
   0x9   :  { %20 = vsyncpa [#allocation15], 0 }
   0xa   :  { %21 = vsyncpa [#allocation4], 0 }
   0xb   :  { %23 = vsyncpa [#allocation4 + $0x1], 0  ;;  %s9212_s17 = smov 0   ;;  %s9214_s18 = smov 0  }
   0xc   :  { %s9216_s19 = smov 0   ;;  %s9218_s20 = smov 0  }
   0xd LB: > { %10567 = sst [smem:[#allocation24_spill]] %s9118_s17  ;;  %s9233_s21 = sadd.s32 4294967295, %s9130_s20   ;;  %s9130_s20 = sphi %s9218_s20, %s10596_s20   ;;  %s9126_s19 = sphi %s9216_s19, %s10601_s19   ;;  %s9122_s18 = sphi %s9214_s18, %s10600_s18   ;;  %s9118_s17 = sphi %s9212_s17, %s10599_s17  }
   0xe   : > { %10568 = sst [smem:[#allocation25_spill]] %s9126_s19  ;;  %s6703_s22 = sadd.s32 4294967294, %s9130_s20  }
   0xf   : > { %s9237_s23 = sadd.s32 1, %s9130_s20   ;;  %s272_s24 = sadd.s32 1, %s9126_s19 }
  0x10   : > { %10569 = sst [smem:[#allocation26_spill]] %s9237_s23  ;;  %s269_s25 = ssub.s32 %s9130_s20, %s9237_s23 }
  0x11   : > { %p282_p0 = scmp.ne.s32.totalorder %s9126_s19, %s9122_s18  ;;  %p270_p1 = scmp.eq.s32.totalorder %s269_s25, 0 }
  0x12   : > { %p283_p2 = scmp.eq.s32.totalorder %s9233_s21, 1  ;;  %p288_p3 = scmp.ne.s32.totalorder %s9122_s18, %s9118_s17 }
  0x13   : > { %p289_p4 = scmp.eq.s32.totalorder %s6703_s22, 1  ;;  %p6704_p7 = scmp.ge.s32.totalorder %s9130_s20, 1 }
  0x14   : > { %s9248_s26 = scalar_select %p270_p1, %s9126_s19, %s272_s24  }
  0x15   : > { %p9250_p5 = por %p283_p2, %p282_p0  ;;  %p9254_p6 = por %p289_p4, %p288_p3 }
  0x16   : > { %10570 = sst [smem:[#allocation27_spill]] %s9248_s26  ;;  %p296_p8 = scmp.lt.s32.totalorder %s9130_s20, 3 }
  0x17   : > { %s10571_s27 = scalar_select %p9250_p5, 1, 0 }
  0x18   : > { %s10572_s28 = scalar_select %p9254_p6, 1, 0 }
  0x19   : > { %p10558_p9 = scmp.eq.s32.totalorder %s9233_s21, 0  ;;  %p9261_p10 = pnand %p6704_p7, %p296_p8 }
  0x1a   : > { %10573 = sst [smem:[#allocation28_spill]] %s10572_s28  ;;  %s9132_s30 = smov [#allocation5]  }
  0x1b   : > { %s10574_s29 = scalar_select %p9261_p10, 1, 0 }
  0x1c   : > { %s322_s12 = sshll.u32 %s9132_s30, 4  ;;  %p7685_p11 = pneg %p9261_p10  ;;  %s323_s12 = int_to_ptr.vmem [resolvable:$true] %s322_s12 }
  0x1d   : > { %s9133_s13 = smov [#allocation8]   ;;  %s9134_s16 = smov [#allocation11]  }
  0x1e   : > { %s346_s14 = sshll.u32 %s9133_s13, 4  ;;  %p9269_p12 = pnand %p10558_p9, %p7685_p11  ;;  %s9273_s14 = int_to_ptr.vmem [resolvable:$true] %s346_s14 }
  0x1f   : > { %s9275_s22 = sshll.u32 %s9134_s16, 4  ;;  %s10576_s2 = sld [smem:[#allocation29_spill]]  ;;  %s371_s22 = int_to_ptr.vmem [resolvable:$true] %s9275_s22 }
  0x20   : > { %p9285_p0 = pneg %p9269_p12 }
  0x25   : > { %s8796_s30 = scalar_lea.hbm %s10576_s2, 48 }
  0x26   : > { %p8797_p13 = scmp.ne.s32.totalorder %s10576_s2, %s8796_s30  ;;  %p8803_p3 = scmp.lt.u32.totalorder %s8796_s30, %s10576_s2 }
  0x28   : > { %p8799_p1 = pnand %p9285_p0, %p8797_p13 }
  0x2a   : > { %p8800_p2 = pneg %p8799_p1 }
  0x2c   : > { %p8805_p4 = pnand %p8803_p3, %p8800_p2 }
  0x2e   : > { %8808 = shalt.err (!%p8805_p4)
}
  0x2f   : > { %s8809_s24 = scalar_lea.vmem %s323_s12, 48  ;;  %s8816_s19 = scalar_lea.vmem %s323_s12, 64 }
  0x30   : > { %p8810_p7 = scmp.ne.s32.totalorder %s323_s12, %s8809_s24  ;;  %p8817_p9 = scmp.lt.s32.totalorder %s323_s12, %s323_s12 }
  0x31   : > { %p8818_p6 = scmp.lt.s32.totalorder %s8816_s19, %s8809_s24 }
  0x32   : > { %p8812_p8 = pnand %p8810_p7, %p9285_p0 }
  0x33   : > { %p8819_p5 = por %p8818_p6, %p8817_p9 }
  0x34   : > { %p8813_p11 = pneg %p8812_p8 }
  0x36   : > { %p8820_p10 = pnand %p8819_p5, %p8813_p11 }
  0x38   : > { %8823 = shalt.err (!%p8820_p10)
}
  0x39   : > { %7691 = dma.hbm_to_vmem [thread:$0]  (!%p9269_p12), %s10576_s2, 48, %s323_s12, [#allocation6]  }
  0x3a   : > { %s10578_s5 = sld [smem:[#allocation30_spill]] }
  0x40   : > { %s8824_s16 = scalar_lea.hbm %s10578_s5, 6144 }
  0x41   : > { %p8825_p13 = scmp.ne.s32.totalorder %s10578_s5, %s8824_s16  ;;  %p8831_p5 = scmp.lt.u32.totalorder %s8824_s16, %s10578_s5 }
  0x43   : > { %p8827_p1 = pnand %p8825_p13, %p9285_p0 }
  0x45   : > { %p8828_p6 = pneg %p8827_p1 }
  0x47   : > { %p8833_p9 = pnand %p8831_p5, %p8828_p6 }
  0x49   : > { %8836 = shalt.err (!%p8833_p9)
}
  0x4a   : > { %s8837_s12 = scalar_lea.vmem %s9273_s14, 6144  ;;  %p8845_p4 = scmp.lt.s32.totalorder %s9273_s14, %s9273_s14 }
  0x4b   : > { %p8838_p10 = scmp.ne.s32.totalorder %s9273_s14, %s8837_s12  ;;  %p8846_p7 = scmp.lt.s32.totalorder %s8837_s12, %s8837_s12 }
  0x4d   : > { %p8840_p2 = pnand %p8838_p10, %p9285_p0  ;;  %p8847_p8 = por %p8846_p7, %p8845_p4 }
  0x4f   : > { %p8841_p3 = pneg %p8840_p2 }
  0x51   : > { %p8848_p11 = pnand %p8847_p8, %p8841_p3 }
  0x53   : > { %8851 = shalt.err (!%p8848_p11)
}
  0x54   : > { %s9135_s17 = smov 64   ;;  %s9136_s28 = smov 4  }
  0x55   : > { %7697 = dma.hbm_to_vmem [thread:$0]  (!%p9269_p12), %s10578_s5, 6144, %s9273_s14, [#allocation9], %s9135_s17, %s9135_s17, %s9136_s28  }
  0x56   : > { %s10579_s7 = sld [smem:[#allocation31_spill]] }
  0x5c   : > { %s8852_s16 = scalar_lea.hbm %s10579_s7, 8192 }
  0x5d   : > { %p8853_p13 = scmp.ne.s32.totalorder %s10579_s7, %s8852_s16  ;;  %p8859_p5 = scmp.lt.u32.totalorder %s8852_s16, %s10579_s7 }
  0x5f   : > { %p8855_p1 = pnand %p8853_p13, %p9285_p0 }
  0x61   : > { %p8856_p6 = pneg %p8855_p1 }
  0x63   : > { %p8861_p9 = pnand %p8859_p5, %p8856_p6 }
  0x65   : > { %8864 = shalt.err (!%p8861_p9)
}
  0x66   : > { %s8865_s26 = scalar_lea.vmem %s371_s22, 8192  ;;  %p8873_p4 = scmp.lt.s32.totalorder %s371_s22, %s371_s22 }
  0x67   : > { %p8866_p10 = scmp.ne.s32.totalorder %s371_s22, %s8865_s26  ;;  %p8874_p7 = scmp.lt.s32.totalorder %s8865_s26, %s8865_s26 }
  0x69   : > { %p8868_p2 = pnand %p8866_p10, %p9285_p0  ;;  %p8875_p8 = por %p8874_p7, %p8873_p4 }
  0x6b   : > { %p8869_p3 = pneg %p8868_p2 }
  0x6d   : > { %p8876_p11 = pnand %p8875_p8, %p8869_p3 }
  0x6f   : > { %8879 = shalt.err (!%p8876_p11)
}
  0x70   : > { %s9137_s14 = smov 256   ;;  %s9138_s17 = smov 16  }
  0x71   : > { %7703 = dma.hbm_to_vmem [thread:$0]  (!%p9269_p12), %s10579_s7, 8192, %s371_s22, [#allocation12], %s9137_s14, %s9137_s14, %s9138_s17  }
  0x72   : > { %s9139_s25 = smov [#allocation14]   ;;  %s10580_s9 = sld [smem:[#allocation32_spill]] }
  0x73   : > { %s394_s23 = sshll.u32 %s9139_s25, 4  ;;  %s395_s23 = int_to_ptr.vmem [resolvable:$true] %s394_s23 }
  0x78   : > { %s8880_s24 = scalar_lea.hbm %s10580_s9, 8192 }
  0x79   : > { %p8881_p13 = scmp.ne.s32.totalorder %s10580_s9, %s8880_s24  ;;  %p8887_p5 = scmp.lt.u32.totalorder %s8880_s24, %s10580_s9 }
  0x7b   : > { %p8883_p1 = pnand %p8881_p13, %p9285_p0 }
  0x7d   : > { %p8884_p6 = pneg %p8883_p1 }
  0x7f   : > { %p8889_p9 = pnand %p8887_p5, %p8884_p6 }
  0x81   : > { %8892 = shalt.err (!%p8889_p9)
}
  0x82   : > { %s8893_s22 = scalar_lea.vmem %s395_s23, 8192  ;;  %p8901_p4 = scmp.lt.s32.totalorder %s395_s23, %s395_s23 }
  0x83   : > { %p8894_p10 = scmp.ne.s32.totalorder %s395_s23, %s8893_s22  ;;  %p8902_p7 = scmp.lt.s32.totalorder %s8893_s22, %s8893_s22 }
  0x85   : > { %p8896_p2 = pnand %p8894_p10, %p9285_p0  ;;  %p8903_p8 = por %p8902_p7, %p8901_p4 }
  0x87   : > { %p8897_p3 = pneg %p8896_p2 }
  0x89   : > { %p8904_p11 = pnand %p8903_p8, %p8897_p3 }
  0x8b   : > { %8907 = shalt.err (!%p8904_p11)
}
  0x8c   : > { %s9140_s14 = smov 128   ;;  %s9141_s17 = smov 8  }
  0x8d   : > { %7709 = dma.hbm_to_vmem [thread:$0]  (!%p9269_p12), %s10580_s9, 8192, %s395_s23, [#allocation15], %s9140_s14, %s9140_s14, %s9141_s17  }
  0x8e   : > { %s9142_s28 = smov [#allocation2]   ;;  %s8908_s24 = scalar_lea.hbm %s10544_s1, 33792 }
  0x8f   : > { %s308_s25 = sshll.u32 %s9142_s28, 4  ;;  %p8909_p13 = scmp.ne.s32.totalorder %s10544_s1, %s8908_s24  ;;  %s309_s25 = int_to_ptr.vmem [resolvable:$true] %s308_s25 }
  0x90   : > { %p8915_p5 = scmp.lt.u32.totalorder %s8908_s24, %s10544_s1 }
  0x91   : > { %p8911_p1 = pnand %p8909_p13, %p9285_p0 }
  0x93   : > { %p8912_p6 = pneg %p8911_p1 }
  0x95   : > { %p8917_p9 = pnand %p8915_p5, %p8912_p6 }
  0x97   : > { %8920 = shalt.err (!%p8917_p9)
}
  0x98   : > { %s8921_s23 = scalar_lea.vmem %s309_s25, 33792  ;;  %p8929_p4 = scmp.lt.s32.totalorder %s309_s25, %s309_s25 }
  0x99   : > { %p8922_p10 = scmp.ne.s32.totalorder %s309_s25, %s8921_s23  ;;  %p8930_p7 = scmp.lt.s32.totalorder %s8921_s23, %s8921_s23 }
  0x9b   : > { %p8924_p2 = pnand %p8922_p10, %p9285_p0  ;;  %p8931_p8 = por %p8930_p7, %p8929_p4 }
  0x9d   : > { %p8925_p3 = pneg %p8924_p2 }
  0x9f   : > { %p8932_p11 = pnand %p8931_p8, %p8925_p3 }
  0xa1   : > { %8935 = shalt.err (!%p8932_p11)
}
  0xa2   : > { %s9143_s14 = smov 192   ;;  %s9144_s17 = smov 12  }
  0xa3   : > { %7688 = dma.hbm_to_vmem [thread:$0]  (!%p9269_p12), %s10544_s1, 33792, %s309_s25, [#allocation3], %s9143_s14, %s9143_s14, %s9144_s17  }
  0xa4   : > { %s9145_s28 = smov [#allocation7]   ;;  %s9146_s16 = smov [#allocation10]  }
  0xa5   : > { %s336_s30 = sshll.u32 %s9145_s28, 4  ;;  %s360_s24 = sshll.u32 %s9146_s16, 4  ;;  %s337_s30 = int_to_ptr.vmem [resolvable:$true] %s336_s30  ;;  %s361_s24 = int_to_ptr.vmem [resolvable:$true] %s360_s24 }
  0xa6   : > { %s8936_s26 = scalar_lea.hbm %s10547_s4, 32 }
  0xa7   : > { %p8937_p13 = scmp.ne.s32.totalorder %s10547_s4, %s8936_s26  ;;  %p8943_p5 = scmp.lt.u32.totalorder %s8936_s26, %s10547_s4 }
  0xa9   : > { %p8939_p1 = pnand %p8937_p13, %p9285_p0 }
  0xab   : > { %p8940_p6 = pneg %p8939_p1 }
  0xad   : > { %p8945_p9 = pnand %p8943_p5, %p8940_p6 }
  0xaf   : > { %8948 = shalt.err (!%p8945_p9)
}
  0xb0   : > { %s8949_s25 = scalar_lea.vmem %s337_s30, 32  ;;  %p8957_p4 = scmp.lt.s32.totalorder %s337_s30, %s337_s30 }
  0xb1   : > { %p8950_p10 = scmp.ne.s32.totalorder %s337_s30, %s8949_s25  ;;  %p8958_p7 = scmp.lt.s32.totalorder %s8949_s25, %s8949_s25 }
  0xb3   : > { %p8952_p2 = pnand %p8950_p10, %p9285_p0  ;;  %p8959_p8 = por %p8958_p7, %p8957_p4 }
  0xb5   : > { %p8953_p3 = pneg %p8952_p2 }
  0xb7   : > { %p8960_p11 = pnand %p8959_p8, %p8953_p3 }
  0xb9   : > { %8963 = shalt.err (!%p8960_p11)
}
  0xba   : > { %7694 = dma.hbm_to_vmem [thread:$0]  (!%p9269_p12), %s10547_s4, 32, %s337_s30, [#allocation6]  }
  0xbb   : > { %s8964_s5 = scalar_lea.hbm %s10549_s6, 16 }
  0xbc   : > { %p8965_p13 = scmp.ne.s32.totalorder %s10549_s6, %s8964_s5  ;;  %p8971_p5 = scmp.lt.u32.totalorder %s8964_s5, %s10549_s6 }
  0xbe   : > { %p8967_p1 = pnand %p8965_p13, %p9285_p0 }
  0xc0   : > { %p8968_p6 = pneg %p8967_p1 }
  0xc2   : > { %p8973_p9 = pnand %p8971_p5, %p8968_p6 }
  0xc4   : > { %8976 = shalt.err (!%p8973_p9)
}
  0xc5   : > { %s8977_s12 = scalar_lea.vmem %s361_s24, 16  ;;  %s8984_s30 = scalar_lea.vmem %s361_s24, 32 }
  0xc6   : > { %p8978_p10 = scmp.ne.s32.totalorder %s361_s24, %s8977_s12  ;;  %p8985_p4 = scmp.lt.s32.totalorder %s361_s24, %s361_s24 }
  0xc7   : > { %p8986_p7 = scmp.lt.s32.totalorder %s8984_s30, %s8977_s12 }
  0xc8   : > { %p8980_p2 = pnand %p8978_p10, %p9285_p0 }
  0xc9   : > { %p8987_p8 = por %p8986_p7, %p8985_p4 }
  0xca   : > { %p8981_p3 = pneg %p8980_p2 }
  0xcc   : > { %p8988_p11 = pnand %p8987_p8, %p8981_p3 }
  0xce   : > { %8991 = shalt.err (!%p8988_p11)
}
  0xcf   : > { %7700 = dma.hbm_to_vmem [thread:$0]  (!%p9269_p12), %s10549_s6, 16, %s361_s24, [#allocation9]  }
  0xd0   : > { %s9147_s23 = smov [#allocation13]   ;;  %s9148_s14 = smov [#allocation16]  }
  0xd1   : > { %s384_s25 = sshll.u32 %s9147_s23, 4  ;;  %s408_s17 = sshll.u32 %s9148_s14, 4  ;;  %s385_s25 = int_to_ptr.vmem [resolvable:$true] %s384_s25  ;;  %s409_s17 = int_to_ptr.vmem [resolvable:$true] %s408_s17 }
  0xd2   : > { %s8992_s5 = scalar_lea.hbm %s10551_s8, 64 }
  0xd3   : > { %p8993_p13 = scmp.ne.s32.totalorder %s10551_s8, %s8992_s5  ;;  %p8999_p5 = scmp.lt.u32.totalorder %s8992_s5, %s10551_s8 }
  0xd5   : > { %p8995_p1 = pnand %p8993_p13, %p9285_p0 }
  0xd7   : > { %p8996_p6 = pneg %p8995_p1 }
  0xd9   : > { %p9001_p9 = pnand %p8999_p5, %p8996_p6 }
  0xdb   : > { %9004 = shalt.err (!%p9001_p9)
}
  0xdc   : > { %s9005_s24 = scalar_lea.vmem %s385_s25, 64  ;;  %p9013_p4 = scmp.lt.s32.totalorder %s385_s25, %s385_s25 }
  0xdd   : > { %p9006_p10 = scmp.ne.s32.totalorder %s385_s25, %s9005_s24  ;;  %p9014_p7 = scmp.lt.s32.totalorder %s9005_s24, %s9005_s24 }
  0xdf   : > { %p9008_p2 = pnand %p9006_p10, %p9285_p0  ;;  %p9015_p8 = por %p9014_p7, %p9013_p4 }
  0xe1   : > { %p9009_p3 = pneg %p9008_p2 }
  0xe3   : > { %p9016_p11 = pnand %p9015_p8, %p9009_p3 }
  0xe5   : > { %9019 = shalt.err (!%p9016_p11)
}
  0xe6   : > { %7706 = dma.hbm_to_vmem [thread:$0]  (!%p9269_p12), %s10551_s8, 64, %s385_s25, [#allocation12]  }
  0xe7   : > { %s9020_s23 = scalar_lea.hbm %s10553_s10, 16 }
  0xe8   : > { %p9021_p13 = scmp.ne.s32.totalorder %s10553_s10, %s9020_s23  ;;  %p9027_p5 = scmp.lt.u32.totalorder %s9020_s23, %s10553_s10 }
  0xea   : > { %p9023_p1 = pnand %p9021_p13, %p9285_p0 }
  0xec   : > { %p9024_p6 = pneg %p9023_p1 }
  0xee   : > { %p9029_p9 = pnand %p9027_p5, %p9024_p6 }
  0xf0   : > { %9032 = shalt.err (!%p9029_p9)
}
  0xf1   : > { %s9033_s2 = scalar_lea.vmem %s409_s17, 16  ;;  %s9040_s25 = scalar_lea.vmem %s409_s17, 32 }
  0xf2   : > { %p9034_p10 = scmp.ne.s32.totalorder %s409_s17, %s9033_s2  ;;  %p9041_p4 = scmp.lt.s32.totalorder %s409_s17, %s409_s17 }
  0xf3   : > { %p9042_p7 = scmp.lt.s32.totalorder %s9040_s25, %s9033_s2 }
  0xf4   : > { %p9036_p2 = pnand %p9034_p10, %p9285_p0 }
  0xf5   : > { %p9043_p8 = por %p9042_p7, %p9041_p4 }
  0xf6   : > { %p9037_p3 = pneg %p9036_p2 }
  0xf8   : > { %p9044_p11 = pnand %p9043_p8, %p9037_p3 }
  0xfa   : > { %9047 = shalt.err (!%p9044_p11)
}
  0xfb   : > { %7712 = dma.hbm_to_vmem [thread:$0]  (!%p9269_p12), %s10553_s10, 16, %s409_s17, [#allocation15]  }
  0xfc   : > { %p10581_p13 = scmp.ne.s32.totalorder %s10574_s29, 0 }
  0xfd   : > { %p10582_p1 = scmp.eq.s32.totalorder (!%p10581_p13), %s9233_s21, 0 }
  0xfe   : > { %429 = sbr.rel (%p10581_p13) target bundleno = 2338 (0x922), region = 64 }
 0x105   : > { %9093 = dma.done.wait (%p10582_p1), [#allocation3], 33792   ;;  %p10583_p0 = pmov %p10582_p1 }
 0x107   : > { %9095 = vsyncadd (%p10583_p0), [#allocation3], 4294933504  ;;  %p10584_p6 = pmov %p10583_p0 }
 0x108   : > { %p10585_p5 = pmov %p10583_p0 }
 0x109   : > { %9097 = dma.done.wait (%p10584_p6), [#allocation6], 80  }
 0x10a   : > { %9099 = vsyncadd (%p10585_p5), [#allocation6], 4294967216  ;;  %p10586_p9 = pmov %p10583_p0 }
 0x10b   : > { %p10587_p12 = pmov %p10583_p0 }
 0x10c   : > { %9101 = dma.done.wait (%p10586_p9), [#allocation9], 6160  }
 0x10d   : > { %9103 = vsyncadd (%p10587_p12), [#allocation9], 4294961136  ;;  %p10588_p10 = pmov %p10583_p0 }
 0x10e   : > { %p10589_p2 = pmov %p10583_p0 }
 0x10f   : > { %9105 = dma.done.wait (%p10588_p10), [#allocation12], 8256  }
 0x110   : > { %9107 = vsyncadd (%p10589_p2), [#allocation12], 4294959040  ;;  %p10590_p3 = pmov %p10583_p0 }
 0x111   : > { %p10591_p4 = pmov %p10583_p0 }
 0x112   : > { %9109 = dma.done.wait (%p10590_p3), [#allocation15], 8208  }
 0x113   : > { %9111 = vsyncadd (%p10591_p4), [#allocation15], 4294959088  ;;  %v9149_v0 = vmov 0   ;;  %v7787_v1 = vld [vmem:[#allocation2 + $0x10c] ss:$12 sps:$4 sm:$0xff]   ;;  %p500_p7 = scmp.lt.s32.totalorder %s9233_s21, 1 }
 0x114   : > { %825 = vmatprep.subr.bf16.mxu1 %v9149_v0  ;;  %v7789_v2 = vld [vmem:[#allocation2 + $0x110] ss:$12 sps:$4 sm:$0xff]   ;;  %784 = vmatprep.subr.bf16.mxu0 %v7787_v1  ;;  %v7790_v3 = vld [vmem:[#allocation2 + $0x108] ss:$12 sps:$4 sm:$0xff]   ;;  %v7794_v6 = vld [vmem:[#allocation2 + $0x120] ss:$12 sps:$4 sm:$0xff]  }
 0x115   : > { %826 = vmatpush1.bf16.msra.mxu1 %v7789_v2  ;;  %v7791_v4 = vld [vmem:[#allocation2 + $0x124] ss:$12 sps:$4 sm:$0xff]   ;;  %785 = vmatpush1.bf16.msra.mxu0 %v7790_v3  ;;  %v7793_v5 = vld [vmem:[#allocation2 + $0x128] ss:$12 sps:$4 sm:$0xff]   ;;  %v7797_v8 = vld [vmem:[#allocation2 + $0x140] ss:$12 sps:$4 sm:$0xff]  }
 0x116   : > { %827 = vmatprep.subr.bf16.mxu1 %v9149_v0  ;;  %786 = vmatprep.subr.bf16.mxu0 %v7791_v4  ;;  %v7795_v7 = vld [vmem:[#allocation2 + $0x13c] ss:$12 sps:$4 sm:$0xff]   ;;  %v7798_v9 = vld [vmem:[#allocation2 + $0x138] ss:$12 sps:$4 sm:$0xff]   ;;  %v7799_v10 = vld [vmem:[#allocation2 + $0x154] ss:$12 sps:$4 sm:$0xff]  }
 0x117   : > { %v7801_v11 = vld [vmem:[#allocation2 + $0x158] ss:$12 sps:$4 sm:$0xff]   ;;  %v7802_v12 = vld [vmem:[#allocation2 + $0x150] ss:$12 sps:$4 sm:$0xff]   ;;  %s501_s29 = scalar_select %p500_p7, %s9233_s21, 1  ;;  %vm780_vm0 = vcmask 392192  }
 0x118   : > { %v7803_v13 = vld [vmem:[#allocation2 + $0x16c] ss:$12 sps:$4 sm:$0xff]   ;;  %v7805_v14 = vld [vmem:[#allocation2 + $0x170] ss:$12 sps:$4 sm:$0xff]   ;;  %v7806_v15 = vld [vmem:[#allocation2 + $0x168] ss:$12 sps:$4 sm:$0xff]  }
 0x119   : > { %828 = vmatpush1.bf16.msra.mxu1 %v7793_v5  ;;  %787 = vmatpush1.bf16.msra.mxu0 %v7794_v6  ;;  %v7807_v16 = vld [vmem:[#allocation2 + $0x184] ss:$12 sps:$4 sm:$0xff]   ;;  %v7809_v17 = vld [vmem:[#allocation2 + $0x188] ss:$12 sps:$4 sm:$0xff]   ;;  %s7446_s15 = sshll.u32 %s501_s29, 6  ;;  %vm4077_vm1 = vcmask 523264  }
 0x11a   : > { %829 = vmatprep.subr.bf16.mxu1 %v9149_v0  ;;  %788 = vmatprep.subr.bf16.mxu0 %v7795_v7  ;;  %v7810_v18 = vld [vmem:[#allocation2 + $0x180] ss:$12 sps:$4 sm:$0xff]   ;;  %v7811_v19 = vld [vmem:[#allocation2 + $0x19c] ss:$12 sps:$4 sm:$0xff]   ;;  %s9484_s19 = scalar_lea.vmem %s10543_s0, %s7446_s15  ;;  %v7814_v21 = vld [vmem:[#allocation2 + $0x198] ss:$12 sps:$4 sm:$0xff]  }
 0x11b   : > { %v7813_v20 = vld [vmem:[#allocation2 + $0x1a0] ss:$12 sps:$4 sm:$0xff]   ;;  %v7817_v25 = vld [vmem:[#allocation2 + $0x1b8] ss:$12 sps:$4 sm:$0xff]   ;;  %v7818_v26 = vld [vmem:[#allocation2 + $0x1b0] ss:$12 sps:$4 sm:$0xff]  }
 0x11c   : > { %v7815_v22 = vld [vmem:[#allocation2 + $0x1b4] ss:$12 sps:$4 sm:$0xff]   ;;  %v6727_v23 = vld [vmem:[%s9484_s19 + $0x8] sm:$0x77]  ;;  %v7821_v28 = vld [vmem:[#allocation2 + $0x1d0] ss:$12 sps:$4 sm:$0xff]  }
 0x11d   : > { %830 = vmatpush1.bf16.msra.mxu1 %v7797_v8  ;;  %789 = vmatpush1.bf16.msra.mxu0 %v7798_v9  ;;  %v9488_v24 = vcombine.high %v6727_v23, %v6727_v23  ;;  %v7819_v27 = vld [vmem:[#allocation2 + $0x1cc] ss:$12 sps:$4 sm:$0xff]   ;;  %v7822_v29 = vld [vmem:[#allocation2 + $0x1c8] ss:$12 sps:$4 sm:$0xff]   ;;  %v7823_v30 = vld [vmem:[#allocation2 + $0x1e4] ss:$12 sps:$4 sm:$0xff]   ;;  %v9498_v37 = vcombine.low %v6727_v23, %v6727_v23 }
 0x11e   : > { %831 = vmatprep.subr.bf16.mxu1 %v9149_v0  ;;  %790 = vmatprep.subr.bf16.mxu0 %v7799_v10  ;;  %v7825_v31 = vld [vmem:[#allocation2 + $0x1e8] ss:$12 sps:$4 sm:$0xff]   ;;  %v7826_v32 = vld [vmem:[#allocation2 + $0x1e0] ss:$12 sps:$4 sm:$0xff]   ;;  %v7830_v35 = vld [vmem:[#allocation2 + $0x1f8] ss:$12 sps:$4 sm:$0xff]  }
 0x11f   : > { %6764 = vmatprep.mubr.msk.bf16.mxu1 %vm780_vm0, %v9488_v24  ;;  %6763 = vmatprep.mubr.msk.bf16.mxu0 %vm780_vm0, %v9488_v24  ;;  %v7827_v33 = vld [vmem:[#allocation2 + $0x1fc] ss:$12 sps:$4 sm:$0xff]   ;;  %v7829_v34 = vld [vmem:[#allocation2 + $0x200] ss:$12 sps:$4 sm:$0xff]   ;;  %v7835_v36 = vld [vmem:[#allocation2 + $0x4] ss:$12 sps:$4 sm:$0xff]  }
 0x120   : > { %v7836_v38 = vld [vmem:[#allocation2 + $0x8] ss:$12 sps:$4 sm:$0xff]   ;;  %v7833_v39 = vld [vmem:[#allocation2] ss:$12 sps:$4 sm:$0xff]   ;;  %v7837_v42 = vld [vmem:[#allocation2 + $0x18] ss:$12 sps:$4 sm:$0xff]  }
 0x121   : > { %832 = vmatpush1.bf16.msra.mxu1 %v7801_v11  ;;  %791 = vmatpush1.bf16.msra.mxu0 %v7802_v12  ;;  %v7839_v40 = vld [vmem:[#allocation2 + $0x1c] ss:$12 sps:$4 sm:$0xff]   ;;  %v7840_v41 = vld [vmem:[#allocation2 + $0x20] ss:$12 sps:$4 sm:$0xff]   ;;  %v7844_v44 = vld [vmem:[#allocation2 + $0x38] ss:$12 sps:$4 sm:$0xff]  }
 0x122   : > { %833 = vmatprep.subr.bf16.mxu1 %v9149_v0  ;;  %792 = vmatprep.subr.bf16.mxu0 %v7803_v13  ;;  %v7843_v43 = vld [vmem:[#allocation2 + $0x34] ss:$12 sps:$4 sm:$0xff]   ;;  %v7841_v46 = vld [vmem:[#allocation2 + $0x30] ss:$12 sps:$4 sm:$0xff]   ;;  %v7847_v48 = vld [vmem:[#allocation2 + $0x4c] ss:$12 sps:$4 sm:$0xff]  }
 0x123   : > { %v9505_v45 = vld [vmem:[%s9484_s19] sm:$0x77]  ;;  %v7848_v49 = vld [vmem:[#allocation2 + $0x50] ss:$12 sps:$4 sm:$0xff]   ;;  %v7845_v50 = vld [vmem:[#allocation2 + $0x48] ss:$12 sps:$4 sm:$0xff]  }
 0x124   : > { %v9510_v47 = vcombine.high %v9505_v45, %v9505_v45  ;;  %v7851_v51 = vld [vmem:[#allocation2 + $0x64] ss:$12 sps:$4 sm:$0xff]   ;;  %v7852_v52 = vld [vmem:[#allocation2 + $0x68] ss:$12 sps:$4 sm:$0xff]   ;;  %v7849_v53 = vld [vmem:[#allocation2 + $0x60] ss:$12 sps:$4 sm:$0xff]   ;;  %v9526_v10 = vcombine.low %v9505_v45, %v9505_v45 }
 0x125   : > { %834 = vmatpush1.bf16.msra.mxu1 %v7805_v14  ;;  %793 = vmatpush1.bf16.msra.mxu0 %v7806_v15  ;;  %v7855_v54 = vld [vmem:[#allocation2 + $0x7c] ss:$12 sps:$4 sm:$0xff]   ;;  %v7856_v55 = vld [vmem:[#allocation2 + $0x80] ss:$12 sps:$4 sm:$0xff]   ;;  %v7853_v56 = vld [vmem:[#allocation2 + $0x78] ss:$12 sps:$4 sm:$0xff]  }
 0x126   : > { %835 = vmatprep.subr.bf16.mxu1 %v9149_v0  ;;  %794 = vmatprep.subr.bf16.mxu0 %v7807_v16  ;;  %v7859_v57 = vld [vmem:[#allocation2 + $0x94] ss:$12 sps:$4 sm:$0xff]   ;;  %v7860_v58 = vld [vmem:[#allocation2 + $0x98] ss:$12 sps:$4 sm:$0xff]   ;;  %v7857_v59 = vld [vmem:[#allocation2 + $0x90] ss:$12 sps:$4 sm:$0xff]  }
 0x127   : > { %v7863_v60 = vld [vmem:[#allocation2 + $0xac] ss:$12 sps:$4 sm:$0xff]   ;;  %v7864_v61 = vld [vmem:[#allocation2 + $0xb0] ss:$12 sps:$4 sm:$0xff]   ;;  %v7861_v62 = vld [vmem:[#allocation2 + $0xa8] ss:$12 sps:$4 sm:$0xff]  }
 0x128   : > { %v7867_v63 = vld [vmem:[#allocation2 + $0xc4] ss:$12 sps:$4 sm:$0xff]   ;;  %v7868_v1 = vld [vmem:[#allocation2 + $0xc8] ss:$12 sps:$4 sm:$0xff]   ;;  %v7865_v2 = vld [vmem:[#allocation2 + $0xc0] ss:$12 sps:$4 sm:$0xff]  }
 0x129   : > { %836 = vmatpush1.bf16.msra.mxu1 %v7809_v17  ;;  %795 = vmatpush1.bf16.msra.mxu0 %v7810_v18  ;;  %v7871_v3 = vld [vmem:[#allocation2 + $0xdc] ss:$12 sps:$4 sm:$0xff]   ;;  %v7872_v4 = vld [vmem:[#allocation2 + $0xe0] ss:$12 sps:$4 sm:$0xff]   ;;  %v7869_v5 = vld [vmem:[#allocation2 + $0xd8] ss:$12 sps:$4 sm:$0xff]  }
 0x12a   : > { %837 = vmatprep.subr.bf16.mxu1 %v9149_v0  ;;  %796 = vmatprep.subr.bf16.mxu0 %v7811_v19  ;;  %v7875_v6 = vld [vmem:[#allocation2 + $0xf4] ss:$12 sps:$4 sm:$0xff]   ;;  %v7876_v7 = vld [vmem:[#allocation2 + $0xf8] ss:$12 sps:$4 sm:$0xff]   ;;  %v7873_v8 = vld [vmem:[#allocation2 + $0xf0] ss:$12 sps:$4 sm:$0xff]  }
 0x12b   : > { %v7881_v9 = vld [vmem:[#allocation2 + $0x214] ss:$12 sps:$4 sm:$0xff]   ;;  %v7882_v12 = vld [vmem:[#allocation2 + $0x218] ss:$12 sps:$4 sm:$0xff]   ;;  %v7879_v13 = vld [vmem:[#allocation2 + $0x210] ss:$12 sps:$4 sm:$0xff]  }
 0x12c   : > { %v9529_v11 = vld [vmem:[%s9484_s19 + $0x10] sm:$0x77]  ;;  %v7885_v14 = vld [vmem:[#allocation2 + $0x22c] ss:$12 sps:$4 sm:$0xff]   ;;  %s498_s13 = sand.u32 1, %s9122_s18   ;;  %s7443_s17 = sshll.u32 %s9233_s21, 4 }
 0x12d   : > { %838 = vmatpush1.bf16.msra.mxu1 %v7813_v20  ;;  %797 = vmatpush1.bf16.msra.mxu0 %v7814_v21  ;;  %v9534_v15 = vcombine.high %v9529_v11, %v9529_v11  ;;  %v7886_v16 = vld [vmem:[#allocation2 + $0x230] ss:$12 sps:$4 sm:$0xff]   ;;  %v7883_v17 = vld [vmem:[#allocation2 + $0x228] ss:$12 sps:$4 sm:$0xff]   ;;  %v7887_v20 = vld [vmem:[#allocation2 + $0x240] ss:$12 sps:$4 sm:$0xff]   ;;  %s10501_s26 = scalar_lea.hbm %s10554_s11, %s7443_s17 }
 0x12e   : > { %839 = vmatprep.subr.bf16.mxu1 %v9149_v0  ;;  %798 = vmatprep.subr.bf16.mxu0 %v7815_v22  ;;  %v7889_v18 = vld [vmem:[#allocation2 + $0x244] ss:$12 sps:$4 sm:$0xff]   ;;  %v7890_v19 = vld [vmem:[#allocation2 + $0x248] ss:$12 sps:$4 sm:$0xff]   ;;  %v7894_v22 = vld [vmem:[#allocation2 + $0x260] ss:$12 sps:$4 sm:$0xff]  }
 0x12f   : > { %v7893_v21 = vld [vmem:[#allocation2 + $0x25c] ss:$12 sps:$4 sm:$0xff]   ;;  %v7891_v23 = vld [vmem:[#allocation2 + $0x258] ss:$12 sps:$4 sm:$0xff]   ;;  %s6548_s22 = scalar_lea.sflag [#allocation4], %s498_s13  ;;  %p10592_p11 = scmp.ne.s32.totalorder %s10571_s27, 0 }
 0x130   : > { %v7922_v45 = vld [vmem:[#allocation2 + $0x308] ss:$12 sps:$4 sm:$0xff]   ;;  %s9151_s21 = smov [#allocation17]  }
 0x131   : > { %840 = vmatpush1.bf16.msra.mxu1 %v7817_v25  ;;  %799 = vmatpush1.bf16.msra.mxu0 %v7818_v26  ;;  %v7897_v25 = vld [vmem:[#allocation2 + $0x274] ss:$12 sps:$4 sm:$0xff]   ;;  %v7898_v26 = vld [vmem:[#allocation2 + $0x278] ss:$12 sps:$4 sm:$0xff]   ;;  %s9052_s14 = sshll.u32 %s9151_s21, 4  ;;  %s9053_s14 = int_to_ptr.vmem [resolvable:$false] %s9052_s14 }
 0x132   : > { %841 = vmatprep.subr.bf16.mxu1 %v9149_v0  ;;  %800 = vmatprep.subr.bf16.mxu0 %v7819_v27  ;;  %v7895_v27 = vld [vmem:[#allocation2 + $0x270] ss:$12 sps:$4 sm:$0xff]   ;;  %s9054_s7 = scalar_lea.vmem %s9053_s14, 32 }
 0x135   : > { %842 = vmatpush1.bf16.msra.mxu1 %v7821_v28  ;;  %801 = vmatpush1.bf16.msra.mxu0 %v7822_v29  ;;  %v7901_v28 = vld [vmem:[#allocation2 + $0x28c] ss:$12 sps:$4 sm:$0xff]   ;;  %v7902_v29 = vld [vmem:[#allocation2 + $0x290] ss:$12 sps:$4 sm:$0xff]  }
 0x136   : > { %843 = vmatprep.subr.bf16.mxu1 %v9149_v0  ;;  %802 = vmatprep.subr.bf16.mxu0 %v7823_v30  ;;  %v7899_v30 = vld [vmem:[#allocation2 + $0x288] ss:$12 sps:$4 sm:$0xff]  }
 0x139   : > { %844 = vmatpush1.bf16.msra.mxu1 %v7825_v31  ;;  %803 = vmatpush1.bf16.msra.mxu0 %v7826_v32  ;;  %v7905_v31 = vld [vmem:[#allocation2 + $0x2a4] ss:$12 sps:$4 sm:$0xff]   ;;  %v7906_v32 = vld [vmem:[#allocation2 + $0x2a8] ss:$12 sps:$4 sm:$0xff]  }
 0x13a   : > { %845 = vmatprep.subr.bf16.mxu1 %v9149_v0  ;;  %804 = vmatprep.subr.bf16.mxu0 %v7827_v33  ;;  %v7903_v33 = vld [vmem:[#allocation2 + $0x2a0] ss:$12 sps:$4 sm:$0xff]  }
 0x13d   : > { %846 = vmatpush1.bf16.msra.mxu1 %v7829_v34  ;;  %805 = vmatpush1.bf16.msra.mxu0 %v7830_v35  ;;  %v7909_v34 = vld [vmem:[#allocation2 + $0x2bc] ss:$12 sps:$4 sm:$0xff]   ;;  %v7910_v35 = vld [vmem:[#allocation2 + $0x2c0] ss:$12 sps:$4 sm:$0xff]  }
 0x13e   : > { %1091 = vmatprep.subr.bf16.mxu1 %v9149_v0  ;;  %1050 = vmatprep.subr.bf16.mxu0 %v7835_v36  ;;  %v7907_v36 = vld [vmem:[#allocation2 + $0x2b8] ss:$12 sps:$4 sm:$0xff]  }
 0x140   : > { %858 = vmatmul.mubr.bf16.vlgmr.msra.gmra.mrb[0].mxu1 %v9498_v37  ;;  %817 = vmatmul.mubr.bf16.vlgmr.msra.gmra.mrb[0].mxu0 %v9498_v37 }
 0x141   : > { %1092 = vmatpush1.bf16.msra.mxu1 %v7836_v38  ;;  %1051 = vmatpush1.bf16.msra.mxu0 %v7833_v39  ;;  %v7913_v38 = vld [vmem:[#allocation2 + $0x2d4] ss:$12 sps:$4 sm:$0xff]   ;;  %v7914_v39 = vld [vmem:[#allocation2 + $0x2d8] ss:$12 sps:$4 sm:$0xff]  }
 0x142   : > { %1093 = vmatprep.subr.bf16.mxu1 %v9149_v0  ;;  %1052 = vmatprep.subr.bf16.mxu0 %v7839_v40  ;;  %v7911_v40 = vld [vmem:[#allocation2 + $0x2d0] ss:$12 sps:$4 sm:$0xff]  }
 0x143   : > { %6801 = vmatprep.mubr.msk.bf16.mxu1 %vm780_vm0, %v9510_v47  ;;  %6800 = vmatprep.mubr.msk.bf16.mxu0 %vm780_vm0, %v9510_v47 }
 0x145   : > { %1094 = vmatpush1.bf16.msra.mxu1 %v7840_v41  ;;  %1053 = vmatpush1.bf16.msra.mxu0 %v7837_v42  ;;  %v7917_v41 = vld [vmem:[#allocation2 + $0x2ec] ss:$12 sps:$4 sm:$0xff]   ;;  %v7918_v42 = vld [vmem:[#allocation2 + $0x2f0] ss:$12 sps:$4 sm:$0xff]  }
 0x146   : > { %1095 = vmatprep.subr.bf16.mxu1 %v9149_v0  ;;  %1054 = vmatprep.subr.bf16.mxu0 %v7843_v43  ;;  %v7915_v43 = vld [vmem:[#allocation2 + $0x2e8] ss:$12 sps:$4 sm:$0xff]  }
 0x149   : > { %1096 = vmatpush1.bf16.msra.mxu1 %v7844_v44  ;;  %1055 = vmatpush1.bf16.msra.mxu0 %v7841_v46  ;;  %v7921_v44 = vld [vmem:[#allocation2 + $0x304] ss:$12 sps:$4 sm:$0xff]   ;;  %v7919_v46 = vld [vmem:[#allocation2 + $0x300] ss:$12 sps:$4 sm:$0xff]  }
 0x14a   : > { %1097 = vmatprep.subr.bf16.mxu1 %v9149_v0  ;;  %1056 = vmatprep.subr.bf16.mxu0 %v7847_v48  ;;  %v7927_v48 = vld [vmem:[#allocation2 + $0x31c] ss:$12 sps:$4 sm:$0xff]  }
 0x14d   : > { %1098 = vmatpush1.bf16.msra.mxu1 %v7848_v49  ;;  %1057 = vmatpush1.bf16.msra.mxu0 %v7845_v50  ;;  %v9554_v49 = vcombine.low %v9529_v11, %v9529_v11  ;;  %v9557_v50 = vld [vmem:[%s9484_s19 + $0x18] sm:$0x77]  ;;  %v7956_v11 = vld [vmem:[#allocation2 + $0x3c8] ss:$12 sps:$4 sm:$0xff]  }
 0x14e   : > { %1099 = vmatprep.subr.bf16.mxu1 %v9149_v0  ;;  %1058 = vmatprep.subr.bf16.mxu0 %v7851_v51  ;;  %v7928_v51 = vld [vmem:[#allocation2 + $0x320] ss:$12 sps:$4 sm:$0xff]  }
 0x151   : > { %1100 = vmatpush1.bf16.msra.mxu1 %v7852_v52  ;;  %1059 = vmatpush1.bf16.msra.mxu0 %v7849_v53  ;;  %v7925_v52 = vld [vmem:[#allocation2 + $0x318] ss:$12 sps:$4 sm:$0xff]   ;;  %v7931_v53 = vld [vmem:[#allocation2 + $0x334] ss:$12 sps:$4 sm:$0xff]  }
 0x152   : > { %1101 = vmatprep.subr.bf16.mxu1 %v9149_v0  ;;  %1060 = vmatprep.subr.bf16.mxu0 %v7855_v54  ;;  %v9562_v54 = vcombine.high %v9557_v50, %v9557_v50 }
 0x155   : > { %1102 = vmatpush1.bf16.msra.mxu1 %v7856_v55  ;;  %1061 = vmatpush1.bf16.msra.mxu0 %v7853_v56  ;;  %v7932_v55 = vld [vmem:[#allocation2 + $0x338] ss:$12 sps:$4 sm:$0xff]   ;;  %v7929_v56 = vld [vmem:[#allocation2 + $0x330] ss:$12 sps:$4 sm:$0xff]  }
 0x156   : > { %1103 = vmatprep.subr.bf16.mxu1 %v9149_v0  ;;  %1062 = vmatprep.subr.bf16.mxu0 %v7859_v57  ;;  %v7935_v57 = vld [vmem:[#allocation2 + $0x34c] ss:$12 sps:$4 sm:$0xff]  }
 0x159   : > { %1104 = vmatpush1.bf16.msra.mxu1 %v7860_v58  ;;  %1063 = vmatpush1.bf16.msra.mxu0 %v7857_v59  ;;  %v7936_v58 = vld [vmem:[#allocation2 + $0x350] ss:$12 sps:$4 sm:$0xff]   ;;  %v7933_v59 = vld [vmem:[#allocation2 + $0x348] ss:$12 sps:$4 sm:$0xff]  }
 0x15a   : > { %1105 = vmatprep.subr.bf16.mxu1 %v9149_v0  ;;  %1064 = vmatprep.subr.bf16.mxu0 %v7863_v60  ;;  %v7939_v60 = vld [vmem:[#allocation2 + $0x364] ss:$12 sps:$4 sm:$0xff]  }
 0x15d   : > { %1106 = vmatpush1.bf16.msra.mxu1 %v7864_v61  ;;  %1065 = vmatpush1.bf16.msra.mxu0 %v7861_v62  ;;  %v7940_v61 = vld [vmem:[#allocation2 + $0x368] ss:$12 sps:$4 sm:$0xff]   ;;  %v7937_v62 = vld [vmem:[#allocation2 + $0x360] ss:$12 sps:$4 sm:$0xff]  }
 0x15e   : > { %1107 = vmatprep.subr.bf16.mxu1 %v9149_v0  ;;  %1066 = vmatprep.subr.bf16.mxu0 %v7867_v63  ;;  %v7943_v63 = vld [vmem:[#allocation2 + $0x37c] ss:$12 sps:$4 sm:$0xff]  }
 0x161   : > { %1108 = vmatpush1.bf16.msra.mxu1 %v7868_v1  ;;  %1067 = vmatpush1.bf16.msra.mxu0 %v7865_v2  ;;  %v7944_v1 = vld [vmem:[#allocation2 + $0x380] ss:$12 sps:$4 sm:$0xff]   ;;  %v7941_v2 = vld [vmem:[#allocation2 + $0x378] ss:$12 sps:$4 sm:$0xff]  }
 0x162   : > { %1109 = vmatprep.subr.bf16.mxu1 %v9149_v0  ;;  %1068 = vmatprep.subr.bf16.mxu0 %v7871_v3  ;;  %v7947_v3 = vld [vmem:[#allocation2 + $0x394] ss:$12 sps:$4 sm:$0xff]  }
 0x165   : > { %1110 = vmatpush1.bf16.msra.mxu1 %v7872_v4  ;;  %1069 = vmatpush1.bf16.msra.mxu0 %v7869_v5  ;;  %v7948_v4 = vld [vmem:[#allocation2 + $0x398] ss:$12 sps:$4 sm:$0xff]   ;;  %v7945_v5 = vld [vmem:[#allocation2 + $0x390] ss:$12 sps:$4 sm:$0xff]  }
 0x166   : > { %1111 = vmatprep.subr.bf16.mxu1 %v9149_v0  ;;  %1070 = vmatprep.subr.bf16.mxu0 %v7875_v6  ;;  %v7951_v6 = vld [vmem:[#allocation2 + $0x3ac] ss:$12 sps:$4 sm:$0xff]  }
 0x169   : > { %1112 = vmatpush1.bf16.msra.mxu1 %v7876_v7  ;;  %1071 = vmatpush1.bf16.msra.mxu0 %v7873_v8  ;;  %v7952_v7 = vld [vmem:[#allocation2 + $0x3b0] ss:$12 sps:$4 sm:$0xff]   ;;  %v7949_v8 = vld [vmem:[#allocation2 + $0x3a8] ss:$12 sps:$4 sm:$0xff]  }
 0x16a   : > { %1404 = vmatprep.subr.bf16.mxu1 %v9149_v0  ;;  %1363 = vmatprep.subr.bf16.mxu0 %v7881_v9  ;;  %v7955_v9 = vld [vmem:[#allocation2 + $0x3c4] ss:$12 sps:$4 sm:$0xff]  }
 0x16c   : > { %1124 = vmatmul.mubr.bf16.vlgmr.msra.gmra.mrb[4].mxu1 %v9526_v10  ;;  %1083 = vmatmul.mubr.bf16.vlgmr.msra.gmra.mrb[4].mxu0 %v9526_v10 }
 0x16d   : > { %1405 = vmatpush1.bf16.msra.mxu1 %v7882_v12  ;;  %1364 = vmatpush1.bf16.msra.mxu0 %v7879_v13  ;;  %v7953_v12 = vld [vmem:[#allocation2 + $0x3c0] ss:$12 sps:$4 sm:$0xff]   ;;  %v7959_v13 = vld [vmem:[#allocation2 + $0x3dc] ss:$12 sps:$4 sm:$0xff]  }
 0x16e   : > { %1406 = vmatprep.subr.bf16.mxu1 %v9149_v0  ;;  %1365 = vmatprep.subr.bf16.mxu0 %v7885_v14  ;;  %v7960_v14 = vld [vmem:[#allocation2 + $0x3e0] ss:$12 sps:$4 sm:$0xff]  }
 0x16f   : > { %6839 = vmatprep.mubr.msk.bf16.mxu1 %vm780_vm0, %v9534_v15  ;;  %6838 = vmatprep.mubr.msk.bf16.mxu0 %vm780_vm0, %v9534_v15 }
 0x171   : > { %1407 = vmatpush1.bf16.msra.mxu1 %v7886_v16  ;;  %1366 = vmatpush1.bf16.msra.mxu0 %v7883_v17  ;;  %v7957_v16 = vld [vmem:[#allocation2 + $0x3d8] ss:$12 sps:$4 sm:$0xff]   ;;  %v7963_v17 = vld [vmem:[#allocation2 + $0x3f4] ss:$12 sps:$4 sm:$0xff]  }
 0x172   : > { %1408 = vmatprep.subr.bf16.mxu1 %v9149_v0  ;;  %1367 = vmatprep.subr.bf16.mxu0 %v7889_v18  ;;  %v7964_v18 = vld [vmem:[#allocation2 + $0x3f8] ss:$12 sps:$4 sm:$0xff]  }
 0x175   : > { %1409 = vmatpush1.bf16.msra.mxu1 %v7890_v19  ;;  %1368 = vmatpush1.bf16.msra.mxu0 %v7887_v20  ;;  %v7961_v19 = vld [vmem:[#allocation2 + $0x3f0] ss:$12 sps:$4 sm:$0xff]   ;;  %v7967_v20 = vld [vmem:[#allocation2 + $0x40c] ss:$12 sps:$4 sm:$0xff]  }
 0x176   : > { %1410 = vmatprep.subr.bf16.mxu1 %v9149_v0  ;;  %1369 = vmatprep.subr.bf16.mxu0 %v7893_v21  ;;  %v7968_v21 = vld [vmem:[#allocation2 + $0x410] ss:$12 sps:$4 sm:$0xff]  }
 0x179   : > { %1411 = vmatpush1.bf16.msra.mxu1 %v7894_v22  ;;  %1370 = vmatpush1.bf16.msra.mxu0 %v7891_v23  ;;  %v7965_v22 = vld [vmem:[#allocation2 + $0x408] ss:$12 sps:$4 sm:$0xff]   ;;  %v7973_v23 = vld [vmem:[#allocation2 + $0x424] ss:$12 sps:$4 sm:$0xff]  }
 0x17a   : > { %1412 = vmatprep.subr.bf16.mxu1 %v9149_v0  ;;  %1371 = vmatprep.subr.bf16.mxu0 %v7897_v25  ;;  %v9582_v25 = vcombine.low %v9557_v50, %v9557_v50  ;;  %v7995_v50 = vld [vmem:[#allocation2 + $0x4b0] ss:$12 sps:$4 sm:$0xff]  }
 0x17d   : > { %1413 = vmatpush1.bf16.msra.mxu1 %v7898_v26  ;;  %1372 = vmatpush1.bf16.msra.mxu0 %v7895_v27  ;;  %v9585_v26 = vld [vmem:[%s9484_s19 + $0x20] sm:$0x77]  ;;  %v7974_v27 = vld [vmem:[#allocation2 + $0x428] ss:$12 sps:$4 sm:$0xff]  }
 0x17e   : > { %1414 = vmatprep.subr.bf16.mxu1 %v9149_v0  ;;  %1373 = vmatprep.subr.bf16.mxu0 %v7901_v28  ;;  %v7971_v28 = vld [vmem:[#allocation2 + $0x420] ss:$12 sps:$4 sm:$0xff]  }
 0x181   : > { %1415 = vmatpush1.bf16.msra.mxu1 %v7902_v29  ;;  %1374 = vmatpush1.bf16.msra.mxu0 %v7899_v30  ;;  %v7977_v29 = vld [vmem:[#allocation2 + $0x43c] ss:$12 sps:$4 sm:$0xff]   ;;  %v9590_v30 = vcombine.high %v9585_v26, %v9585_v26 }
 0x182   : > { %1416 = vmatprep.subr.bf16.mxu1 %v9149_v0  ;;  %1375 = vmatprep.subr.bf16.mxu0 %v7905_v31  ;;  %v7978_v31 = vld [vmem:[#allocation2 + $0x440] ss:$12 sps:$4 sm:$0xff]  }
 0x185   : > { %1417 = vmatpush1.bf16.msra.mxu1 %v7906_v32  ;;  %1376 = vmatpush1.bf16.msra.mxu0 %v7903_v33  ;;  %v7975_v32 = vld [vmem:[#allocation2 + $0x438] ss:$12 sps:$4 sm:$0xff]   ;;  %v7981_v33 = vld [vmem:[#allocation2 + $0x454] ss:$12 sps:$4 sm:$0xff]  }
 0x186   : > { %1418 = vmatprep.subr.bf16.mxu1 %v9149_v0  ;;  %1377 = vmatprep.subr.bf16.mxu0 %v7909_v34  ;;  %v7982_v34 = vld [vmem:[#allocation2 + $0x458] ss:$12 sps:$4 sm:$0xff]  }
 0x189   : > { %1419 = vmatpush1.bf16.msra.mxu1 %v7910_v35  ;;  %1378 = vmatpush1.bf16.msra.mxu0 %v7907_v36  ;;  %v7979_v35 = vld [vmem:[#allocation2 + $0x450] ss:$12 sps:$4 sm:$0xff]   ;;  %v7985_v36 = vld [vmem:[#allocation2 + $0x46c] ss:$12 sps:$4 sm:$0xff]  }
 0x18a   : > { %1420 = vmatprep.subr.bf16.mxu1 %v9149_v0  ;;  %1379 = vmatprep.subr.bf16.mxu0 %v7913_v38  ;;  %v7986_v38 = vld [vmem:[#allocation2 + $0x470] ss:$12 sps:$4 sm:$0xff]  }
 0x18d   : > { %1421 = vmatpush1.bf16.msra.mxu1 %v7914_v39  ;;  %1380 = vmatpush1.bf16.msra.mxu0 %v7911_v40  ;;  %v7983_v39 = vld [vmem:[#allocation2 + $0x468] ss:$12 sps:$4 sm:$0xff]   ;;  %v7989_v40 = vld [vmem:[#allocation2 + $0x484] ss:$12 sps:$4 sm:$0xff]  }
 0x18e   : > { %1422 = vmatprep.subr.bf16.mxu1 %v9149_v0  ;;  %1381 = vmatprep.subr.bf16.mxu0 %v7917_v41  ;;  %v7990_v41 = vld [vmem:[#allocation2 + $0x488] ss:$12 sps:$4 sm:$0xff]  }
 0x191   : > { %1423 = vmatpush1.bf16.msra.mxu1 %v7918_v42  ;;  %1382 = vmatpush1.bf16.msra.mxu0 %v7915_v43  ;;  %v7987_v42 = vld [vmem:[#allocation2 + $0x480] ss:$12 sps:$4 sm:$0xff]   ;;  %v7993_v43 = vld [vmem:[#allocation2 + $0x49c] ss:$12 sps:$4 sm:$0xff]  }
 0x192   : > { %1424 = vmatprep.subr.bf16.mxu1 %v9149_v0  ;;  %1383 = vmatprep.subr.bf16.mxu0 %v7921_v44  ;;  %v7994_v44 = vld [vmem:[#allocation2 + $0x4a0] ss:$12 sps:$4 sm:$0xff]  }
 0x195   : > { %1425 = vmatpush1.bf16.msra.mxu1 %v7922_v45  ;;  %1384 = vmatpush1.bf16.msra.mxu0 %v7919_v46  ;;  %v7991_v45 = vld [vmem:[#allocation2 + $0x498] ss:$12 sps:$4 sm:$0xff]   ;;  %v7997_v46 = vld [vmem:[#allocation2 + $0x4b4] ss:$12 sps:$4 sm:$0xff]  }
 0x196   : > { %1720 = vmatprep.subr.bf16.mxu1 %v9149_v0  ;;  %1679 = vmatprep.subr.bf16.mxu0 %v7927_v48  ;;  %v7998_v48 = vld [vmem:[#allocation2 + $0x4b8] ss:$12 sps:$4 sm:$0xff]  }
 0x198   : > { %1437 = vmatmul.mubr.bf16.vlgmr.msra.gmra.mrb[8].mxu1 %v9554_v49  ;;  %1396 = vmatmul.mubr.bf16.vlgmr.msra.gmra.mrb[8].mxu0 %v9554_v49 }
 0x199   : > { %1721 = vmatpush1.bf16.msra.mxu1 %v7928_v51  ;;  %1680 = vmatpush1.bf16.msra.mxu0 %v7925_v52  ;;  %v8001_v51 = vld [vmem:[#allocation2 + $0x4cc] ss:$12 sps:$4 sm:$0xff]   ;;  %v8002_v52 = vld [vmem:[#allocation2 + $0x4d0] ss:$12 sps:$4 sm:$0xff]  }
 0x19a   : > { %1722 = vmatprep.subr.bf16.mxu1 %v9149_v0  ;;  %1681 = vmatprep.subr.bf16.mxu0 %v7931_v53  ;;  %v7999_v53 = vld [vmem:[#allocation2 + $0x4c8] ss:$12 sps:$4 sm:$0xff]  }
 0x19b   : > { %6877 = vmatprep.mubr.msk.bf16.mxu1 %vm780_vm0, %v9562_v54  ;;  %6876 = vmatprep.mubr.msk.bf16.mxu0 %vm780_vm0, %v9562_v54 }
 0x19d   : > { %1723 = vmatpush1.bf16.msra.mxu1 %v7932_v55  ;;  %1682 = vmatpush1.bf16.msra.mxu0 %v7929_v56  ;;  %v8005_v55 = vld [vmem:[#allocation2 + $0x4e4] ss:$12 sps:$4 sm:$0xff]   ;;  %v8006_v56 = vld [vmem:[#allocation2 + $0x4e8] ss:$12 sps:$4 sm:$0xff]  }
 0x19e   : > { %1724 = vmatprep.subr.bf16.mxu1 %v9149_v0  ;;  %1683 = vmatprep.subr.bf16.mxu0 %v7935_v57  ;;  %v8003_v57 = vld [vmem:[#allocation2 + $0x4e0] ss:$12 sps:$4 sm:$0xff]  }
 0x1a1   : > { %1725 = vmatpush1.bf16.msra.mxu1 %v7936_v58  ;;  %1684 = vmatpush1.bf16.msra.mxu0 %v7933_v59  ;;  %v8009_v58 = vld [vmem:[#allocation2 + $0x4fc] ss:$12 sps:$4 sm:$0xff]   ;;  %v8010_v59 = vld [vmem:[#allocation2 + $0x500] ss:$12 sps:$4 sm:$0xff]  }
 0x1a2   : > { %1726 = vmatprep.subr.bf16.mxu1 %v9149_v0  ;;  %1685 = vmatprep.subr.bf16.mxu0 %v7939_v60  ;;  %v8007_v60 = vld [vmem:[#allocation2 + $0x4f8] ss:$12 sps:$4 sm:$0xff]  }
 0x1a5   : > { %1727 = vmatpush1.bf16.msra.mxu1 %v7940_v61  ;;  %1686 = vmatpush1.bf16.msra.mxu0 %v7937_v62  ;;  %v8013_v61 = vld [vmem:[#allocation2 + $0x514] ss:$12 sps:$4 sm:$0xff]   ;;  %v8014_v62 = vld [vmem:[#allocation2 + $0x518] ss:$12 sps:$4 sm:$0xff]  }
 0x1a6   : > { %1728 = vmatprep.subr.bf16.mxu1 %v9149_v0  ;;  %1687 = vmatprep.subr.bf16.mxu0 %v7943_v63  ;;  %v8011_v63 = vld [vmem:[#allocation2 + $0x510] ss:$12 sps:$4 sm:$0xff]  }
 0x1a9   : > { %1729 = vmatpush1.bf16.msra.mxu1 %v7944_v1  ;;  %1688 = vmatpush1.bf16.msra.mxu0 %v7941_v2  ;;  %v8019_v1 = vld [vmem:[#allocation2 + $0x52c] ss:$12 sps:$4 sm:$0xff]   ;;  %v8020_v2 = vld [vmem:[#allocation2 + $0x530] ss:$12 sps:$4 sm:$0xff]  }
 0x1aa   : > { %1730 = vmatprep.subr.bf16.mxu1 %v9149_v0  ;;  %1689 = vmatprep.subr.bf16.mxu0 %v7947_v3  ;;  %v9610_v3 = vcombine.low %v9585_v26, %v9585_v26  ;;  %v8043_v26 = vld [vmem:[#allocation2 + $0x5bc] ss:$12 sps:$4 sm:$0xff]  }
 0x1ad   : > { %1731 = vmatpush1.bf16.msra.mxu1 %v7948_v4  ;;  %1690 = vmatpush1.bf16.msra.mxu0 %v7945_v5  ;;  %v9613_v4 = vld [vmem:[%s9484_s19 + $0x28] sm:$0x77] }
 0x1ae   : > { %1732 = vmatprep.subr.bf16.mxu1 %v9149_v0  ;;  %1691 = vmatprep.subr.bf16.mxu0 %v7951_v6  ;;  %v8017_v5 = vld [vmem:[#allocation2 + $0x528] ss:$12 sps:$4 sm:$0xff]   ;;  %v8023_v6 = vld [vmem:[#allocation2 + $0x544] ss:$12 sps:$4 sm:$0xff]  }
 0x1b1   : > { %1733 = vmatpush1.bf16.msra.mxu1 %v7952_v7  ;;  %1692 = vmatpush1.bf16.msra.mxu0 %v7949_v8  ;;  %v9618_v7 = vcombine.high %v9613_v4, %v9613_v4  ;;  %v8021_v8 = vld [vmem:[#allocation2 + $0x540] ss:$12 sps:$4 sm:$0xff]  }
 0x1b2   : > { %1734 = vmatprep.subr.bf16.mxu1 %v9149_v0  ;;  %1693 = vmatprep.subr.bf16.mxu0 %v7955_v9  ;;  %v8024_v9 = vld [vmem:[#allocation2 + $0x548] ss:$12 sps:$4 sm:$0xff]  }
 0x1b5   : > { %1735 = vmatpush1.bf16.msra.mxu1 %v7956_v11  ;;  %1694 = vmatpush1.bf16.msra.mxu0 %v7953_v12  ;;  %v8027_v11 = vld [vmem:[#allocation2 + $0x55c] ss:$12 sps:$4 sm:$0xff]   ;;  %v8028_v12 = vld [vmem:[#allocation2 + $0x560] ss:$12 sps:$4 sm:$0xff]  }
 0x1b6   : > { %1736 = vmatprep.subr.bf16.mxu1 %v9149_v0  ;;  %1695 = vmatprep.subr.bf16.mxu0 %v7959_v13  ;;  %v8025_v13 = vld [vmem:[#allocation2 + $0x558] ss:$12 sps:$4 sm:$0xff]  }
 0x1b9   : > { %1737 = vmatpush1.bf16.msra.mxu1 %v7960_v14  ;;  %1696 = vmatpush1.bf16.msra.mxu0 %v7957_v16  ;;  %v8031_v14 = vld [vmem:[#allocation2 + $0x574] ss:$12 sps:$4 sm:$0xff]   ;;  %v8032_v16 = vld [vmem:[#allocation2 + $0x578] ss:$12 sps:$4 sm:$0xff]  }
 0x1ba   : > { %1738 = vmatprep.subr.bf16.mxu1 %v9149_v0  ;;  %1697 = vmatprep.subr.bf16.mxu0 %v7963_v17  ;;  %v8029_v17 = vld [vmem:[#allocation2 + $0x570] ss:$12 sps:$4 sm:$0xff]  }
 0x1bd   : > { %1739 = vmatpush1.bf16.msra.mxu1 %v7964_v18  ;;  %1698 = vmatpush1.bf16.msra.mxu0 %v7961_v19  ;;  %v8035_v18 = vld [vmem:[#allocation2 + $0x58c] ss:$12 sps:$4 sm:$0xff]   ;;  %v8036_v19 = vld [vmem:[#allocation2 + $0x590] ss:$12 sps:$4 sm:$0xff]  }
 0x1be   : > { %1740 = vmatprep.subr.bf16.mxu1 %v9149_v0  ;;  %1699 = vmatprep.subr.bf16.mxu0 %v7967_v20  ;;  %v8033_v20 = vld [vmem:[#allocation2 + $0x588] ss:$12 sps:$4 sm:$0xff]  }
 0x1c1   : > { %1741 = vmatpush1.bf16.msra.mxu1 %v7968_v21  ;;  %1700 = vmatpush1.bf16.msra.mxu0 %v7965_v22  ;;  %v8039_v21 = vld [vmem:[#allocation2 + $0x5a4] ss:$12 sps:$4 sm:$0xff]   ;;  %v8040_v22 = vld [vmem:[#allocation2 + $0x5a8] ss:$12 sps:$4 sm:$0xff]  }
 0x1c2   : > { %2036 = vmatprep.subr.bf16.mxu1 %v9149_v0  ;;  %1995 = vmatprep.subr.bf16.mxu0 %v7973_v23  ;;  %v8037_v23 = vld [vmem:[#allocation2 + $0x5a0] ss:$12 sps:$4 sm:$0xff]  }
 0x1c4   : > { %1753 = vmatmul.mubr.bf16.vlgmr.msra.gmra.mrb[12].mxu1 %v9582_v25  ;;  %1712 = vmatmul.mubr.bf16.vlgmr.msra.gmra.mrb[12].mxu0 %v9582_v25 }
 0x1c5   : > { %2037 = vmatpush1.bf16.msra.mxu1 %v7974_v27  ;;  %1996 = vmatpush1.bf16.msra.mxu0 %v7971_v28  ;;  %v8044_v27 = vld [vmem:[#allocation2 + $0x5c0] ss:$12 sps:$4 sm:$0xff]   ;;  %v8041_v28 = vld [vmem:[#allocation2 + $0x5b8] ss:$12 sps:$4 sm:$0xff]  }
 0x1c6   : > { %2038 = vmatprep.subr.bf16.mxu1 %v9149_v0  ;;  %1997 = vmatprep.subr.bf16.mxu0 %v7977_v29  ;;  %v8047_v29 = vld [vmem:[#allocation2 + $0x5d4] ss:$12 sps:$4 sm:$0xff]  }
 0x1c7   : > { %6915 = vmatprep.mubr.msk.bf16.mxu1 %vm780_vm0, %v9590_v30  ;;  %6914 = vmatprep.mubr.msk.bf16.mxu0 %vm780_vm0, %v9590_v30 }
 0x1c9   : > { %2039 = vmatpush1.bf16.msra.mxu1 %v7978_v31  ;;  %1998 = vmatpush1.bf16.msra.mxu0 %v7975_v32  ;;  %v8048_v31 = vld [vmem:[#allocation2 + $0x5d8] ss:$12 sps:$4 sm:$0xff]   ;;  %v8045_v32 = vld [vmem:[#allocation2 + $0x5d0] ss:$12 sps:$4 sm:$0xff]  }
 0x1ca   : > { %2040 = vmatprep.subr.bf16.mxu1 %v9149_v0  ;;  %1999 = vmatprep.subr.bf16.mxu0 %v7981_v33  ;;  %v8051_v33 = vld [vmem:[#allocation2 + $0x5ec] ss:$12 sps:$4 sm:$0xff]  }
 0x1cd   : > { %2041 = vmatpush1.bf16.msra.mxu1 %v7982_v34  ;;  %2000 = vmatpush1.bf16.msra.mxu0 %v7979_v35  ;;  %v8052_v34 = vld [vmem:[#allocation2 + $0x5f0] ss:$12 sps:$4 sm:$0xff]   ;;  %v8049_v35 = vld [vmem:[#allocation2 + $0x5e8] ss:$12 sps:$4 sm:$0xff]  }
 0x1ce   : > { %2042 = vmatprep.subr.bf16.mxu1 %v9149_v0  ;;  %2001 = vmatprep.subr.bf16.mxu0 %v7985_v36  ;;  %v8055_v36 = vld [vmem:[#allocation2 + $0x604] ss:$12 sps:$4 sm:$0xff]  }
 0x1d1   : > { %2043 = vmatpush1.bf16.msra.mxu1 %v7986_v38  ;;  %2002 = vmatpush1.bf16.msra.mxu0 %v7983_v39  ;;  %v8056_v38 = vld [vmem:[#allocation2 + $0x608] ss:$12 sps:$4 sm:$0xff]   ;;  %v8053_v39 = vld [vmem:[#allocation2 + $0x600] ss:$12 sps:$4 sm:$0xff]  }
 0x1d2   : > { %2044 = vmatprep.subr.bf16.mxu1 %v9149_v0  ;;  %2003 = vmatprep.subr.bf16.mxu0 %v7989_v40  ;;  %v8059_v40 = vld [vmem:[#allocation2 + $0x61c] ss:$12 sps:$4 sm:$0xff]  }
 0x1d5   : > { %2045 = vmatpush1.bf16.msra.mxu1 %v7990_v41  ;;  %2004 = vmatpush1.bf16.msra.mxu0 %v7987_v42  ;;  %v8060_v42 = vld [vmem:[#allocation2 + $0x620] ss:$12 sps:$4 sm:$0xff]  }
 0x1d6   : > { %2046 = vmatprep.subr.bf16.mxu1 %v9149_v0  ;;  %2005 = vmatprep.subr.bf16.mxu0 %v7993_v43 }
 0x1d9   : > { %2047 = vmatpush1.bf16.msra.mxu1 %v7994_v44  ;;  %2006 = vmatpush1.bf16.msra.mxu0 %v7991_v45  ;;  %v8057_v44 = vld [vmem:[#allocation2 + $0x618] ss:$12 sps:$4 sm:$0xff]  }
 0x1da   : > { %2048 = vmatprep.subr.bf16.mxu1 %v9149_v0  ;;  %2007 = vmatprep.subr.bf16.mxu0 %v7997_v46 }
 0x1dd   : > { %2049 = vmatpush1.bf16.msra.mxu1 %v7998_v48  ;;  %2008 = vmatpush1.bf16.msra.mxu0 %v7995_v50  ;;  %v8065_v48 = vld [vmem:[#allocation2 + $0x634] ss:$12 sps:$4 sm:$0xff]  }
 0x1de   : > { %2050 = vmatprep.subr.bf16.mxu1 %v9149_v0  ;;  %2009 = vmatprep.subr.bf16.mxu0 %v8001_v51 }
 0x1e1   : > { %2051 = vmatpush1.bf16.msra.mxu1 %v8002_v52  ;;  %2010 = vmatpush1.bf16.msra.mxu0 %v7999_v53  ;;  %v9643_v52 = vld [vmem:[%s9484_s19 + $0x30] sm:$0x77] }
 0x1e2   : > { %2052 = vmatprep.subr.bf16.mxu1 %v9149_v0  ;;  %2011 = vmatprep.subr.bf16.mxu0 %v8005_v55  ;;  %v8066_v55 = vld [vmem:[#allocation2 + $0x638] ss:$12 sps:$4 sm:$0xff]  }
 0x1e5   : > { %2053 = vmatpush1.bf16.msra.mxu1 %v8006_v56  ;;  %2012 = vmatpush1.bf16.msra.mxu0 %v8003_v57  ;;  %v9647_v57 = vcombine.low %v9613_v4, %v9613_v4  ;;  %v8077_v4 = vld [vmem:[#allocation2 + $0x67c] ss:$12 sps:$4 sm:$0xff]  }
 0x1e6   : > { %2054 = vmatprep.subr.bf16.mxu1 %v9149_v0  ;;  %2013 = vmatprep.subr.bf16.mxu0 %v8009_v58  ;;  %v8063_v58 = vld [vmem:[#allocation2 + $0x630] ss:$12 sps:$4 sm:$0xff]  }
 0x1e9   : > { %2055 = vmatpush1.bf16.msra.mxu1 %v8010_v59  ;;  %2014 = vmatpush1.bf16.msra.mxu0 %v8007_v60  ;;  %v8069_v59 = vld [vmem:[#allocation2 + $0x64c] ss:$12 sps:$4 sm:$0xff]   ;;  %v8070_v60 = vld [vmem:[#allocation2 + $0x650] ss:$12 sps:$4 sm:$0xff]  }
 0x1ea   : > { %2056 = vmatprep.subr.bf16.mxu1 %v9149_v0  ;;  %2015 = vmatprep.subr.bf16.mxu0 %v8013_v61  ;;  %v9652_v61 = vcombine.high %v9643_v52, %v9643_v52 }
 0x1ed   : > { %2057 = vmatpush1.bf16.msra.mxu1 %v8014_v62  ;;  %2016 = vmatpush1.bf16.msra.mxu0 %v8011_v63  ;;  %v8067_v62 = vld [vmem:[#allocation2 + $0x648] ss:$12 sps:$4 sm:$0xff]   ;;  %v8073_v63 = vld [vmem:[#allocation2 + $0x664] ss:$12 sps:$4 sm:$0xff]  }
 0x1ee   : > { %2352 = vmatprep.subr.bf16.mxu1 %v9149_v0  ;;  %2311 = vmatprep.subr.bf16.mxu0 %v8019_v1  ;;  %v8074_v1 = vld [vmem:[#allocation2 + $0x668] ss:$12 sps:$4 sm:$0xff]  }
 0x1f0   : > { %2069 = vmatmul.mubr.bf16.vlgmr.msra.gmra.mrb[16].mxu1 %v9610_v3  ;;  %2028 = vmatmul.mubr.bf16.vlgmr.msra.gmra.mrb[16].mxu0 %v9610_v3 }
 0x1f1   : > { %2353 = vmatpush1.bf16.msra.mxu1 %v8020_v2  ;;  %2312 = vmatpush1.bf16.msra.mxu0 %v8017_v5  ;;  %v8071_v2 = vld [vmem:[#allocation2 + $0x660] ss:$12 sps:$4 sm:$0xff]  }
 0x1f2   : > { %2354 = vmatprep.subr.bf16.mxu1 %v9149_v0  ;;  %2313 = vmatprep.subr.bf16.mxu0 %v8023_v6  ;;  %v8078_v5 = vld [vmem:[#allocation2 + $0x680] ss:$12 sps:$4 sm:$0xff]   ;;  %v8075_v6 = vld [vmem:[#allocation2 + $0x678] ss:$12 sps:$4 sm:$0xff]  }
 0x1f3   : > { %6953 = vmatprep.mubr.msk.bf16.mxu1 %vm780_vm0, %v9618_v7  ;;  %6952 = vmatprep.mubr.msk.bf16.mxu0 %vm780_vm0, %v9618_v7 }
 0x1f5   : > { %2355 = vmatpush1.bf16.msra.mxu1 %v8024_v9  ;;  %2314 = vmatpush1.bf16.msra.mxu0 %v8021_v8  ;;  %v8081_v8 = vld [vmem:[#allocation2 + $0x694] ss:$12 sps:$4 sm:$0xff]   ;;  %v8082_v9 = vld [vmem:[#allocation2 + $0x698] ss:$12 sps:$4 sm:$0xff]  }
 0x1f6   : > { %2356 = vmatprep.subr.bf16.mxu1 %v9149_v0  ;;  %2315 = vmatprep.subr.bf16.mxu0 %v8027_v11  ;;  %v8079_v11 = vld [vmem:[#allocation2 + $0x690] ss:$12 sps:$4 sm:$0xff]  }
 0x1f9   : > { %2357 = vmatpush1.bf16.msra.mxu1 %v8028_v12  ;;  %2316 = vmatpush1.bf16.msra.mxu0 %v8025_v13  ;;  %v8085_v12 = vld [vmem:[#allocation2 + $0x6ac] ss:$12 sps:$4 sm:$0xff]   ;;  %v8086_v13 = vld [vmem:[#allocation2 + $0x6b0] ss:$12 sps:$4 sm:$0xff]  }
 0x1fa   : > { %2358 = vmatprep.subr.bf16.mxu1 %v9149_v0  ;;  %2317 = vmatprep.subr.bf16.mxu0 %v8031_v14  ;;  %v8083_v14 = vld [vmem:[#allocation2 + $0x6a8] ss:$12 sps:$4 sm:$0xff]  }
 0x1fd   : > { %2359 = vmatpush1.bf16.msra.mxu1 %v8032_v16  ;;  %2318 = vmatpush1.bf16.msra.mxu0 %v8029_v17  ;;  %v8089_v16 = vld [vmem:[#allocation2 + $0x6c4] ss:$12 sps:$4 sm:$0xff]   ;;  %v8090_v17 = vld [vmem:[#allocation2 + $0x6c8] ss:$12 sps:$4 sm:$0xff]  }
 0x1fe   : > { %2360 = vmatprep.subr.bf16.mxu1 %v9149_v0  ;;  %2319 = vmatprep.subr.bf16.mxu0 %v8035_v18  ;;  %v8087_v18 = vld [vmem:[#allocation2 + $0x6c0] ss:$12 sps:$4 sm:$0xff]  }
 0x201   : > { %2361 = vmatpush1.bf16.msra.mxu1 %v8036_v19  ;;  %2320 = vmatpush1.bf16.msra.mxu0 %v8033_v20  ;;  %v8093_v19 = vld [vmem:[#allocation2 + $0x6dc] ss:$12 sps:$4 sm:$0xff]   ;;  %v8094_v20 = vld [vmem:[#allocation2 + $0x6e0] ss:$12 sps:$4 sm:$0xff]  }
 0x202   : > { %2362 = vmatprep.subr.bf16.mxu1 %v9149_v0  ;;  %2321 = vmatprep.subr.bf16.mxu0 %v8039_v21  ;;  %v8091_v21 = vld [vmem:[#allocation2 + $0x6d8] ss:$12 sps:$4 sm:$0xff]  }
 0x205   : > { %2363 = vmatpush1.bf16.msra.mxu1 %v8040_v22  ;;  %2322 = vmatpush1.bf16.msra.mxu0 %v8037_v23  ;;  %v8097_v22 = vld [vmem:[#allocation2 + $0x6f4] ss:$12 sps:$4 sm:$0xff]   ;;  %v8098_v23 = vld [vmem:[#allocation2 + $0x6f8] ss:$12 sps:$4 sm:$0xff]  }
 0x206   : > { %2364 = vmatprep.subr.bf16.mxu1 %v9149_v0  ;;  %2323 = vmatprep.subr.bf16.mxu0 %v8043_v26  ;;  %v8095_v26 = vld [vmem:[#allocation2 + $0x6f0] ss:$12 sps:$4 sm:$0xff]  }
 0x209   : > { %2365 = vmatpush1.bf16.msra.mxu1 %v8044_v27  ;;  %2324 = vmatpush1.bf16.msra.mxu0 %v8041_v28  ;;  %v8101_v27 = vld [vmem:[#allocation2 + $0x70c] ss:$12 sps:$4 sm:$0xff]   ;;  %v8102_v28 = vld [vmem:[#allocation2 + $0x710] ss:$12 sps:$4 sm:$0xff]  }
 0x20a   : > { %2366 = vmatprep.subr.bf16.mxu1 %v9149_v0  ;;  %2325 = vmatprep.subr.bf16.mxu0 %v8047_v29  ;;  %v8099_v29 = vld [vmem:[#allocation2 + $0x708] ss:$12 sps:$4 sm:$0xff]  }
 0x20d   : > { %2367 = vmatpush1.bf16.msra.mxu1 %v8048_v31  ;;  %2326 = vmatpush1.bf16.msra.mxu0 %v8045_v32  ;;  %v8105_v31 = vld [vmem:[#allocation2 + $0x724] ss:$12 sps:$4 sm:$0xff]  }
 0x20e   : > { %2368 = vmatprep.subr.bf16.mxu1 %v9149_v0  ;;  %2327 = vmatprep.subr.bf16.mxu0 %v8051_v33  ;;  %v8106_v33 = vld [vmem:[#allocation2 + $0x728] ss:$12 sps:$4 sm:$0xff]  }
 0x211   : > { %2369 = vmatpush1.bf16.msra.mxu1 %v8052_v34  ;;  %2328 = vmatpush1.bf16.msra.mxu0 %v8049_v35 }
 0x212   : > { %2370 = vmatprep.subr.bf16.mxu1 %v9149_v0  ;;  %2329 = vmatprep.subr.bf16.mxu0 %v8055_v36  ;;  %v8103_v36 = vld [vmem:[#allocation2 + $0x720] ss:$12 sps:$4 sm:$0xff]  }
 0x213   : > { %v9635_v41 = vpop.f32.mrb[0].mxu1  ;;  %v9637_v45 = vpop.f32.mrb[0].mxu0 }
 0x214   : > { %v861_v43 = vpop.f32.mrb[1].mxu1  ;;  %v9639_v50 = vpop.f32.mrb[1].mxu0 }
 0x215   : > { %v862_v46 = vpop.f32.mrb[2].mxu1  ;;  %2371 = vmatpush1.bf16.msra.mxu1 %v8056_v38  ;;  %2330 = vmatpush1.bf16.msra.mxu0 %v8053_v39  ;;  %v822_v53 = vpop.f32.mrb[2].mxu0 }
 0x216   : > { %v863_v51 = vpop.f32.mrb[3].mxu1  ;;  %2372 = vmatprep.subr.bf16.mxu1 %v9149_v0  ;;  %2331 = vmatprep.subr.bf16.mxu0 %v8059_v40  ;;  %v823_v56 = vpop.f32.mrb[3].mxu0  ;;  %v8111_v40 = vld [vmem:[#allocation2 + $0x73c] ss:$12 sps:$4 sm:$0xff]  }
 0x217   : > { %v8112_v51 = vld [vmem:[#allocation2 + $0x740] ss:$12 sps:$4 sm:$0xff]  }
 0x218   : > { %v8115_v56 = vld [vmem:[#allocation2 + $0x754] ss:$12 sps:$4 sm:$0xff]  }
 0x219   : > { %2373 = vmatpush1.bf16.msra.mxu1 %v8060_v42  ;;  %2332 = vmatpush1.bf16.msra.mxu0 %v8057_v44 }
 0x21a   : > { %2668 = vmatprep.subr.bf16.mxu1 %v9149_v0  ;;  %2627 = vmatprep.subr.bf16.mxu0 %v8065_v48 }
 0x21c   : > { %2385 = vmatmul.mubr.bf16.vlgmr.msra.gmra.mrb[20].mxu1 %v9647_v57  ;;  %2344 = vmatmul.mubr.bf16.vlgmr.msra.gmra.mrb[20].mxu0 %v9647_v57 }
 0x21d   : > { %2669 = vmatpush1.bf16.msra.mxu1 %v8066_v55  ;;  %2628 = vmatpush1.bf16.msra.mxu0 %v8063_v58  ;;  %v9684_v55 = vcombine.low %v9643_v52, %v9643_v52  ;;  %v8116_v58 = vld [vmem:[#allocation2 + $0x758] ss:$12 sps:$4 sm:$0xff]  }
 0x21e   : > { %2670 = vmatprep.subr.bf16.mxu1 %v9149_v0  ;;  %2629 = vmatprep.subr.bf16.mxu0 %v8069_v59  ;;  %v8113_v59 = vld [vmem:[#allocation2 + $0x750] ss:$12 sps:$4 sm:$0xff]   ;;  %v8119_v52 = vld [vmem:[#allocation2 + $0x76c] ss:$12 sps:$4 sm:$0xff]  }
 0x21f   : > { %6991 = vmatprep.mubr.msk.bf16.mxu1 %vm780_vm0, %v9652_v61  ;;  %6990 = vmatprep.mubr.msk.bf16.mxu0 %vm780_vm0, %v9652_v61 }
 0x221   : > { %2671 = vmatpush1.bf16.msra.mxu1 %v8070_v60  ;;  %2630 = vmatpush1.bf16.msra.mxu0 %v8067_v62  ;;  %v8120_v60 = vld [vmem:[#allocation2 + $0x770] ss:$12 sps:$4 sm:$0xff]   ;;  %v8117_v62 = vld [vmem:[#allocation2 + $0x768] ss:$12 sps:$4 sm:$0xff]  }
 0x222   : > { %2672 = vmatprep.subr.bf16.mxu1 %v9149_v0  ;;  %2631 = vmatprep.subr.bf16.mxu0 %v8073_v63  ;;  %v8123_v63 = vld [vmem:[#allocation2 + $0x784] ss:$12 sps:$4 sm:$0xff]  }
 0x225   : > { %2673 = vmatpush1.bf16.msra.mxu1 %v8074_v1  ;;  %2632 = vmatpush1.bf16.msra.mxu0 %v8071_v2  ;;  %v8124_v1 = vld [vmem:[#allocation2 + $0x788] ss:$12 sps:$4 sm:$0xff]   ;;  %v8121_v2 = vld [vmem:[#allocation2 + $0x780] ss:$12 sps:$4 sm:$0xff]  }
 0x226   : > { %2674 = vmatprep.subr.bf16.mxu1 %v9149_v0  ;;  %2633 = vmatprep.subr.bf16.mxu0 %v8077_v4  ;;  %v8127_v4 = vld [vmem:[#allocation2 + $0x79c] ss:$12 sps:$4 sm:$0xff]  }
 0x229   : > { %2675 = vmatpush1.bf16.msra.mxu1 %v8078_v5  ;;  %2634 = vmatpush1.bf16.msra.mxu0 %v8075_v6  ;;  %v8128_v5 = vld [vmem:[#allocation2 + $0x7a0] ss:$12 sps:$4 sm:$0xff]   ;;  %v8125_v6 = vld [vmem:[#allocation2 + $0x798] ss:$12 sps:$4 sm:$0xff]  }
 0x22a   : > { %2676 = vmatprep.subr.bf16.mxu1 %v9149_v0  ;;  %2635 = vmatprep.subr.bf16.mxu0 %v8081_v8  ;;  %v8131_v8 = vld [vmem:[#allocation2 + $0x7b4] ss:$12 sps:$4 sm:$0xff]  }
 0x22d   : > { %2677 = vmatpush1.bf16.msra.mxu1 %v8082_v9  ;;  %2636 = vmatpush1.bf16.msra.mxu0 %v8079_v11  ;;  %v8132_v9 = vld [vmem:[#allocation2 + $0x7b8] ss:$12 sps:$4 sm:$0xff]   ;;  %v8129_v11 = vld [vmem:[#allocation2 + $0x7b0] ss:$12 sps:$4 sm:$0xff]  }
 0x22e   : > { %2678 = vmatprep.subr.bf16.mxu1 %v9149_v0  ;;  %2637 = vmatprep.subr.bf16.mxu0 %v8085_v12  ;;  %v8135_v12 = vld [vmem:[#allocation2 + $0x7cc] ss:$12 sps:$4 sm:$0xff]  }
 0x231   : > { %2679 = vmatpush1.bf16.msra.mxu1 %v8086_v13  ;;  %2638 = vmatpush1.bf16.msra.mxu0 %v8083_v14  ;;  %v8136_v13 = vld [vmem:[#allocation2 + $0x7d0] ss:$12 sps:$4 sm:$0xff]   ;;  %v8133_v14 = vld [vmem:[#allocation2 + $0x7c8] ss:$12 sps:$4 sm:$0xff]  }
 0x232   : > { %2680 = vmatprep.subr.bf16.mxu1 %v9149_v0  ;;  %2639 = vmatprep.subr.bf16.mxu0 %v8089_v16  ;;  %v8139_v16 = vld [vmem:[#allocation2 + $0x7e4] ss:$12 sps:$4 sm:$0xff]  }
 0x235   : > { %2681 = vmatpush1.bf16.msra.mxu1 %v8090_v17  ;;  %2640 = vmatpush1.bf16.msra.mxu0 %v8087_v18  ;;  %v8140_v17 = vld [vmem:[#allocation2 + $0x7e8] ss:$12 sps:$4 sm:$0xff]   ;;  %v9704_v18 = vld [vmem:[#allocation2 + $0x7e0] ss:$12 sps:$4 sm:$0xff]  }
 0x236   : > { %2682 = vmatprep.subr.bf16.mxu1 %v9149_v0  ;;  %2641 = vmatprep.subr.bf16.mxu0 %v8093_v19  ;;  %v9706_v19 = vld [vmem:[#allocation2 + $0x7fc] ss:$12 sps:$4 sm:$0xff]  }
 0x239   : > { %2683 = vmatpush1.bf16.msra.mxu1 %v8094_v20  ;;  %2642 = vmatpush1.bf16.msra.mxu0 %v8091_v21  ;;  %v9708_v20 = vld [vmem:[#allocation2 + $0x800] ss:$12 sps:$4 sm:$0xff]   ;;  %v9712_v21 = vld [vmem:[#allocation2 + $0x7f8] ss:$12 sps:$4 sm:$0xff]  }
 0x23a   : > { %2684 = vmatprep.subr.bf16.mxu1 %v9149_v0  ;;  %2643 = vmatprep.subr.bf16.mxu0 %v8097_v22  ;;  %v9715_v22 = vld [vmem:[#allocation2 + $0x814] ss:$12 sps:$4 sm:$0xff]  }
 0x23d   : > { %2685 = vmatpush1.bf16.msra.mxu1 %v8098_v23  ;;  %2644 = vmatpush1.bf16.msra.mxu0 %v8095_v26  ;;  %v8148_v23 = vld [vmem:[#allocation2 + $0x818] ss:$12 sps:$4 sm:$0xff]   ;;  %v8145_v26 = vld [vmem:[#allocation2 + $0x810] ss:$12 sps:$4 sm:$0xff]  }
 0x23e   : > { %2686 = vmatprep.subr.bf16.mxu1 %v9149_v0  ;;  %2645 = vmatprep.subr.bf16.mxu0 %v8101_v27 }
 0x23f   : > { %v1125_v32 = vpop.f32.mrb[4].mxu1  ;;  %v1084_v38 = vpop.f32.mrb[4].mxu0 }
 0x240   : > { %v9670_v34 = vadd.f32 %v1125_v32, %v9635_v41  ;;  %v1127_v35 = vpop.f32.mrb[5].mxu1  ;;  %v9673_v42 = vadd.f32 %v1084_v38, %v9637_v45  ;;  %v1086_v43 = vpop.f32.mrb[5].mxu0  ;;  %v9680_v41 = vld [vmem:[%s9484_s19 + $0x38] sm:$0x77]  ;;  %s499_s19 = scalar_lea.vmem [#allocation17], %s498_s13 }
 0x241   : > { %v1128_v39 = vpop.f32.mrb[6].mxu1  ;;  %2687 = vmatpush1.bf16.msra.mxu1 %v8102_v28  ;;  %2646 = vmatpush1.bf16.msra.mxu0 %v8099_v29  ;;  %v9677_v46 = vadd.f32 %v1086_v43, %v9639_v50  ;;  %v1088_v48 = vpop.f32.mrb[6].mxu0  ;;  %v8109_v45 = vld [vmem:[#allocation2 + $0x738] ss:$12 sps:$4 sm:$0xff]   ;;  %v9689_v50 = vcombine.high %v9680_v41, %v9680_v41  ;;  %v9727_v38 = vld [vmem:[#allocation2 + $0x830] ss:$12 sps:$4 sm:$0xff]  }
 0x242   : > { %v1129_v44 = vpop.f32.mrb[7].mxu1  ;;  %2688 = vmatprep.subr.bf16.mxu1 %v9149_v0  ;;  %2647 = vmatprep.subr.bf16.mxu0 %v8105_v31  ;;  %v1089_v53 = vpop.f32.mrb[7].mxu0  ;;  %v8151_v28 = vld [vmem:[#allocation2 + $0x82c] ss:$12 sps:$4 sm:$0xff]   ;;  %v9733_v43 = vld [vmem:[#allocation2 + $0x828] ss:$12 sps:$4 sm:$0xff]  }
 0x243   : > { %v8540_v48 = vld [vmem:[#allocation2 + $0x110] ss:$12 sps:$4 sm:$0xff]   ;;  %v8543_v53 = vld [vmem:[#allocation2 + $0x128] ss:$12 sps:$4 sm:$0xff]   ;;  %s6560_s24 = sshll.u32 %s499_s19, 4  ;;  %s10503_s24 = int_to_ptr.vmem [resolvable:$true] %s6560_s24 }
 0x244   : > { %s9048_s23 = scalar_lea.vmem %s10503_s24, 16  ;;  %p9055_p0 = scmp.lt.s32.totalorder %s10503_s24, %s9053_s14 }
 0x245   : > { %2689 = vmatpush1.bf16.msra.mxu1 %v8106_v33  ;;  %2648 = vmatpush1.bf16.msra.mxu0 %v8103_v36  ;;  %p9049_p8 = scmp.ne.s32.totalorder %s10503_s24, %s9048_s23  ;;  %p9056_p6 = scmp.lt.s32.totalorder %s9054_s7, %s9048_s23 }
 0x246   : > { %2984 = vmatprep.subr.bf16.mxu1 %v9149_v0  ;;  %2943 = vmatprep.subr.bf16.mxu0 %v8111_v40 }
 0x247   : > { %p9050_p13 = pnand %p9049_p8, %p10592_p11  ;;  %p9057_p5 = por %p9056_p6, %p9055_p0 }
 0x248   : > { %2701 = vmatmul.mubr.bf16.vlgmr.msra.gmra.mrb[24].mxu1 %v9684_v55  ;;  %2660 = vmatmul.mubr.bf16.vlgmr.msra.gmra.mrb[24].mxu0 %v9684_v55 }
 0x249   : > { %2985 = vmatpush1.bf16.msra.mxu1 %v8112_v51  ;;  %2944 = vmatpush1.bf16.msra.mxu0 %v8109_v45  ;;  %v8541_v51 = vld [vmem:[#allocation2 + $0x108] ss:$12 sps:$4 sm:$0xff]   ;;  %v8544_v45 = vld [vmem:[#allocation2 + $0x120] ss:$12 sps:$4 sm:$0xff]   ;;  %p9051_p1 = pneg %p9050_p13 }
 0x24a   : > { %2986 = vmatprep.subr.bf16.mxu1 %v9149_v0  ;;  %2945 = vmatprep.subr.bf16.mxu0 %v8115_v56  ;;  %v8545_v56 = vld [vmem:[#allocation2 + $0x13c] ss:$12 sps:$4 sm:$0xff]  }
 0x24b   : > { %7029 = vmatprep.mubr.msk.bf16.mxu1 %vm780_vm0, %v9689_v50  ;;  %7028 = vmatprep.mubr.msk.bf16.mxu0 %vm780_vm0, %v9689_v50  ;;  %p9058_p9 = pnand %p9057_p5, %p9051_p1 }
 0x24d   : > { %2987 = vmatpush1.bf16.msra.mxu1 %v8116_v58  ;;  %2946 = vmatpush1.bf16.msra.mxu0 %v8113_v59  ;;  %v8546_v58 = vld [vmem:[#allocation2 + $0x140] ss:$12 sps:$4 sm:$0xff]   ;;  %v8547_v59 = vld [vmem:[#allocation2 + $0x138] ss:$12 sps:$4 sm:$0xff]  }
 0x24e   : > { %2988 = vmatprep.subr.bf16.mxu1 %v9149_v0  ;;  %2947 = vmatprep.subr.bf16.mxu0 %v8119_v52  ;;  %v8548_v52 = vld [vmem:[#allocation2 + $0x154] ss:$12 sps:$4 sm:$0xff]  }
 0x251   : > { %2989 = vmatpush1.bf16.msra.mxu1 %v8120_v60  ;;  %2948 = vmatpush1.bf16.msra.mxu0 %v8117_v62  ;;  %v8549_v60 = vld [vmem:[#allocation2 + $0x158] ss:$12 sps:$4 sm:$0xff]   ;;  %v8550_v62 = vld [vmem:[#allocation2 + $0x150] ss:$12 sps:$4 sm:$0xff]  }
 0x252   : > { %2990 = vmatprep.subr.bf16.mxu1 %v9149_v0  ;;  %2949 = vmatprep.subr.bf16.mxu0 %v8123_v63  ;;  %v8552_v63 = vld [vmem:[#allocation2 + $0x170] ss:$12 sps:$4 sm:$0xff]  }
 0x255   : > { %2991 = vmatpush1.bf16.msra.mxu1 %v8124_v1  ;;  %2950 = vmatpush1.bf16.msra.mxu0 %v8121_v2  ;;  %v8553_v1 = vld [vmem:[#allocation2 + $0x168] ss:$12 sps:$4 sm:$0xff]   ;;  %v8554_v2 = vld [vmem:[#allocation2 + $0x184] ss:$12 sps:$4 sm:$0xff]  }
 0x256   : > { %2992 = vmatprep.subr.bf16.mxu1 %v9149_v0  ;;  %2951 = vmatprep.subr.bf16.mxu0 %v8127_v4  ;;  %v8555_v4 = vld [vmem:[#allocation2 + $0x188] ss:$12 sps:$4 sm:$0xff]  }
 0x259   : > { %2993 = vmatpush1.bf16.msra.mxu1 %v8128_v5  ;;  %2952 = vmatpush1.bf16.msra.mxu0 %v8125_v6  ;;  %v8556_v5 = vld [vmem:[#allocation2 + $0x180] ss:$12 sps:$4 sm:$0xff]   ;;  %v8557_v6 = vld [vmem:[#allocation2 + $0x19c] ss:$12 sps:$4 sm:$0xff]  }
 0x25a   : > { %2994 = vmatprep.subr.bf16.mxu1 %v9149_v0  ;;  %2953 = vmatprep.subr.bf16.mxu0 %v8131_v8  ;;  %v8558_v8 = vld [vmem:[#allocation2 + $0x1a0] ss:$12 sps:$4 sm:$0xff]  }
 0x25d   : > { %2995 = vmatpush1.bf16.msra.mxu1 %v8132_v9  ;;  %2954 = vmatpush1.bf16.msra.mxu0 %v8129_v11  ;;  %v8559_v9 = vld [vmem:[#allocation2 + $0x198] ss:$12 sps:$4 sm:$0xff]   ;;  %v8560_v11 = vld [vmem:[#allocation2 + $0x1b4] ss:$12 sps:$4 sm:$0xff]  }
 0x25e   : > { %2996 = vmatprep.subr.bf16.mxu1 %v9149_v0  ;;  %2955 = vmatprep.subr.bf16.mxu0 %v8135_v12  ;;  %v8561_v12 = vld [vmem:[#allocation2 + $0x1b8] ss:$12 sps:$4 sm:$0xff]  }
 0x261   : > { %2997 = vmatpush1.bf16.msra.mxu1 %v8136_v13  ;;  %2956 = vmatpush1.bf16.msra.mxu0 %v8133_v14  ;;  %v8562_v13 = vld [vmem:[#allocation2 + $0x1b0] ss:$12 sps:$4 sm:$0xff]   ;;  %v8563_v14 = vld [vmem:[#allocation2 + $0x1cc] ss:$12 sps:$4 sm:$0xff]  }
 0x262   : > { %2998 = vmatprep.subr.bf16.mxu1 %v9149_v0  ;;  %2957 = vmatprep.subr.bf16.mxu0 %v8139_v16  ;;  %v8564_v16 = vld [vmem:[#allocation2 + $0x1d0] ss:$12 sps:$4 sm:$0xff]  }
 0x265   : > { %2999 = vmatpush1.bf16.msra.mxu1 %v8140_v17  ;;  %2958 = vmatpush1.bf16.msra.mxu0 %v9704_v18  ;;  %v8565_v17 = vld [vmem:[#allocation2 + $0x1c8] ss:$12 sps:$4 sm:$0xff]  }
 0x266   : > { %3000 = vmatprep.subr.bf16.mxu1 %v9149_v0  ;;  %2959 = vmatprep.subr.bf16.mxu0 %v9706_v19 }
 0x269   : > { %3001 = vmatpush1.bf16.msra.mxu1 %v9708_v20  ;;  %2960 = vmatpush1.bf16.msra.mxu0 %v9712_v21 }
 0x26a   : > { %3002 = vmatprep.subr.bf16.mxu1 %v9149_v0  ;;  %2961 = vmatprep.subr.bf16.mxu0 %v9715_v22 }
 0x26b   : > { %v1438_v27 = vpop.f32.mrb[8].mxu1  ;;  %v1397_v31 = vpop.f32.mrb[8].mxu0 }
 0x26c   : > { %v9722_v29 = vadd.f32 %v1438_v27, %v9670_v34  ;;  %v1440_v32 = vpop.f32.mrb[9].mxu1  ;;  %v9725_v33 = vadd.f32 %v1397_v31, %v9673_v42  ;;  %v1399_v35 = vpop.f32.mrb[9].mxu0  ;;  %v9737_v42 = vcombine.low %v9680_v41, %v9680_v41  ;;  %v8542_v41 = vld [vmem:[#allocation2 + $0x124] ss:$12 sps:$4 sm:$0xff]  }
 0x26d   : > { %v1441_v36 = vpop.f32.mrb[10].mxu1  ;;  %3003 = vmatpush1.bf16.msra.mxu1 %v8148_v23  ;;  %v9730_v39 = vadd.f32 %v1399_v35, %v9677_v46  ;;  %2962 = vmatpush1.bf16.msra.mxu0 %v8145_v26  ;;  %v1401_v34 = vpop.f32.mrb[10].mxu0  ;;  %v8539_v46 = vld [vmem:[#allocation2 + $0x10c] ss:$12 sps:$4 sm:$0xff]   ;;  %v8566_v26 = vld [vmem:[#allocation2 + $0x1e4] ss:$12 sps:$4 sm:$0xff]  }
 0x26e   : > { %v1442_v40 = vpop.f32.mrb[11].mxu1  ;;  %3004 = vmatprep.subr.bf16.mxu1 %v9149_v0  ;;  %2963 = vmatprep.subr.bf16.mxu0 %v8151_v28  ;;  %v1402_v44 = vpop.f32.mrb[11].mxu0 }
 0x26f   : > { %v8567_v40 = vld [vmem:[#allocation2 + $0x1e8] ss:$12 sps:$4 sm:$0xff]  }
 0x271   : > { %3005 = vmatpush1.bf16.msra.mxu1 %v9727_v38  ;;  %2964 = vmatpush1.bf16.msra.mxu0 %v9733_v43 }
 0x272   : > { %3094 = vmatprep.subr.bf16.mxu1 %v9149_v0  ;;  %3053 = vmatprep.subr.bf16.mxu0 %v8539_v46  ;;  %v8568_v46 = vld [vmem:[#allocation2 + $0x1e0] ss:$12 sps:$4 sm:$0xff]  }
 0x274   : > { %3017 = vmatmul.mubr.bf16.vlgmr.msra.gmra.mrb[28].mxu1 %v9737_v42  ;;  %2976 = vmatmul.mubr.bf16.vlgmr.msra.gmra.mrb[28].mxu0 %v9737_v42 }
 0x275   : > { %3095 = vmatpush1.bf16.msra.mxu1 %v8540_v48  ;;  %3054 = vmatpush1.bf16.msra.mxu0 %v8541_v51 }
 0x276   : > { %3096 = vmatprep.subr.bf16.mxu1 %v9149_v0  ;;  %3055 = vmatprep.subr.bf16.mxu0 %v8542_v41  ;;  %v8570_v41 = vld [vmem:[#allocation2 + $0x200] ss:$12 sps:$4 sm:$0xff]  }
 0x277   : > { %7031 = vmatprep.mubr.msk.bf16.mxu1 %vm780_vm0, %v9618_v7  ;;  %7030 = vmatprep.mubr.msk.bf16.mxu0 %vm780_vm0, %v9618_v7  ;;  %v8551_v7 = vld [vmem:[#allocation2 + $0x16c] ss:$12 sps:$4 sm:$0xff]  }
 0x279   : > { %3097 = vmatpush1.bf16.msra.mxu1 %v8543_v53  ;;  %3056 = vmatpush1.bf16.msra.mxu0 %v8544_v45  ;;  %v8572_v53 = vld [vmem:[#allocation2 + $0x4] ss:$12 sps:$4 sm:$0xff]   ;;  %v8574_v45 = vld [vmem:[#allocation2] ss:$12 sps:$4 sm:$0xff]  }
 0x27a   : > { %3098 = vmatprep.subr.bf16.mxu1 %v9149_v0  ;;  %3057 = vmatprep.subr.bf16.mxu0 %v8545_v56  ;;  %v8575_v56 = vld [vmem:[#allocation2 + $0x1c] ss:$12 sps:$4 sm:$0xff]  }
 0x27d   : > { %3099 = vmatpush1.bf16.msra.mxu1 %v8546_v58  ;;  %3058 = vmatpush1.bf16.msra.mxu0 %v8547_v59  ;;  %v8576_v58 = vld [vmem:[#allocation2 + $0x20] ss:$12 sps:$4 sm:$0xff]   ;;  %v8577_v59 = vld [vmem:[#allocation2 + $0x18] ss:$12 sps:$4 sm:$0xff]  }
 0x27e   : > { %3100 = vmatprep.subr.bf16.mxu1 %v9149_v0  ;;  %3059 = vmatprep.subr.bf16.mxu0 %v8548_v52  ;;  %v8578_v52 = vld [vmem:[#allocation2 + $0x34] ss:$12 sps:$4 sm:$0xff]  }
 0x281   : > { %3101 = vmatpush1.bf16.msra.mxu1 %v8549_v60  ;;  %3060 = vmatpush1.bf16.msra.mxu0 %v8550_v62  ;;  %v8580_v60 = vld [vmem:[#allocation2 + $0x30] ss:$12 sps:$4 sm:$0xff]   ;;  %v8581_v62 = vld [vmem:[#allocation2 + $0x4c] ss:$12 sps:$4 sm:$0xff]  }
 0x282   : > { %3102 = vmatprep.subr.bf16.mxu1 %v9149_v0  ;;  %3061 = vmatprep.subr.bf16.mxu0 %v8551_v7  ;;  %v8582_v7 = vld [vmem:[#allocation2 + $0x50] ss:$12 sps:$4 sm:$0xff]  }
 0x285   : > { %3103 = vmatpush1.bf16.msra.mxu1 %v8552_v63  ;;  %3062 = vmatpush1.bf16.msra.mxu0 %v8553_v1  ;;  %v8583_v63 = vld [vmem:[#allocation2 + $0x48] ss:$12 sps:$4 sm:$0xff]  }
 0x286   : > { %3104 = vmatprep.subr.bf16.mxu1 %v9149_v0  ;;  %3063 = vmatprep.subr.bf16.mxu0 %v8554_v2  ;;  %v8585_v1 = vld [vmem:[#allocation2 + $0x68] ss:$12 sps:$4 sm:$0xff]   ;;  %v8586_v2 = vld [vmem:[#allocation2 + $0x60] ss:$12 sps:$4 sm:$0xff]  }
 0x289   : > { %3105 = vmatpush1.bf16.msra.mxu1 %v8555_v4  ;;  %3064 = vmatpush1.bf16.msra.mxu0 %v8556_v5  ;;  %v8587_v4 = vld [vmem:[#allocation2 + $0x7c] ss:$12 sps:$4 sm:$0xff]   ;;  %v8588_v5 = vld [vmem:[#allocation2 + $0x80] ss:$12 sps:$4 sm:$0xff]  }
 0x28a   : > { %3106 = vmatprep.subr.bf16.mxu1 %v9149_v0  ;;  %3065 = vmatprep.subr.bf16.mxu0 %v8557_v6  ;;  %v8589_v6 = vld [vmem:[#allocation2 + $0x78] ss:$12 sps:$4 sm:$0xff]  }
 0x28d   : > { %3107 = vmatpush1.bf16.msra.mxu1 %v8558_v8  ;;  %3066 = vmatpush1.bf16.msra.mxu0 %v8559_v9  ;;  %v8590_v8 = vld [vmem:[#allocation2 + $0x94] ss:$12 sps:$4 sm:$0xff]   ;;  %v8591_v9 = vld [vmem:[#allocation2 + $0x98] ss:$12 sps:$4 sm:$0xff]  }
 0x28e   : > { %3108 = vmatprep.subr.bf16.mxu1 %v9149_v0  ;;  %3067 = vmatprep.subr.bf16.mxu0 %v8560_v11  ;;  %v8592_v11 = vld [vmem:[#allocation2 + $0x90] ss:$12 sps:$4 sm:$0xff]  }
 0x291   : > { %3109 = vmatpush1.bf16.msra.mxu1 %v8561_v12  ;;  %3068 = vmatpush1.bf16.msra.mxu0 %v8562_v13  ;;  %v8593_v12 = vld [vmem:[#allocation2 + $0xac] ss:$12 sps:$4 sm:$0xff]   ;;  %v8594_v13 = vld [vmem:[#allocation2 + $0xb0] ss:$12 sps:$4 sm:$0xff]  }
 0x292   : > { %3110 = vmatprep.subr.bf16.mxu1 %v9149_v0  ;;  %3069 = vmatprep.subr.bf16.mxu0 %v8563_v14  ;;  %v8595_v14 = vld [vmem:[#allocation2 + $0xa8] ss:$12 sps:$4 sm:$0xff]  }
 0x295   : > { %3111 = vmatpush1.bf16.msra.mxu1 %v8564_v16  ;;  %3070 = vmatpush1.bf16.msra.mxu0 %v8565_v17  ;;  %v8596_v16 = vld [vmem:[#allocation2 + $0xc4] ss:$12 sps:$4 sm:$0xff]   ;;  %v8597_v17 = vld [vmem:[#allocation2 + $0xc8] ss:$12 sps:$4 sm:$0xff]  }
 0x296   : > { %3112 = vmatprep.subr.bf16.mxu1 %v9149_v0  ;;  %3071 = vmatprep.subr.bf16.mxu0 %v8566_v26 }
 0x297   : > { %v1754_v23 = vpop.f32.mrb[12].mxu1  ;;  %v1713_v28 = vpop.f32.mrb[12].mxu0 }
 0x298   : > { %v9758_v27 = vadd.f32 %v1754_v23, %v9722_v29  ;;  %v1756_v31 = vpop.f32.mrb[13].mxu1  ;;  %v9761_v32 = vadd.f32 %v1713_v28, %v9725_v33  ;;  %v1715_v35 = vpop.f32.mrb[13].mxu0  ;;  %v8569_v29 = vld [vmem:[#allocation2 + $0x1fc] ss:$12 sps:$4 sm:$0xff]   ;;  %v8571_v33 = vld [vmem:[#allocation2 + $0x1f8] ss:$12 sps:$4 sm:$0xff]  }
 0x299   : > { %v1757_v36 = vpop.f32.mrb[14].mxu1  ;;  %3113 = vmatpush1.bf16.msra.mxu1 %v8567_v40  ;;  %v9764_v34 = vadd.f32 %v1715_v35, %v9730_v39  ;;  %3072 = vmatpush1.bf16.msra.mxu0 %v8568_v46  ;;  %v1717_v48 = vpop.f32.mrb[14].mxu0  ;;  %v8573_v39 = vld [vmem:[#allocation2 + $0x8] ss:$12 sps:$4 sm:$0xff]   ;;  %v8598_v23 = vld [vmem:[#allocation2 + $0xc0] ss:$12 sps:$4 sm:$0xff]  }
 0x29a   : > { %v1758_v44 = vpop.f32.mrb[15].mxu1  ;;  %3114 = vmatprep.subr.bf16.mxu1 %v9149_v0  ;;  %3073 = vmatprep.subr.bf16.mxu0 %v8569_v29  ;;  %v1718_v51 = vpop.f32.mrb[15].mxu0  ;;  %v8599_v28 = vld [vmem:[#allocation2 + $0xdc] ss:$12 sps:$4 sm:$0xff]   ;;  %v8600_v48 = vld [vmem:[#allocation2 + $0xe0] ss:$12 sps:$4 sm:$0xff]  }
 0x29d   : > { %3115 = vmatpush1.bf16.msra.mxu1 %v8570_v41  ;;  %3074 = vmatpush1.bf16.msra.mxu0 %v8571_v33  ;;  %v8601_v41 = vld [vmem:[#allocation2 + $0xd8] ss:$12 sps:$4 sm:$0xff]  }
 0x29e   : > { %3175 = vmatprep.subr.bf16.mxu1 %v9149_v0  ;;  %3134 = vmatprep.subr.bf16.mxu0 %v8572_v53 }
 0x2a0   : > { %3127 = vmatmul.mubr.bf16.vlgmr.msra.gmra.mrb[32].mxu1 %v9647_v57  ;;  %3086 = vmatmul.mubr.bf16.vlgmr.msra.gmra.mrb[32].mxu0 %v9647_v57  ;;  %v8579_v57 = vld [vmem:[#allocation2 + $0x38] ss:$12 sps:$4 sm:$0xff]  }
 0x2a1   : > { %3176 = vmatpush1.bf16.msra.mxu1 %v8573_v39  ;;  %3135 = vmatpush1.bf16.msra.mxu0 %v8574_v45  ;;  %v8603_v39 = vld [vmem:[#allocation2 + $0xf8] ss:$12 sps:$4 sm:$0xff]   ;;  %v8605_v45 = vld [vmem:[#allocation2 + $0x214] ss:$12 sps:$4 sm:$0xff]  }
 0x2a2   : > { %3177 = vmatprep.subr.bf16.mxu1 %v9149_v0  ;;  %3136 = vmatprep.subr.bf16.mxu0 %v8575_v56  ;;  %v8607_v56 = vld [vmem:[#allocation2 + $0x210] ss:$12 sps:$4 sm:$0xff]  }
 0x2a3   : > { %7033 = vmatprep.mubr.msk.bf16.mxu1 %vm780_vm0, %v9590_v30  ;;  %7032 = vmatprep.mubr.msk.bf16.mxu0 %vm780_vm0, %v9590_v30  ;;  %v8584_v30 = vld [vmem:[#allocation2 + $0x64] ss:$12 sps:$4 sm:$0xff]  }
 0x2a5   : > { %3178 = vmatpush1.bf16.msra.mxu1 %v8576_v58  ;;  %3137 = vmatpush1.bf16.msra.mxu0 %v8577_v59  ;;  %v8608_v58 = vld [vmem:[#allocation2 + $0x22c] ss:$12 sps:$4 sm:$0xff]   ;;  %v8609_v59 = vld [vmem:[#allocation2 + $0x230] ss:$12 sps:$4 sm:$0xff]  }
 0x2a6   : > { %3179 = vmatprep.subr.bf16.mxu1 %v9149_v0  ;;  %3138 = vmatprep.subr.bf16.mxu0 %v8578_v52  ;;  %v8610_v52 = vld [vmem:[#allocation2 + $0x228] ss:$12 sps:$4 sm:$0xff]  }
 0x2a9   : > { %3180 = vmatpush1.bf16.msra.mxu1 %v8579_v57  ;;  %3139 = vmatpush1.bf16.msra.mxu0 %v8580_v60  ;;  %v8611_v57 = vld [vmem:[#allocation2 + $0x244] ss:$12 sps:$4 sm:$0xff]   ;;  %v8613_v60 = vld [vmem:[#allocation2 + $0x240] ss:$12 sps:$4 sm:$0xff]  }
 0x2aa   : > { %3181 = vmatprep.subr.bf16.mxu1 %v9149_v0  ;;  %3140 = vmatprep.subr.bf16.mxu0 %v8581_v62  ;;  %v8614_v62 = vld [vmem:[#allocation2 + $0x25c] ss:$12 sps:$4 sm:$0xff]  }
 0x2ad   : > { %3182 = vmatpush1.bf16.msra.mxu1 %v8582_v7  ;;  %3141 = vmatpush1.bf16.msra.mxu0 %v8583_v63  ;;  %v8615_v7 = vld [vmem:[#allocation2 + $0x260] ss:$12 sps:$4 sm:$0xff]   ;;  %v8616_v63 = vld [vmem:[#allocation2 + $0x258] ss:$12 sps:$4 sm:$0xff]  }
 0x2ae   : > { %3183 = vmatprep.subr.bf16.mxu1 %v9149_v0  ;;  %3142 = vmatprep.subr.bf16.mxu0 %v8584_v30  ;;  %v8618_v30 = vld [vmem:[#allocation2 + $0x278] ss:$12 sps:$4 sm:$0xff]  }
 0x2b1   : > { %3184 = vmatpush1.bf16.msra.mxu1 %v8585_v1  ;;  %3143 = vmatpush1.bf16.msra.mxu0 %v8586_v2  ;;  %v8619_v1 = vld [vmem:[#allocation2 + $0x270] ss:$12 sps:$4 sm:$0xff]   ;;  %v8620_v2 = vld [vmem:[#allocation2 + $0x28c] ss:$12 sps:$4 sm:$0xff]  }
 0x2b2   : > { %3185 = vmatprep.subr.bf16.mxu1 %v9149_v0  ;;  %3144 = vmatprep.subr.bf16.mxu0 %v8587_v4  ;;  %v8621_v4 = vld [vmem:[#allocation2 + $0x290] ss:$12 sps:$4 sm:$0xff]  }
 0x2b5   : > { %3186 = vmatpush1.bf16.msra.mxu1 %v8588_v5  ;;  %3145 = vmatpush1.bf16.msra.mxu0 %v8589_v6  ;;  %v8622_v5 = vld [vmem:[#allocation2 + $0x288] ss:$12 sps:$4 sm:$0xff]   ;;  %v8623_v6 = vld [vmem:[#allocation2 + $0x2a4] ss:$12 sps:$4 sm:$0xff]  }
 0x2b6   : > { %3187 = vmatprep.subr.bf16.mxu1 %v9149_v0  ;;  %3146 = vmatprep.subr.bf16.mxu0 %v8590_v8  ;;  %v8624_v8 = vld [vmem:[#allocation2 + $0x2a8] ss:$12 sps:$4 sm:$0xff]  }
 0x2b9   : > { %3188 = vmatpush1.bf16.msra.mxu1 %v8591_v9  ;;  %3147 = vmatpush1.bf16.msra.mxu0 %v8592_v11  ;;  %v8625_v9 = vld [vmem:[#allocation2 + $0x2a0] ss:$12 sps:$4 sm:$0xff]   ;;  %v8626_v11 = vld [vmem:[#allocation2 + $0x2bc] ss:$12 sps:$4 sm:$0xff]  }
 0x2ba   : > { %3189 = vmatprep.subr.bf16.mxu1 %v9149_v0  ;;  %3148 = vmatprep.subr.bf16.mxu0 %v8593_v12  ;;  %v8627_v12 = vld [vmem:[#allocation2 + $0x2c0] ss:$12 sps:$4 sm:$0xff]  }
 0x2bd   : > { %3190 = vmatpush1.bf16.msra.mxu1 %v8594_v13  ;;  %3149 = vmatpush1.bf16.msra.mxu0 %v8595_v14  ;;  %v8628_v13 = vld [vmem:[#allocation2 + $0x2b8] ss:$12 sps:$4 sm:$0xff]   ;;  %v8629_v14 = vld [vmem:[#allocation2 + $0x2d4] ss:$12 sps:$4 sm:$0xff]  }
 0x2be   : > { %3191 = vmatprep.subr.bf16.mxu1 %v9149_v0  ;;  %3150 = vmatprep.subr.bf16.mxu0 %v8596_v16  ;;  %v8630_v16 = vld [vmem:[#allocation2 + $0x2d8] ss:$12 sps:$4 sm:$0xff]  }
 0x2c1   : > { %3192 = vmatpush1.bf16.msra.mxu1 %v8597_v17  ;;  %3151 = vmatpush1.bf16.msra.mxu0 %v8598_v23  ;;  %v8631_v17 = vld [vmem:[#allocation2 + $0x2d0] ss:$12 sps:$4 sm:$0xff]  }
 0x2c2   : > { %3193 = vmatprep.subr.bf16.mxu1 %v9149_v0  ;;  %3152 = vmatprep.subr.bf16.mxu0 %v8599_v28 }
 0x2c3   : > { %v2070_v26 = vpop.f32.mrb[16].mxu1  ;;  %v2029_v35 = vpop.f32.mrb[16].mxu0 }
 0x2c4   : > { %v9784_v31 = vadd.f32 %v2070_v26, %v9758_v27  ;;  %v2072_v36 = vpop.f32.mrb[17].mxu1  ;;  %v9787_v40 = vadd.f32 %v2029_v35, %v9761_v32  ;;  %v2031_v44 = vpop.f32.mrb[17].mxu0  ;;  %v8602_v27 = vld [vmem:[#allocation2 + $0xf4] ss:$12 sps:$4 sm:$0xff]   ;;  %v8604_v32 = vld [vmem:[#allocation2 + $0xf0] ss:$12 sps:$4 sm:$0xff]  }
 0x2c5   : > { %v2073_v46 = vpop.f32.mrb[18].mxu1  ;;  %3194 = vmatpush1.bf16.msra.mxu1 %v8600_v48  ;;  %v9790_v29 = vadd.f32 %v2031_v44, %v9764_v34  ;;  %3153 = vmatpush1.bf16.msra.mxu0 %v8601_v41  ;;  %v2033_v33 = vpop.f32.mrb[18].mxu0  ;;  %v8606_v34 = vld [vmem:[#allocation2 + $0x218] ss:$12 sps:$4 sm:$0xff]  }
 0x2c6   : > { %v2074_v51 = vpop.f32.mrb[19].mxu1  ;;  %3195 = vmatprep.subr.bf16.mxu1 %v9149_v0  ;;  %3154 = vmatprep.subr.bf16.mxu0 %v8602_v27  ;;  %v2034_v53 = vpop.f32.mrb[19].mxu0  ;;  %v8632_v26 = vld [vmem:[#allocation2 + $0x2ec] ss:$12 sps:$4 sm:$0xff]   ;;  %v8634_v27 = vld [vmem:[#allocation2 + $0x2e8] ss:$12 sps:$4 sm:$0xff]  }
 0x2c7   : > { %v8633_v51 = vld [vmem:[#allocation2 + $0x2f0] ss:$12 sps:$4 sm:$0xff]  }
 0x2c9   : > { %3196 = vmatpush1.bf16.msra.mxu1 %v8603_v39  ;;  %3155 = vmatpush1.bf16.msra.mxu0 %v8604_v32  ;;  %v8636_v32 = vld [vmem:[#allocation2 + $0x308] ss:$12 sps:$4 sm:$0xff]  }
 0x2ca   : > { %3256 = vmatprep.subr.bf16.mxu1 %v9149_v0  ;;  %3215 = vmatprep.subr.bf16.mxu0 %v8605_v45  ;;  %v8638_v45 = vld [vmem:[#allocation2 + $0x31c] ss:$12 sps:$4 sm:$0xff]  }
 0x2cc   : > { %3208 = vmatmul.mubr.bf16.vlgmr.msra.gmra.mrb[36].mxu1 %v9610_v3  ;;  %3167 = vmatmul.mubr.bf16.vlgmr.msra.gmra.mrb[36].mxu0 %v9610_v3  ;;  %v8612_v3 = vld [vmem:[#allocation2 + $0x248] ss:$12 sps:$4 sm:$0xff]  }
 0x2cd   : > { %3257 = vmatpush1.bf16.msra.mxu1 %v8606_v34  ;;  %3216 = vmatpush1.bf16.msra.mxu0 %v8607_v56  ;;  %v8640_v34 = vld [vmem:[#allocation2 + $0x318] ss:$12 sps:$4 sm:$0xff]   ;;  %v8641_v56 = vld [vmem:[#allocation2 + $0x334] ss:$12 sps:$4 sm:$0xff]  }
 0x2ce   : > { %3258 = vmatprep.subr.bf16.mxu1 %v9149_v0  ;;  %3217 = vmatprep.subr.bf16.mxu0 %v8608_v58  ;;  %v8642_v58 = vld [vmem:[#allocation2 + $0x338] ss:$12 sps:$4 sm:$0xff]  }
 0x2cf   : > { %7035 = vmatprep.mubr.msk.bf16.mxu1 %vm780_vm0, %v9652_v61  ;;  %7034 = vmatprep.mubr.msk.bf16.mxu0 %vm780_vm0, %v9652_v61  ;;  %v8617_v61 = vld [vmem:[#allocation2 + $0x274] ss:$12 sps:$4 sm:$0xff]  }
 0x2d1   : > { %3259 = vmatpush1.bf16.msra.mxu1 %v8609_v59  ;;  %3218 = vmatpush1.bf16.msra.mxu0 %v8610_v52  ;;  %v8643_v59 = vld [vmem:[#allocation2 + $0x330] ss:$12 sps:$4 sm:$0xff]  }
 0x2d2   : > { %3260 = vmatprep.subr.bf16.mxu1 %v9149_v0  ;;  %3219 = vmatprep.subr.bf16.mxu0 %v8611_v57  ;;  %v8645_v52 = vld [vmem:[#allocation2 + $0x350] ss:$12 sps:$4 sm:$0xff]   ;;  %v8646_v57 = vld [vmem:[#allocation2 + $0x348] ss:$12 sps:$4 sm:$0xff]  }
 0x2d5   : > { %3261 = vmatpush1.bf16.msra.mxu1 %v8612_v3  ;;  %3220 = vmatpush1.bf16.msra.mxu0 %v8613_v60  ;;  %v8647_v3 = vld [vmem:[#allocation2 + $0x364] ss:$12 sps:$4 sm:$0xff]   ;;  %v8648_v60 = vld [vmem:[#allocation2 + $0x368] ss:$12 sps:$4 sm:$0xff]  }
 0x2d6   : > { %3262 = vmatprep.subr.bf16.mxu1 %v9149_v0  ;;  %3221 = vmatprep.subr.bf16.mxu0 %v8614_v62  ;;  %v8649_v62 = vld [vmem:[#allocation2 + $0x360] ss:$12 sps:$4 sm:$0xff]  }
 0x2d9   : > { %3263 = vmatpush1.bf16.msra.mxu1 %v8615_v7  ;;  %3222 = vmatpush1.bf16.msra.mxu0 %v8616_v63  ;;  %v8651_v7 = vld [vmem:[#allocation2 + $0x380] ss:$12 sps:$4 sm:$0xff]   ;;  %v8652_v63 = vld [vmem:[#allocation2 + $0x378] ss:$12 sps:$4 sm:$0xff]  }
 0x2da   : > { %3264 = vmatprep.subr.bf16.mxu1 %v9149_v0  ;;  %3223 = vmatprep.subr.bf16.mxu0 %v8617_v61  ;;  %v8653_v61 = vld [vmem:[#allocation2 + $0x394] ss:$12 sps:$4 sm:$0xff]  }
 0x2dd   : > { %3265 = vmatpush1.bf16.msra.mxu1 %v8618_v30  ;;  %3224 = vmatpush1.bf16.msra.mxu0 %v8619_v1  ;;  %v8654_v30 = vld [vmem:[#allocation2 + $0x398] ss:$12 sps:$4 sm:$0xff]   ;;  %v8655_v1 = vld [vmem:[#allocation2 + $0x390] ss:$12 sps:$4 sm:$0xff]  }
 0x2de   : > { %3266 = vmatprep.subr.bf16.mxu1 %v9149_v0  ;;  %3225 = vmatprep.subr.bf16.mxu0 %v8620_v2  ;;  %v8656_v2 = vld [vmem:[#allocation2 + $0x3ac] ss:$12 sps:$4 sm:$0xff]  }
 0x2e1   : > { %3267 = vmatpush1.bf16.msra.mxu1 %v8621_v4  ;;  %3226 = vmatpush1.bf16.msra.mxu0 %v8622_v5  ;;  %v8657_v4 = vld [vmem:[#allocation2 + $0x3b0] ss:$12 sps:$4 sm:$0xff]   ;;  %v8658_v5 = vld [vmem:[#allocation2 + $0x3a8] ss:$12 sps:$4 sm:$0xff]  }
 0x2e2   : > { %3268 = vmatprep.subr.bf16.mxu1 %v9149_v0  ;;  %3227 = vmatprep.subr.bf16.mxu0 %v8623_v6  ;;  %v8659_v6 = vld [vmem:[#allocation2 + $0x3c4] ss:$12 sps:$4 sm:$0xff]  }
 0x2e5   : > { %3269 = vmatpush1.bf16.msra.mxu1 %v8624_v8  ;;  %3228 = vmatpush1.bf16.msra.mxu0 %v8625_v9  ;;  %v8660_v8 = vld [vmem:[#allocation2 + $0x3c8] ss:$12 sps:$4 sm:$0xff]   ;;  %v8661_v9 = vld [vmem:[#allocation2 + $0x3c0] ss:$12 sps:$4 sm:$0xff]  }
 0x2e6   : > { %3270 = vmatprep.subr.bf16.mxu1 %v9149_v0  ;;  %3229 = vmatprep.subr.bf16.mxu0 %v8626_v11  ;;  %v8662_v11 = vld [vmem:[#allocation2 + $0x3dc] ss:$12 sps:$4 sm:$0xff]  }
 0x2e9   : > { %3271 = vmatpush1.bf16.msra.mxu1 %v8627_v12  ;;  %3230 = vmatpush1.bf16.msra.mxu0 %v8628_v13  ;;  %v8663_v12 = vld [vmem:[#allocation2 + $0x3e0] ss:$12 sps:$4 sm:$0xff]   ;;  %v8664_v13 = vld [vmem:[#allocation2 + $0x3d8] ss:$12 sps:$4 sm:$0xff]  }
 0x2ea   : > { %3272 = vmatprep.subr.bf16.mxu1 %v9149_v0  ;;  %3231 = vmatprep.subr.bf16.mxu0 %v8629_v14 }
 0x2ed   : > { %3273 = vmatpush1.bf16.msra.mxu1 %v8630_v16  ;;  %3232 = vmatpush1.bf16.msra.mxu0 %v8631_v17  ;;  %v8665_v16 = vld [vmem:[#allocation2 + $0x3f4] ss:$12 sps:$4 sm:$0xff]   ;;  %v3392_v17 = vshll.u32 %v9510_v47, 16 }
 0x2ee   : > { %3274 = vmatprep.subr.bf16.mxu1 %v9149_v0  ;;  %3233 = vmatprep.subr.bf16.mxu0 %v8632_v26 }
 0x2ef   : > { %v2386_v23 = vpop.f32.mrb[20].mxu1  ;;  %v2345_v35 = vpop.f32.mrb[20].mxu0 }
 0x2f0   : > { %v9810_v28 = vadd.f32 %v2386_v23, %v9784_v31  ;;  %v2388_v36 = vpop.f32.mrb[21].mxu1  ;;  %v9813_v44 = vadd.f32 %v2345_v35, %v9787_v40  ;;  %v2347_v46 = vpop.f32.mrb[21].mxu0  ;;  %v8635_v31 = vld [vmem:[#allocation2 + $0x304] ss:$12 sps:$4 sm:$0xff]   ;;  %v8637_v40 = vld [vmem:[#allocation2 + $0x300] ss:$12 sps:$4 sm:$0xff]  }
 0x2f1   : > { %v2389_v48 = vpop.f32.mrb[22].mxu1  ;;  %3275 = vmatpush1.bf16.msra.mxu1 %v8633_v51  ;;  %v9816_v41 = vadd.f32 %v2347_v46, %v9790_v29  ;;  %3234 = vmatpush1.bf16.msra.mxu0 %v8634_v27  ;;  %v2349_v53 = vpop.f32.mrb[22].mxu0  ;;  %v8639_v29 = vld [vmem:[#allocation2 + $0x320] ss:$12 sps:$4 sm:$0xff]   ;;  %v8666_v51 = vld [vmem:[#allocation2 + $0x3f8] ss:$12 sps:$4 sm:$0xff]  }
 0x2f2   : > { %v2390_v33 = vpop.f32.mrb[23].mxu1  ;;  %3276 = vmatprep.subr.bf16.mxu1 %v9149_v0  ;;  %3235 = vmatprep.subr.bf16.mxu0 %v8635_v31  ;;  %v2350_v39 = vpop.f32.mrb[23].mxu0  ;;  %v8667_v53 = vld [vmem:[#allocation2 + $0x3f0] ss:$12 sps:$4 sm:$0xff]  }
 0x2f5   : > { %3277 = vmatpush1.bf16.msra.mxu1 %v8636_v32  ;;  %3236 = vmatpush1.bf16.msra.mxu0 %v8637_v40  ;;  %v3390_v32 = vshrl.u32 %v9510_v47, 16  ;;  %v8669_v40 = vld [vmem:[#allocation2 + $0x410] ss:$12 sps:$4 sm:$0xff]  }
 0x2f6   : > { %3340 = vmatprep.subr.bf16.mxu1 %v9149_v0  ;;  %3299 = vmatprep.subr.bf16.mxu0 %v8638_v45  ;;  %v8670_v45 = vld [vmem:[#allocation2 + $0x408] ss:$12 sps:$4 sm:$0xff]  }
 0x2f7   : > { %v8674_v47 = vld [vmem:[#allocation2 + $0x43c] ss:$12 sps:$4 sm:$0xff]  }
 0x2f8   : > { %3289 = vmatmul.mubr.bf16.vlgmr.msra.gmra.mrb[40].mxu1 %v9684_v55  ;;  %3248 = vmatmul.mubr.bf16.vlgmr.msra.gmra.mrb[40].mxu0 %v9684_v55  ;;  %v8644_v55 = vld [vmem:[#allocation2 + $0x34c] ss:$12 sps:$4 sm:$0xff]  }
 0x2f9   : > { %3341 = vmatpush1.bf16.msra.mxu1 %v8639_v29  ;;  %3300 = vmatpush1.bf16.msra.mxu0 %v8640_v34  ;;  %v8672_v34 = vld [vmem:[#allocation2 + $0x428] ss:$12 sps:$4 sm:$0xff]  }
 0x2fa   : > { %3342 = vmatprep.subr.bf16.mxu1 %v9149_v0  ;;  %3301 = vmatprep.subr.bf16.mxu0 %v8641_v56  ;;  %v8673_v56 = vld [vmem:[#allocation2 + $0x420] ss:$12 sps:$4 sm:$0xff]  }
 0x2fb   : > { %7037 = vmatprep.mubr.msk.bf16.mxu1 %vm780_vm0, %v9689_v50  ;;  %7036 = vmatprep.mubr.msk.bf16.mxu0 %vm780_vm0, %v9689_v50  ;;  %v8650_v50 = vld [vmem:[#allocation2 + $0x37c] ss:$12 sps:$4 sm:$0xff]  }
 0x2fd   : > { %3343 = vmatpush1.bf16.msra.mxu1 %v8642_v58  ;;  %3302 = vmatpush1.bf16.msra.mxu0 %v8643_v59  ;;  %v8675_v58 = vld [vmem:[#allocation2 + $0x440] ss:$12 sps:$4 sm:$0xff]   ;;  %v8676_v59 = vld [vmem:[#allocation2 + $0x438] ss:$12 sps:$4 sm:$0xff]  }
 0x2fe   : > { %3344 = vmatprep.subr.bf16.mxu1 %v9149_v0  ;;  %3303 = vmatprep.subr.bf16.mxu0 %v8644_v55  ;;  %v8677_v55 = vld [vmem:[#allocation2 + $0x454] ss:$12 sps:$4 sm:$0xff]  }
 0x301   : > { %3345 = vmatpush1.bf16.msra.mxu1 %v8645_v52  ;;  %3304 = vmatpush1.bf16.msra.mxu0 %v8646_v57  ;;  %v8679_v52 = vld [vmem:[#allocation2 + $0x450] ss:$12 sps:$4 sm:$0xff]   ;;  %v8680_v57 = vld [vmem:[#allocation2 + $0x46c] ss:$12 sps:$4 sm:$0xff]  }
 0x302   : > { %3346 = vmatprep.subr.bf16.mxu1 %v9149_v0  ;;  %3305 = vmatprep.subr.bf16.mxu0 %v8647_v3  ;;  %v8681_v3 = vld [vmem:[#allocation2 + $0x470] ss:$12 sps:$4 sm:$0xff]  }
 0x305   : > { %3347 = vmatpush1.bf16.msra.mxu1 %v8648_v60  ;;  %3306 = vmatpush1.bf16.msra.mxu0 %v8649_v62  ;;  %v8682_v60 = vld [vmem:[#allocation2 + $0x468] ss:$12 sps:$4 sm:$0xff]   ;;  %v8683_v62 = vld [vmem:[#allocation2 + $0x484] ss:$12 sps:$4 sm:$0xff]  }
 0x306   : > { %3348 = vmatprep.subr.bf16.mxu1 %v9149_v0  ;;  %3307 = vmatprep.subr.bf16.mxu0 %v8650_v50  ;;  %v8684_v50 = vld [vmem:[#allocation2 + $0x488] ss:$12 sps:$4 sm:$0xff]  }
 0x309   : > { %3349 = vmatpush1.bf16.msra.mxu1 %v8651_v7  ;;  %3308 = vmatpush1.bf16.msra.mxu0 %v8652_v63  ;;  %v8685_v7 = vld [vmem:[#allocation2 + $0x480] ss:$12 sps:$4 sm:$0xff]   ;;  %v8686_v63 = vld [vmem:[#allocation2 + $0x49c] ss:$12 sps:$4 sm:$0xff]  }
 0x30a   : > { %3350 = vmatprep.subr.bf16.mxu1 %v9149_v0  ;;  %3309 = vmatprep.subr.bf16.mxu0 %v8653_v61  ;;  %v8687_v61 = vld [vmem:[#allocation2 + $0x4a0] ss:$12 sps:$4 sm:$0xff]  }
 0x30d   : > { %3351 = vmatpush1.bf16.msra.mxu1 %v8654_v30  ;;  %3310 = vmatpush1.bf16.msra.mxu0 %v8655_v1  ;;  %v8688_v30 = vld [vmem:[#allocation2 + $0x498] ss:$12 sps:$4 sm:$0xff]   ;;  %v8689_v1 = vld [vmem:[#allocation2 + $0x4b4] ss:$12 sps:$4 sm:$0xff]  }
 0x30e   : > { %3352 = vmatprep.subr.bf16.mxu1 %v9149_v0  ;;  %3311 = vmatprep.subr.bf16.mxu0 %v8656_v2  ;;  %v8690_v2 = vld [vmem:[#allocation2 + $0x4b8] ss:$12 sps:$4 sm:$0xff]  }
 0x311   : > { %3353 = vmatpush1.bf16.msra.mxu1 %v8657_v4  ;;  %3312 = vmatpush1.bf16.msra.mxu0 %v8658_v5  ;;  %v8691_v4 = vld [vmem:[#allocation2 + $0x4b0] ss:$12 sps:$4 sm:$0xff]   ;;  %v8692_v5 = vld [vmem:[#allocation2 + $0x4cc] ss:$12 sps:$4 sm:$0xff]  }
 0x312   : > { %3354 = vmatprep.subr.bf16.mxu1 %v9149_v0  ;;  %3313 = vmatprep.subr.bf16.mxu0 %v8659_v6  ;;  %v8693_v6 = vld [vmem:[#allocation2 + $0x4d0] ss:$12 sps:$4 sm:$0xff]  }
 0x315   : > { %3355 = vmatpush1.bf16.msra.mxu1 %v8660_v8  ;;  %3314 = vmatpush1.bf16.msra.mxu0 %v8661_v9  ;;  %v8694_v8 = vld [vmem:[#allocation2 + $0x4c8] ss:$12 sps:$4 sm:$0xff]   ;;  %v8695_v9 = vld [vmem:[#allocation2 + $0x4e4] ss:$12 sps:$4 sm:$0xff]  }
 0x316   : > { %3356 = vmatprep.subr.bf16.mxu1 %v9149_v0  ;;  %3315 = vmatprep.subr.bf16.mxu0 %v8662_v11  ;;  %v3386_v11 = vshll.u32 %v9526_v10, 16 }
 0x319   : > { %3357 = vmatpush1.bf16.msra.mxu1 %v8663_v12  ;;  %3316 = vmatpush1.bf16.msra.mxu0 %v8664_v13  ;;  %v8696_v12 = vld [vmem:[#allocation2 + $0x4e8] ss:$12 sps:$4 sm:$0xff]   ;;  %v8697_v13 = vld [vmem:[#allocation2 + $0x4e0] ss:$12 sps:$4 sm:$0xff]  }
 0x31a   : > { %3358 = vmatprep.subr.bf16.mxu1 %v9149_v0  ;;  %3317 = vmatprep.subr.bf16.mxu0 %v8665_v16  ;;  %v8698_v16 = vld [vmem:[#allocation2 + $0x4fc] ss:$12 sps:$4 sm:$0xff]  }
 0x31b   : > { %v2702_v14 = vpop.f32.mrb[24].mxu1  ;;  %v2661_v26 = vpop.f32.mrb[24].mxu0 }
 0x31c   : > { %v9837_v23 = vadd.f32 %v2702_v14, %v9810_v28  ;;  %v2704_v35 = vpop.f32.mrb[25].mxu1  ;;  %v9840_v36 = vadd.f32 %v2661_v26, %v9813_v44  ;;  %v2663_v46 = vpop.f32.mrb[25].mxu0  ;;  %v8668_v28 = vld [vmem:[#allocation2 + $0x40c] ss:$12 sps:$4 sm:$0xff]   ;;  %v3394_v44 = vrot.slane %v3392_v17, 1  ;;  %v3493_v17 = vshll.u32 %v9488_v24, 16 }
 0x31d   : > { %v2705_v48 = vpop.f32.mrb[26].mxu1  ;;  %3359 = vmatpush1.bf16.msra.mxu1 %v8666_v51  ;;  %v9843_v33 = vadd.f32 %v2663_v46, %v9816_v41  ;;  %3318 = vmatpush1.bf16.msra.mxu0 %v8667_v53  ;;  %v2665_v31 = vpop.f32.mrb[26].mxu0  ;;  %v8671_v41 = vld [vmem:[#allocation2 + $0x424] ss:$12 sps:$4 sm:$0xff]   ;;  %v3388_v51 = vrot.slane %v3386_v11, 1 }
 0x31e   : > { %v2706_v27 = vpop.f32.mrb[27].mxu1  ;;  %3360 = vmatprep.subr.bf16.mxu1 %v9149_v0  ;;  %3319 = vmatprep.subr.bf16.mxu0 %v8668_v28  ;;  %v2666_v39 = vpop.f32.mrb[27].mxu0  ;;  %v3395_v29 = vor.u32 %v3394_v44, %v3390_v32  ;;  %v3384_v48 = vshrl.u32 %v9526_v10, 16  ;;  %v8699_v28 = vld [vmem:[#allocation2 + $0x500] ss:$12 sps:$4 sm:$0xff]   ;;  %v3491_v10 = vshrl.u32 %v9488_v24, 16 }
 0x31f   : > { %v8700_v44 = vld [vmem:[#allocation2 + $0x4f8] ss:$12 sps:$4 sm:$0xff]  }
 0x320   : > { %v8707_v24 = vld [vmem:[#allocation2 + $0x544] ss:$12 sps:$4 sm:$0xff]   ;;  %v8728_v11 = vld [vmem:[#allocation2 + $0x5ec] ss:$12 sps:$4 sm:$0xff]  }
 0x321   : > { %3361 = vmatpush1.bf16.msra.mxu1 %v8669_v40  ;;  %3320 = vmatpush1.bf16.msra.mxu0 %v8670_v45  ;;  %v8701_v40 = vld [vmem:[#allocation2 + $0x514] ss:$12 sps:$4 sm:$0xff]   ;;  %v3495_v45 = vrot.slane %v3493_v17, 1  ;;  %v8731_v17 = vld [vmem:[#allocation2 + $0x604] ss:$12 sps:$4 sm:$0xff]  }
 0x322   : > { %3441 = vmatprep.subr.bf16.mxu1 %v9149_v0  ;;  %3400 = vmatprep.subr.bf16.mxu0 %v8671_v41  ;;  %v3389_v41 = vor.u32 %v3388_v51, %v3384_v48  ;;  %v3485_v48 = vshrl.u32 %v9498_v37, 16 }
 0x324   : > { %3373 = vmatmul.mubr.bf16.vlgmr.msra.gmra.mrb[44].mxu1 %v9737_v42  ;;  %3332 = vmatmul.mubr.bf16.vlgmr.msra.gmra.mrb[44].mxu0 %v9737_v42  ;;  %v8678_v42 = vld [vmem:[#allocation2 + $0x458] ss:$12 sps:$4 sm:$0xff]  }
 0x325   : > { %3442 = vmatpush1.bf16.msra.mxu1 %v8672_v34  ;;  %3401 = vmatpush1.bf16.msra.mxu0 %v8673_v56  ;;  %v8703_v34 = vld [vmem:[#allocation2 + $0x510] ss:$12 sps:$4 sm:$0xff]   ;;  %v3496_v56 = vor.u32 %v3495_v45, %v3491_v10  ;;  %v3592_v45 = vshrl.u32 %v9534_v15, 16 }
 0x326   : > { %3443 = vmatprep.subr.bf16.mxu1 %v9149_v0  ;;  %3402 = vmatprep.subr.bf16.mxu0 %v8674_v47  ;;  %v8705_v47 = vld [vmem:[#allocation2 + $0x530] ss:$12 sps:$4 sm:$0xff]  }
 0x327   : > { %7039 = vmatprep.mubr.msk.bf16.mxu1 %vm780_vm0, %v3395_v29  ;;  %7038 = vmatprep.mubr.msk.bf16.mxu0 %vm780_vm0, %v3395_v29  ;;  %v8702_v29 = vld [vmem:[#allocation2 + $0x518] ss:$12 sps:$4 sm:$0xff]   ;;  %v8734_v10 = vld [vmem:[#allocation2 + $0x61c] ss:$12 sps:$4 sm:$0xff]  }
 0x329   : > { %3444 = vmatpush1.bf16.msra.mxu1 %v8675_v58  ;;  %3403 = vmatpush1.bf16.msra.mxu0 %v8676_v59  ;;  %v8706_v58 = vld [vmem:[#allocation2 + $0x528] ss:$12 sps:$4 sm:$0xff]  }
 0x32a   : > { %3445 = vmatprep.subr.bf16.mxu1 %v9149_v0  ;;  %3404 = vmatprep.subr.bf16.mxu0 %v8677_v55  ;;  %v8708_v59 = vld [vmem:[#allocation2 + $0x548] ss:$12 sps:$4 sm:$0xff]   ;;  %v8709_v55 = vld [vmem:[#allocation2 + $0x540] ss:$12 sps:$4 sm:$0xff]  }
 0x32d   : > { %3446 = vmatpush1.bf16.msra.mxu1 %v8678_v42  ;;  %3405 = vmatpush1.bf16.msra.mxu0 %v8679_v52  ;;  %v8710_v42 = vld [vmem:[#allocation2 + $0x55c] ss:$12 sps:$4 sm:$0xff]   ;;  %v8711_v52 = vld [vmem:[#allocation2 + $0x560] ss:$12 sps:$4 sm:$0xff]  }
 0x32e   : > { %3447 = vmatprep.subr.bf16.mxu1 %v9149_v0  ;;  %3406 = vmatprep.subr.bf16.mxu0 %v8680_v57  ;;  %v8712_v57 = vld [vmem:[#allocation2 + $0x558] ss:$12 sps:$4 sm:$0xff]  }
 0x331   : > { %3448 = vmatpush1.bf16.msra.mxu1 %v8681_v3  ;;  %3407 = vmatpush1.bf16.msra.mxu0 %v8682_v60  ;;  %v8713_v3 = vld [vmem:[#allocation2 + $0x574] ss:$12 sps:$4 sm:$0xff]   ;;  %v8714_v60 = vld [vmem:[#allocation2 + $0x578] ss:$12 sps:$4 sm:$0xff]  }
 0x332   : > { %3449 = vmatprep.subr.bf16.mxu1 %v9149_v0  ;;  %3408 = vmatprep.subr.bf16.mxu0 %v8683_v62  ;;  %v8715_v62 = vld [vmem:[#allocation2 + $0x570] ss:$12 sps:$4 sm:$0xff]  }
 0x335   : > { %3450 = vmatpush1.bf16.msra.mxu1 %v8684_v50  ;;  %3409 = vmatpush1.bf16.msra.mxu0 %v8685_v7  ;;  %v8716_v50 = vld [vmem:[#allocation2 + $0x58c] ss:$12 sps:$4 sm:$0xff]   ;;  %v8717_v7 = vld [vmem:[#allocation2 + $0x590] ss:$12 sps:$4 sm:$0xff]  }
 0x336   : > { %3451 = vmatprep.subr.bf16.mxu1 %v9149_v0  ;;  %3410 = vmatprep.subr.bf16.mxu0 %v8686_v63  ;;  %v8718_v63 = vld [vmem:[#allocation2 + $0x588] ss:$12 sps:$4 sm:$0xff]  }
 0x339   : > { %3452 = vmatpush1.bf16.msra.mxu1 %v8687_v61  ;;  %3411 = vmatpush1.bf16.msra.mxu0 %v8688_v30  ;;  %v8719_v61 = vld [vmem:[#allocation2 + $0x5a4] ss:$12 sps:$4 sm:$0xff]   ;;  %v8720_v30 = vld [vmem:[#allocation2 + $0x5a8] ss:$12 sps:$4 sm:$0xff]  }
 0x33a   : > { %3453 = vmatprep.subr.bf16.mxu1 %v9149_v0  ;;  %3412 = vmatprep.subr.bf16.mxu0 %v8689_v1  ;;  %v8721_v1 = vld [vmem:[#allocation2 + $0x5a0] ss:$12 sps:$4 sm:$0xff]  }
 0x33d   : > { %3454 = vmatpush1.bf16.msra.mxu1 %v8690_v2  ;;  %3413 = vmatpush1.bf16.msra.mxu0 %v8691_v4  ;;  %v8722_v2 = vld [vmem:[#allocation2 + $0x5bc] ss:$12 sps:$4 sm:$0xff]   ;;  %v8723_v4 = vld [vmem:[#allocation2 + $0x5c0] ss:$12 sps:$4 sm:$0xff]  }
 0x33e   : > { %3455 = vmatprep.subr.bf16.mxu1 %v9149_v0  ;;  %3414 = vmatprep.subr.bf16.mxu0 %v8692_v5  ;;  %v8724_v5 = vld [vmem:[#allocation2 + $0x5b8] ss:$12 sps:$4 sm:$0xff]  }
 0x341   : > { %3456 = vmatpush1.bf16.msra.mxu1 %v8693_v6  ;;  %3415 = vmatpush1.bf16.msra.mxu0 %v8694_v8  ;;  %v8725_v6 = vld [vmem:[#allocation2 + $0x5d4] ss:$12 sps:$4 sm:$0xff]   ;;  %v8726_v8 = vld [vmem:[#allocation2 + $0x5d8] ss:$12 sps:$4 sm:$0xff]  }
 0x342   : > { %3457 = vmatprep.subr.bf16.mxu1 %v9149_v0  ;;  %3416 = vmatprep.subr.bf16.mxu0 %v8695_v9  ;;  %v8727_v9 = vld [vmem:[#allocation2 + $0x5d0] ss:$12 sps:$4 sm:$0xff]  }
 0x345   : > { %3458 = vmatpush1.bf16.msra.mxu1 %v8696_v12  ;;  %3417 = vmatpush1.bf16.msra.mxu0 %v8697_v13  ;;  %v3487_v12 = vshll.u32 %v9498_v37, 16  ;;  %v8729_v13 = vld [vmem:[#allocation2 + $0x5f0] ss:$12 sps:$4 sm:$0xff]  }
 0x346   : > { %3459 = vmatprep.subr.bf16.mxu1 %v9149_v0  ;;  %3418 = vmatprep.subr.bf16.mxu0 %v8698_v16 }
 0x347   : > { %v3018_v14 = vpop.f32.mrb[28].mxu1  ;;  %v2977_v35 = vpop.f32.mrb[28].mxu0  ;;  %v3489_v51 = vrot.slane %v3487_v12, 1  ;;  %v8762_v12 = vld [vmem:[#allocation2 + $0x6f8] ss:$12 sps:$4 sm:$0xff]  }
 0x348   : > { %v9864_v26 = vadd.f32 %v3018_v14, %v9837_v23  ;;  %v3020_v46 = vpop.f32.mrb[29].mxu1  ;;  %v9868_v27 = vadd.f32 %v2977_v35, %v9840_v36  ;;  %v2979_v53 = vpop.f32.mrb[29].mxu0  ;;  %v8730_v14 = vld [vmem:[#allocation2 + $0x5e8] ss:$12 sps:$4 sm:$0xff]   ;;  %v3594_v35 = vshll.u32 %v9534_v15, 16 }
 0x349   : > { %v3021_v31 = vpop.f32.mrb[30].mxu1  ;;  %3460 = vmatpush1.bf16.msra.mxu1 %v8699_v28  ;;  %v9871_v39 = vadd.f32 %v2979_v53, %v9843_v33  ;;  %3419 = vmatpush1.bf16.msra.mxu0 %v8700_v44  ;;  %v2981_v23 = vpop.f32.mrb[30].mxu0  ;;  %v8704_v33 = vld [vmem:[#allocation2 + $0x52c] ss:$12 sps:$4 sm:$0xff]   ;;  %v8732_v28 = vld [vmem:[#allocation2 + $0x608] ss:$12 sps:$4 sm:$0xff]  }
 0x34a   : > { %v3022_v32 = vpop.f32.mrb[31].mxu1  ;;  %3461 = vmatprep.subr.bf16.mxu1 %v9149_v0  ;;  %3420 = vmatprep.subr.bf16.mxu0 %v8701_v40  ;;  %v2982_v36 = vpop.f32.mrb[31].mxu0  ;;  %v8733_v23 = vld [vmem:[#allocation2 + $0x600] ss:$12 sps:$4 sm:$0xff]  }
 0x34b   : > { %v3596_v36 = vrot.slane %v3594_v35, 1  ;;  %v8740_v15 = vld [vmem:[#allocation2 + $0x64c] ss:$12 sps:$4 sm:$0xff]   ;;  %v3695_v35 = vshll.u32 %v9562_v54, 16 }
 0x34d   : > { %3462 = vmatpush1.bf16.msra.mxu1 %v8702_v29  ;;  %3421 = vmatpush1.bf16.msra.mxu0 %v8703_v34  ;;  %v8735_v29 = vld [vmem:[#allocation2 + $0x620] ss:$12 sps:$4 sm:$0xff]   ;;  %v8736_v34 = vld [vmem:[#allocation2 + $0x618] ss:$12 sps:$4 sm:$0xff]  }
 0x34e   : > { %3542 = vmatprep.subr.bf16.mxu1 %v9149_v0  ;;  %3501 = vmatprep.subr.bf16.mxu0 %v8704_v33  ;;  %v8737_v33 = vld [vmem:[#allocation2 + $0x634] ss:$12 sps:$4 sm:$0xff]  }
 0x350   : > { %3474 = vmatmul.mubr.bf16.vlgmr.msra.gmra.mrb[48].mxu1 %v3389_v41  ;;  %3433 = vmatmul.mubr.bf16.vlgmr.msra.gmra.mrb[48].mxu0 %v3389_v41  ;;  %v3490_v41 = vor.u32 %v3489_v51, %v3485_v48  ;;  %v3586_v51 = vshrl.u32 %v9554_v49, 16 }
 0x351   : > { %3543 = vmatpush1.bf16.msra.mxu1 %v8705_v47  ;;  %3502 = vmatpush1.bf16.msra.mxu0 %v8706_v58  ;;  %v8738_v47 = vld [vmem:[#allocation2 + $0x638] ss:$12 sps:$4 sm:$0xff]   ;;  %v8739_v58 = vld [vmem:[#allocation2 + $0x630] ss:$12 sps:$4 sm:$0xff]  }
 0x352   : > { %3544 = vmatprep.subr.bf16.mxu1 %v9149_v0  ;;  %3503 = vmatprep.subr.bf16.mxu0 %v8707_v24  ;;  %v8741_v24 = vld [vmem:[#allocation2 + $0x650] ss:$12 sps:$4 sm:$0xff]  }
 0x353   : > { %7041 = vmatprep.mubr.msk.bf16.mxu1 %vm780_vm0, %v3496_v56  ;;  %7040 = vmatprep.mubr.msk.bf16.mxu0 %vm780_vm0, %v3496_v56  ;;  %v3597_v56 = vor.u32 %v3596_v36, %v3592_v45  ;;  %v8766_v36 = vld [vmem:[#allocation2 + $0x708] ss:$12 sps:$4 sm:$0xff]  }
 0x355   : > { %3545 = vmatpush1.bf16.msra.mxu1 %v8708_v59  ;;  %3504 = vmatpush1.bf16.msra.mxu0 %v8709_v55  ;;  %v8742_v59 = vld [vmem:[#allocation2 + $0x648] ss:$12 sps:$4 sm:$0xff]   ;;  %v8743_v55 = vld [vmem:[#allocation2 + $0x664] ss:$12 sps:$4 sm:$0xff]  }
 0x356   : > { %3546 = vmatprep.subr.bf16.mxu1 %v9149_v0  ;;  %3505 = vmatprep.subr.bf16.mxu0 %v8710_v42  ;;  %v8744_v42 = vld [vmem:[#allocation2 + $0x668] ss:$12 sps:$4 sm:$0xff]  }
 0x359   : > { %3547 = vmatpush1.bf16.msra.mxu1 %v8711_v52  ;;  %3506 = vmatpush1.bf16.msra.mxu0 %v8712_v57  ;;  %v8745_v52 = vld [vmem:[#allocation2 + $0x660] ss:$12 sps:$4 sm:$0xff]   ;;  %v8746_v57 = vld [vmem:[#allocation2 + $0x67c] ss:$12 sps:$4 sm:$0xff]  }
 0x35a   : > { %3548 = vmatprep.subr.bf16.mxu1 %v9149_v0  ;;  %3507 = vmatprep.subr.bf16.mxu0 %v8713_v3  ;;  %v8747_v3 = vld [vmem:[#allocation2 + $0x680] ss:$12 sps:$4 sm:$0xff]  }
 0x35d   : > { %3549 = vmatpush1.bf16.msra.mxu1 %v8714_v60  ;;  %3508 = vmatpush1.bf16.msra.mxu0 %v8715_v62  ;;  %v8748_v60 = vld [vmem:[#allocation2 + $0x678] ss:$12 sps:$4 sm:$0xff]   ;;  %v8749_v62 = vld [vmem:[#allocation2 + $0x694] ss:$12 sps:$4 sm:$0xff]  }
 0x35e   : > { %3550 = vmatprep.subr.bf16.mxu1 %v9149_v0  ;;  %3509 = vmatprep.subr.bf16.mxu0 %v8716_v50  ;;  %v8750_v50 = vld [vmem:[#allocation2 + $0x698] ss:$12 sps:$4 sm:$0xff]  }
 0x361   : > { %3551 = vmatpush1.bf16.msra.mxu1 %v8717_v7  ;;  %3510 = vmatpush1.bf16.msra.mxu0 %v8718_v63  ;;  %v8751_v7 = vld [vmem:[#allocation2 + $0x690] ss:$12 sps:$4 sm:$0xff]   ;;  %v8752_v63 = vld [vmem:[#allocation2 + $0x6ac] ss:$12 sps:$4 sm:$0xff]  }
 0x362   : > { %3552 = vmatprep.subr.bf16.mxu1 %v9149_v0  ;;  %3511 = vmatprep.subr.bf16.mxu0 %v8719_v61  ;;  %v8753_v61 = vld [vmem:[#allocation2 + $0x6b0] ss:$12 sps:$4 sm:$0xff]  }
 0x365   : > { %3553 = vmatpush1.bf16.msra.mxu1 %v8720_v30  ;;  %3512 = vmatpush1.bf16.msra.mxu0 %v8721_v1  ;;  %v8754_v30 = vld [vmem:[#allocation2 + $0x6a8] ss:$12 sps:$4 sm:$0xff]   ;;  %v8755_v1 = vld [vmem:[#allocation2 + $0x6c4] ss:$12 sps:$4 sm:$0xff]  }
 0x366   : > { %3554 = vmatprep.subr.bf16.mxu1 %v9149_v0  ;;  %3513 = vmatprep.subr.bf16.mxu0 %v8722_v2  ;;  %v8756_v2 = vld [vmem:[#allocation2 + $0x6c8] ss:$12 sps:$4 sm:$0xff]  }
 0x369   : > { %3555 = vmatpush1.bf16.msra.mxu1 %v8723_v4  ;;  %3514 = vmatpush1.bf16.msra.mxu0 %v8724_v5  ;;  %v8757_v4 = vld [vmem:[#allocation2 + $0x6c0] ss:$12 sps:$4 sm:$0xff]   ;;  %v8758_v5 = vld [vmem:[#allocation2 + $0x6dc] ss:$12 sps:$4 sm:$0xff]  }
 0x36a   : > { %3556 = vmatprep.subr.bf16.mxu1 %v9149_v0  ;;  %3515 = vmatprep.subr.bf16.mxu0 %v8725_v6  ;;  %v8759_v6 = vld [vmem:[#allocation2 + $0x6e0] ss:$12 sps:$4 sm:$0xff]  }
 0x36d   : > { %3557 = vmatpush1.bf16.msra.mxu1 %v8726_v8  ;;  %3516 = vmatpush1.bf16.msra.mxu0 %v8727_v9  ;;  %v8760_v8 = vld [vmem:[#allocation2 + $0x6d8] ss:$12 sps:$4 sm:$0xff]   ;;  %v8761_v9 = vld [vmem:[#allocation2 + $0x6f4] ss:$12 sps:$4 sm:$0xff]  }
 0x36e   : > { %3558 = vmatprep.subr.bf16.mxu1 %v9149_v0  ;;  %3517 = vmatprep.subr.bf16.mxu0 %v8728_v11  ;;  %v3588_v11 = vshll.u32 %v9554_v49, 16 }
 0x371   : > { %3559 = vmatpush1.bf16.msra.mxu1 %v8729_v13  ;;  %3518 = vmatpush1.bf16.msra.mxu0 %v8730_v14  ;;  %v8763_v13 = vld [vmem:[#allocation2 + $0x6f0] ss:$12 sps:$4 sm:$0xff]  }
 0x372   : > { %3560 = vmatprep.subr.bf16.mxu1 %v9149_v0  ;;  %3519 = vmatprep.subr.bf16.mxu0 %v8731_v17  ;;  %v8764_v17 = vld [vmem:[#allocation2 + $0x70c] ss:$12 sps:$4 sm:$0xff]  }
 0x373   : > { %v9888_v16 = vpop.f32.mrb[32].mxu1  ;;  %v9892_v53 = vpop.f32.mrb[32].mxu0 }
 0x374   : > { %v3130_v46 = vpop.f32.mrb[33].mxu1  ;;  %v9894_v32 = vpop.f32.mrb[33].mxu0 }
 0x375   : > { %v3131_v31 = vpop.f32.mrb[34].mxu1  ;;  %3561 = vmatpush1.bf16.msra.mxu1 %v8732_v28  ;;  %3520 = vmatpush1.bf16.msra.mxu0 %v8733_v23  ;;  %v3091_v40 = vpop.f32.mrb[34].mxu0  ;;  %v8765_v23 = vld [vmem:[#allocation2 + $0x710] ss:$12 sps:$4 sm:$0xff]  }
 0x376   : > { %v3132_v44 = vpop.f32.mrb[35].mxu1  ;;  %3562 = vmatprep.subr.bf16.mxu1 %v9149_v0  ;;  %3521 = vmatprep.subr.bf16.mxu0 %v8734_v10  ;;  %v3092_v37 = vpop.f32.mrb[35].mxu0  ;;  %v3590_v31 = vrot.slane %v3588_v11, 1 }
 0x379   : > { %3563 = vmatpush1.bf16.msra.mxu1 %v8735_v29  ;;  %3522 = vmatpush1.bf16.msra.mxu0 %v8736_v34  ;;  %v3693_v29 = vshrl.u32 %v9562_v54, 16  ;;  %v3697_v34 = vrot.slane %v3695_v35, 1  ;;  %v8773_v54 = vld [vmem:[#allocation2 + $0x754] ss:$12 sps:$4 sm:$0xff]  }
 0x37a   : > { %3643 = vmatprep.subr.bf16.mxu1 %v9149_v0  ;;  %3602 = vmatprep.subr.bf16.mxu0 %v8737_v33  ;;  %v3591_v33 = vor.u32 %v3590_v31, %v3586_v51  ;;  %v8794_v51 = vld [vmem:[#allocation2 + $0x810] ss:$12 sps:$4 sm:$0xff]  }
 0x37c   : > { %3575 = vmatmul.mubr.bf16.vlgmr.msra.gmra.mrb[52].mxu1 %v3490_v41  ;;  %3534 = vmatmul.mubr.bf16.vlgmr.msra.gmra.mrb[52].mxu0 %v3490_v41  ;;  %v8767_v41 = vld [vmem:[#allocation2 + $0x724] ss:$12 sps:$4 sm:$0xff]  }
 0x37d   : > { %3644 = vmatpush1.bf16.msra.mxu1 %v8738_v47  ;;  %3603 = vmatpush1.bf16.msra.mxu0 %v8739_v58  ;;  %v8770_v47 = vld [vmem:[#allocation2 + $0x73c] ss:$12 sps:$4 sm:$0xff]   ;;  %v3698_v58 = vor.u32 %v3697_v34, %v3693_v29 }
 0x37e   : > { %3645 = vmatprep.subr.bf16.mxu1 %v9149_v0  ;;  %3604 = vmatprep.subr.bf16.mxu0 %v8740_v15  ;;  %v8772_v15 = vld [vmem:[#allocation2 + $0x738] ss:$12 sps:$4 sm:$0xff]  }
 0x37f   : > { %7043 = vmatprep.mubr.msk.bf16.mxu1 %vm780_vm0, %v3597_v56  ;;  %7042 = vmatprep.mubr.msk.bf16.mxu0 %vm780_vm0, %v3597_v56  ;;  %v8768_v56 = vld [vmem:[#allocation2 + $0x728] ss:$12 sps:$4 sm:$0xff]  }
 0x381   : > { %3646 = vmatpush1.bf16.msra.mxu1 %v8741_v24  ;;  %3605 = vmatpush1.bf16.msra.mxu0 %v8742_v59  ;;  %v8774_v24 = vld [vmem:[#allocation2 + $0x758] ss:$12 sps:$4 sm:$0xff]   ;;  %v8775_v59 = vld [vmem:[#allocation2 + $0x750] ss:$12 sps:$4 sm:$0xff]  }
 0x382   : > { %3647 = vmatprep.subr.bf16.mxu1 %v9149_v0  ;;  %3606 = vmatprep.subr.bf16.mxu0 %v8743_v55  ;;  %v8776_v55 = vld [vmem:[#allocation2 + $0x76c] ss:$12 sps:$4 sm:$0xff]  }
 0x385   : > { %3648 = vmatpush1.bf16.msra.mxu1 %v8744_v42  ;;  %3607 = vmatpush1.bf16.msra.mxu0 %v8745_v52  ;;  %v8777_v42 = vld [vmem:[#allocation2 + $0x770] ss:$12 sps:$4 sm:$0xff]   ;;  %v8778_v52 = vld [vmem:[#allocation2 + $0x768] ss:$12 sps:$4 sm:$0xff]  }
 0x386   : > { %3649 = vmatprep.subr.bf16.mxu1 %v9149_v0  ;;  %3608 = vmatprep.subr.bf16.mxu0 %v8746_v57  ;;  %v8779_v57 = vld [vmem:[#allocation2 + $0x784] ss:$12 sps:$4 sm:$0xff]  }
 0x389   : > { %3650 = vmatpush1.bf16.msra.mxu1 %v8747_v3  ;;  %3609 = vmatpush1.bf16.msra.mxu0 %v8748_v60  ;;  %v8780_v3 = vld [vmem:[#allocation2 + $0x788] ss:$12 sps:$4 sm:$0xff]   ;;  %v8781_v60 = vld [vmem:[#allocation2 + $0x780] ss:$12 sps:$4 sm:$0xff]  }
 0x38a   : > { %3651 = vmatprep.subr.bf16.mxu1 %v9149_v0  ;;  %3610 = vmatprep.subr.bf16.mxu0 %v8749_v62  ;;  %v8782_v62 = vld [vmem:[#allocation2 + $0x79c] ss:$12 sps:$4 sm:$0xff]  }
 0x38d   : > { %3652 = vmatpush1.bf16.msra.mxu1 %v8750_v50  ;;  %3611 = vmatpush1.bf16.msra.mxu0 %v8751_v7  ;;  %v8783_v50 = vld [vmem:[#allocation2 + $0x7a0] ss:$12 sps:$4 sm:$0xff]   ;;  %v8784_v7 = vld [vmem:[#allocation2 + $0x798] ss:$12 sps:$4 sm:$0xff]  }
 0x38e   : > { %3653 = vmatprep.subr.bf16.mxu1 %v9149_v0  ;;  %3612 = vmatprep.subr.bf16.mxu0 %v8752_v63  ;;  %v8785_v63 = vld [vmem:[#allocation2 + $0x7b4] ss:$12 sps:$4 sm:$0xff]  }
 0x391   : > { %3654 = vmatpush1.bf16.msra.mxu1 %v8753_v61  ;;  %3613 = vmatpush1.bf16.msra.mxu0 %v8754_v30  ;;  %v8786_v61 = vld [vmem:[#allocation2 + $0x7b8] ss:$12 sps:$4 sm:$0xff]   ;;  %v8787_v30 = vld [vmem:[#allocation2 + $0x7b0] ss:$12 sps:$4 sm:$0xff]  }
 0x392   : > { %3655 = vmatprep.subr.bf16.mxu1 %v9149_v0  ;;  %3614 = vmatprep.subr.bf16.mxu0 %v8755_v1  ;;  %v8788_v1 = vld [vmem:[#allocation2 + $0x7cc] ss:$12 sps:$4 sm:$0xff]  }
 0x395   : > { %3656 = vmatpush1.bf16.msra.mxu1 %v8756_v2  ;;  %3615 = vmatpush1.bf16.msra.mxu0 %v8757_v4  ;;  %v8789_v2 = vld [vmem:[#allocation2 + $0x7d0] ss:$12 sps:$4 sm:$0xff]   ;;  %v8790_v4 = vld [vmem:[#allocation2 + $0x7c8] ss:$12 sps:$4 sm:$0xff]  }
 0x396   : > { %3657 = vmatprep.subr.bf16.mxu1 %v9149_v0  ;;  %3616 = vmatprep.subr.bf16.mxu0 %v8758_v5  ;;  %v8791_v5 = vld [vmem:[#allocation2 + $0x7e4] ss:$12 sps:$4 sm:$0xff]  }
 0x399   : > { %3658 = vmatpush1.bf16.msra.mxu1 %v8759_v6  ;;  %3617 = vmatpush1.bf16.msra.mxu0 %v8760_v8  ;;  %v8792_v6 = vld [vmem:[#allocation2 + $0x7e8] ss:$12 sps:$4 sm:$0xff]   ;;  %v3689_v8 = vshll.u32 %v9582_v25, 16 }
 0x39a   : > { %3659 = vmatprep.subr.bf16.mxu1 %v9149_v0  ;;  %3618 = vmatprep.subr.bf16.mxu0 %v8761_v9 }
 0x39d   : > { %3660 = vmatpush1.bf16.msra.mxu1 %v8762_v12  ;;  %3619 = vmatpush1.bf16.msra.mxu0 %v8763_v13 }
 0x39e   : > { %3661 = vmatprep.subr.bf16.mxu1 %v9149_v0  ;;  %3620 = vmatprep.subr.bf16.mxu0 %v8764_v17 }
 0x39f   : > { %v3209_v14 = vpop.f32.mrb[36].mxu1  ;;  %v3168_v28 = vpop.f32.mrb[36].mxu0 }
 0x3a0   : > { %v9913_v46 = vadd.f32 %v3209_v14, %v9888_v16  ;;  %v3211_v48 = vpop.f32.mrb[37].mxu1  ;;  %v9917_v40 = vadd.f32 %v3168_v28, %v9892_v53  ;;  %v3170_v10 = vpop.f32.mrb[37].mxu0  ;;  %v8769_v53 = vld [vmem:[#allocation2 + $0x720] ss:$12 sps:$4 sm:$0xff]   ;;  %v3691_v14 = vrot.slane %v3689_v8, 1 }
 0x3a1   : > { %v3212_v44 = vpop.f32.mrb[38].mxu1  ;;  %3662 = vmatpush1.bf16.msra.mxu1 %v8765_v23  ;;  %3621 = vmatpush1.bf16.msra.mxu0 %v8766_v36  ;;  %v9921_v16 = vadd.f32 %v3170_v10, %v9894_v32  ;;  %v3172_v37 = vpop.f32.mrb[38].mxu0  ;;  %v8771_v32 = vld [vmem:[#allocation2 + $0x740] ss:$12 sps:$4 sm:$0xff]   ;;  %v8793_v48 = vld [vmem:[#allocation2 + $0x818] ss:$12 sps:$4 sm:$0xff]  }
 0x3a2   : > { %v3213_v45 = vpop.f32.mrb[39].mxu1  ;;  %3663 = vmatprep.subr.bf16.mxu1 %v9149_v0  ;;  %3622 = vmatprep.subr.bf16.mxu0 %v8767_v41  ;;  %v3173_v49 = vpop.f32.mrb[39].mxu0  ;;  %v8157_v44 = vld [vmem:[%s10546_s3 + $0x144] ss:$8 sps:$4 sm:$0xff]   ;;  %v8160_v23 = vld [vmem:[%s10546_s3 + $0x154] ss:$8 sps:$4 sm:$0xff]  }
 0x3a5   : > { %3664 = vmatpush1.bf16.msra.mxu1 %v8768_v56  ;;  %3623 = vmatpush1.bf16.msra.mxu0 %v8769_v53  ;;  %v8166_v53 = vld [vmem:[%s10546_s3 + $0x174] ss:$8 sps:$4 sm:$0xff]  }
 0x3a6   : > { %3744 = vmatprep.subr.bf16.mxu1 %v9149_v0  ;;  %3703 = vmatprep.subr.bf16.mxu0 %v8770_v47  ;;  %v8164_v47 = vld [vmem:[%s10546_s3 + $0x170] ss:$8 sps:$4 sm:$0xff]  }
 0x3a8   : > { %3676 = vmatmul.mubr.bf16.vlgmr.msra.gmra.mrb[56].mxu1 %v3591_v33  ;;  %3635 = vmatmul.mubr.bf16.vlgmr.msra.gmra.mrb[56].mxu0 %v3591_v33 }
 0x3a9   : > { %3745 = vmatpush1.bf16.msra.mxu1 %v8771_v32  ;;  %3704 = vmatpush1.bf16.msra.mxu0 %v8772_v15  ;;  %v8167_v32 = vld [vmem:[%s10546_s3 + $0x180] ss:$8 sps:$4 sm:$0xff]   ;;  %v8172_v15 = vld [vmem:[%s10546_s3 + $0x194] ss:$8 sps:$4 sm:$0xff]  }
 0x3aa   : > { %3746 = vmatprep.subr.bf16.mxu1 %v9149_v0  ;;  %3705 = vmatprep.subr.bf16.mxu0 %v8773_v54  ;;  %v8170_v54 = vld [vmem:[%s10546_s3 + $0x190] ss:$8 sps:$4 sm:$0xff]  }
 0x3ab   : > { %7045 = vmatprep.mubr.msk.bf16.mxu1 %vm780_vm0, %v3698_v58  ;;  %7044 = vmatprep.mubr.msk.bf16.mxu0 %vm780_vm0, %v3698_v58  ;;  %v8169_v58 = vld [vmem:[%s10546_s3 + $0x184] ss:$8 sps:$4 sm:$0xff]  }
 0x3ad   : > { %3747 = vmatpush1.bf16.msra.mxu1 %v8774_v24  ;;  %3706 = vmatpush1.bf16.msra.mxu0 %v8775_v59  ;;  %v8191_v24 = vld [vmem:[%s10546_s3 + $0x240] ss:$8 sps:$4 sm:$0xff]   ;;  %v8193_v59 = vld [vmem:[%s10546_s3 + $0x244] ss:$8 sps:$4 sm:$0xff]  }
 0x3ae   : > { %3748 = vmatprep.subr.bf16.mxu1 %v9149_v0  ;;  %3707 = vmatprep.subr.bf16.mxu0 %v8776_v55  ;;  %v8175_v55 = vld [vmem:[%s10546_s3 + $0x1a4] ss:$8 sps:$4 sm:$0xff]  }
 0x3b1   : > { %3749 = vmatpush1.bf16.msra.mxu1 %v8777_v42  ;;  %3708 = vmatpush1.bf16.msra.mxu0 %v8778_v52  ;;  %v8199_v42 = vld [vmem:[%s10546_s3 + $0x254] ss:$8 sps:$4 sm:$0xff]   ;;  %v8197_v52 = vld [vmem:[%s10546_s3 + $0x250] ss:$8 sps:$4 sm:$0xff]  }
 0x3b2   : > { %3750 = vmatprep.subr.bf16.mxu1 %v9149_v0  ;;  %3709 = vmatprep.subr.bf16.mxu0 %v8779_v57  ;;  %v8173_v57 = vld [vmem:[%s10546_s3 + $0x1a0] ss:$8 sps:$4 sm:$0xff]  }
 0x3b5   : > { %3751 = vmatpush1.bf16.msra.mxu1 %v8780_v3  ;;  %3710 = vmatpush1.bf16.msra.mxu0 %v8781_v60  ;;  %v8178_v3 = vld [vmem:[%s10546_s3 + $0x1b4] ss:$8 sps:$4 sm:$0xff]   ;;  %v8176_v60 = vld [vmem:[%s10546_s3 + $0x1b0] ss:$8 sps:$4 sm:$0xff]  }
 0x3b6   : > { %3752 = vmatprep.subr.bf16.mxu1 %v9149_v0  ;;  %3711 = vmatprep.subr.bf16.mxu0 %v8782_v62  ;;  %v8181_v62 = vld [vmem:[%s10546_s3 + $0x1c4] ss:$8 sps:$4 sm:$0xff]  }
 0x3b9   : > { %3753 = vmatpush1.bf16.msra.mxu1 %v8783_v50  ;;  %3712 = vmatpush1.bf16.msra.mxu0 %v8784_v7  ;;  %v8179_v50 = vld [vmem:[%s10546_s3 + $0x1c0] ss:$8 sps:$4 sm:$0xff]   ;;  %v8184_v7 = vld [vmem:[%s10546_s3 + $0x1d4] ss:$8 sps:$4 sm:$0xff]  }
 0x3ba   : > { %3754 = vmatprep.subr.bf16.mxu1 %v9149_v0  ;;  %3713 = vmatprep.subr.bf16.mxu0 %v8785_v63  ;;  %v8182_v63 = vld [vmem:[%s10546_s3 + $0x1d0] ss:$8 sps:$4 sm:$0xff]  }
 0x3bd   : > { %3755 = vmatpush1.bf16.msra.mxu1 %v8786_v61  ;;  %3714 = vmatpush1.bf16.msra.mxu0 %v8787_v30  ;;  %v8187_v61 = vld [vmem:[%s10546_s3 + $0x1e4] ss:$8 sps:$4 sm:$0xff]   ;;  %v8185_v30 = vld [vmem:[%s10546_s3 + $0x1e0] ss:$8 sps:$4 sm:$0xff]  }
 0x3be   : > { %3756 = vmatprep.subr.bf16.mxu1 %v9149_v0  ;;  %3715 = vmatprep.subr.bf16.mxu0 %v8788_v1  ;;  %v8190_v1 = vld [vmem:[%s10546_s3 + $0x1f4] ss:$8 sps:$4 sm:$0xff]  }
 0x3c1   : > { %3757 = vmatpush1.bf16.msra.mxu1 %v8789_v2  ;;  %3716 = vmatpush1.bf16.msra.mxu0 %v8790_v4  ;;  %v8188_v2 = vld [vmem:[%s10546_s3 + $0x1f0] ss:$8 sps:$4 sm:$0xff]   ;;  %v8196_v4 = vld [vmem:[%s10546_s3 + $0x204] ss:$8 sps:$4 sm:$0xff]  }
 0x3c2   : > { %3758 = vmatprep.subr.bf16.mxu1 %v9149_v0  ;;  %3717 = vmatprep.subr.bf16.mxu0 %v8791_v5  ;;  %v8194_v5 = vld [vmem:[%s10546_s3 + $0x200] ss:$8 sps:$4 sm:$0xff]  }
 0x3c5   : > { %3759 = vmatpush1.bf16.msra.mxu1 %v8792_v6  ;;  %3718 = vmatpush1.bf16.msra.mxu0 %v9704_v18  ;;  %v3687_v18 = vshrl.u32 %v9582_v25, 16  ;;  %v8155_v25 = vld [vmem:[%s10546_s3 + $0x140] ss:$8 sps:$4 sm:$0xff]   ;;  %v8202_v6 = vld [vmem:[%s10546_s3 + $0x214] ss:$8 sps:$4 sm:$0xff]  }
 0x3c6   : > { %3760 = vmatprep.subr.bf16.mxu1 %v9149_v0  ;;  %3719 = vmatprep.subr.bf16.mxu0 %v9706_v19 }
 0x3c7   : > { %v3692_v28 = vor.u32 %v3691_v14, %v3687_v18 }
 0x3c9   : > { %3761 = vmatpush1.bf16.msra.mxu1 %v9708_v20  ;;  %3720 = vmatpush1.bf16.msra.mxu0 %v9712_v21 }
 0x3ca   : > { %3762 = vmatprep.subr.bf16.mxu1 %v9149_v0  ;;  %3721 = vmatprep.subr.bf16.mxu0 %v9715_v22 }
 0x3cb   : > { %v3290_v9 = vpop.f32.mrb[40].mxu1  ;;  %v3249_v12 = vpop.f32.mrb[40].mxu0 }
 0x3cc   : > { %v3298_v11 = vadd.f32 %v3290_v9, %v9913_v46  ;;  %v3292_v13 = vpop.f32.mrb[41].mxu1  ;;  %v3296_v19 = vadd.f32 %v3249_v12, %v9917_v40  ;;  %v3251_v17 = vpop.f32.mrb[41].mxu0  ;;  %v8795_v46 = vld [vmem:[#allocation2 + $0x82c] ss:$12 sps:$4 sm:$0xff]   ;;  %v8161_v40 = vld [vmem:[%s10546_s3 + $0x160] ss:$8 sps:$4 sm:$0xff]  }
 0x3cd   : > { %v3293_v35 = vpop.f32.mrb[42].mxu1  ;;  %3763 = vmatpush1.bf16.msra.mxu1 %v8793_v48  ;;  %v3297_v20 = vadd.f32 %v3251_v17, %v9921_v16  ;;  %3722 = vmatpush1.bf16.msra.mxu0 %v8794_v51  ;;  %v3253_v22 = vpop.f32.mrb[42].mxu0  ;;  %v8200_v9 = vld [vmem:[%s10546_s3 + $0x210] ss:$8 sps:$4 sm:$0xff]   ;;  %v8205_v17 = vld [vmem:[%s10546_s3 + $0x264] ss:$8 sps:$4 sm:$0xff]  }
 0x3ce   : > { %v3294_v21 = vpop.f32.mrb[43].mxu1  ;;  %3764 = vmatprep.subr.bf16.mxu1 %v9149_v0  ;;  %3723 = vmatprep.subr.bf16.mxu0 %v8795_v46  ;;  %v3254_v31 = vpop.f32.mrb[43].mxu0  ;;  %v8208_v22 = vld [vmem:[%s10546_s3 + $0x224] ss:$8 sps:$4 sm:$0xff]   ;;  %v8206_v46 = vld [vmem:[%s10546_s3 + $0x220] ss:$8 sps:$4 sm:$0xff]  }
 0x3cf   : > { %v8203_v21 = vld [vmem:[%s10546_s3 + $0x260] ss:$8 sps:$4 sm:$0xff]   ;;  %v8211_v31 = vld [vmem:[%s10546_s3 + $0x274] ss:$8 sps:$4 sm:$0xff]  }
 0x3d1   : > { %3765 = vmatpush1.bf16.msra.mxu1 %v9727_v38  ;;  %3724 = vmatpush1.bf16.msra.mxu0 %v9733_v43  ;;  %v8158_v38 = vld [vmem:[%s10546_s3 + $0x150] ss:$8 sps:$4 sm:$0xff]   ;;  %v8163_v43 = vld [vmem:[%s10546_s3 + $0x164] ss:$8 sps:$4 sm:$0xff]  }
 0x3d2   : > { %4081 = vmatprep.subr.bf16.mxu0 %v8157_v44  ;;  %4122 = vmatprep.subr.bf16.mxu1 %v8193_v59  ;;  %v8212_v44 = vld [vmem:[%s10546_s3 + $0x230] ss:$8 sps:$4 sm:$0xff]  }
 0x3d4   : > { %3777 = vmatmul.mubr.bf16.vlgmr.msra.gmra.mrb[60].mxu1 %v3692_v28  ;;  %3736 = vmatmul.mubr.bf16.vlgmr.msra.gmra.mrb[60].mxu0 %v3692_v28  ;;  %v8209_v28 = vld [vmem:[%s10546_s3 + $0x270] ss:$8 sps:$4 sm:$0xff]  }
 0x3d5   : > { %4154 = vmatprep.mubr.bf16.mxu1 %v9149_v0  ;;  %4082 = vmatpush1.bf16.msra.mxu0 %v8155_v25  ;;  %v8214_v25 = vld [vmem:[%s10546_s3 + $0x234] ss:$8 sps:$4 sm:$0xff]  }
 0x3d6   : > { %4083 = vmatprep.subr.bf16.mxu0 %v8160_v23  ;;  %4123 = vmatpush1.bf16.msra.mxu1 %v8191_v24  ;;  %v8217_v23 = vld [vmem:[%s10546_s3 + $0x4] ss:$8 sps:$4 sm:$0xff]  }
 0x3d7   : > { %4124 = vmatprep.subr.bf16.mxu1 %v8199_v42  ;;  %v3029_v42 = vlaneseq }
 0x3d9   : > { %4084 = vmatpush1.bf16.msra.mxu0 %v8158_v38  ;;  %v8220_v38 = vld [vmem:[%s10546_s3 + $0x284] ss:$8 sps:$4 sm:$0xff]  }
 0x3da   : > { %4085 = vmatprep.subr.bf16.mxu0 %v8163_v43  ;;  %4125 = vmatpush1.bf16.msra.mxu1 %v8197_v52  ;;  %v10079_v52 = vshrl.u32 %v3029_v42, 7  ;;  %v8259_v42 = vld [vmem:[%s10546_s3 + $0x74] ss:$8 sps:$4 sm:$0xff]  }
 0x3db   : > { %4126 = vmatprep.subr.bf16.mxu1 %v8205_v17 }
 0x3dd   : > { %4086 = vmatpush1.bf16.msra.mxu0 %v8161_v40 }
 0x3de   : > { %4087 = vmatprep.subr.bf16.mxu0 %v8166_v53  ;;  %4127 = vmatpush1.bf16.msra.mxu1 %v8203_v21  ;;  %v8215_v21 = vld [vmem:[%s10546_s3] ss:$8 sps:$4 sm:$0xff]  }
 0x3df   : > { %4128 = vmatprep.subr.bf16.mxu1 %v8211_v31 }
 0x3e1   : > { %4088 = vmatpush1.bf16.msra.mxu0 %v8164_v47 }
 0x3e2   : > { %4089 = vmatprep.subr.bf16.mxu0 %v8169_v58  ;;  %4129 = vmatpush1.bf16.msra.mxu1 %v8209_v28 }
 0x3e3   : > { %4366 = vmatprep.subr.bf16.mxu1 %v8217_v23 }
 0x3e5   : > { %4090 = vmatpush1.bf16.msra.mxu0 %v8167_v32 }
 0x3e6   : > { %4091 = vmatprep.subr.bf16.mxu0 %v8172_v15 }
 0x3e9   : > { %4092 = vmatpush1.bf16.msra.mxu0 %v8170_v54 }
 0x3ea   : > { %4093 = vmatprep.subr.bf16.mxu0 %v8175_v55 }
 0x3ed   : > { %4094 = vmatpush1.bf16.msra.mxu0 %v8173_v57  ;;  %v10082_v57 = vsub.s32 1, %v10079_v52 }
 0x3ee   : > { %4095 = vmatprep.subr.bf16.mxu0 %v8178_v3  ;;  %v3027_v3 = vld [vmem:[#allocation5] sm:$0x7] }
 0x3f1   : > { %4096 = vmatpush1.bf16.msra.mxu0 %v8176_v60  ;;  %v3036_v60 = vrot.slane %v3027_v3, %v10082_v57 }
 0x3f2   : > { %4097 = vmatprep.subr.bf16.mxu0 %v8181_v62 }
 0x3f3   : > { %v3045_v62 = vadd.f32 %v3036_v60, %v9871_v39 }
 0x3f5   : > { %4098 = vmatpush1.bf16.msra.mxu0 %v8179_v50  ;;  %v3048_v50 = vmax.f32 %v3045_v62, 0.0  ;;  %v8262_v62 = vld [vmem:[%s10546_s3 + $0x2f4] ss:$8 sps:$4 sm:$0xff]  }
 0x3f6   : > { %4099 = vmatprep.subr.bf16.mxu0 %v8184_v7  ;;  %v3039_v7 = vsub.s32 2, %v10079_v52 }
 0x3f7   : > { %v3374_v10 = vpop.f32.mrb[44].mxu1  ;;  %v3333_v36 = vpop.f32.mrb[44].mxu0 }
 0x3f8   : > { %v3382_v45 = vadd.f32 %v3374_v10, %v3298_v11  ;;  %v3376_v16 = vpop.f32.mrb[45].mxu1  ;;  %v3380_v37 = vadd.f32 %v3333_v36, %v3296_v19  ;;  %v3335_v41 = vpop.f32.mrb[45].mxu0 }
 0x3f9   : > { %v3377_v49 = vpop.f32.mrb[46].mxu1  ;;  %v9968_v29 = vadd.f32 %v3335_v41, %v3297_v20  ;;  %v3337_v33 = vpop.f32.mrb[46].mxu0  ;;  %4100 = vmatpush1.bf16.msra.mxu0 %v8182_v63  ;;  %v10088_v63 = vsub.s32 0, %v10079_v52 }
 0x3fa   : > { %v3378_v34 = vpop.f32.mrb[47].mxu1  ;;  %v3338_v56 = vpop.f32.mrb[47].mxu0  ;;  %4101 = vmatprep.subr.bf16.mxu0 %v8187_v61  ;;  %v3051_v61 = vpack.c.bf16 %v3048_v50, %v3048_v50  ;;  %v8265_v50 = vld [vmem:[%s10546_s3 + $0x84] ss:$8 sps:$4 sm:$0xff]  }
 0x3fd   : > { %4102 = vmatpush1.bf16.msra.mxu0 %v8185_v30 }
 0x3fe   : > { %4103 = vmatprep.subr.bf16.mxu0 %v8190_v1  ;;  %v10092_v1 = vrot.slane %v3027_v3, %v3039_v7 }
 0x401   : > { %4104 = vmatpush1.bf16.msra.mxu0 %v8188_v2 }
 0x402   : > { %4105 = vmatprep.subr.bf16.mxu0 %v8196_v4 }
 0x405   : > { %4106 = vmatpush1.bf16.msra.mxu0 %v8194_v5 }
 0x406   : > { %4107 = vmatprep.subr.bf16.mxu0 %v8202_v6  ;;  %v10095_v6 = vrot.slane %v3027_v3, %v10088_v63  ;;  %v8254_v3 = vld [vmem:[%s10546_s3 + $0x2e0] ss:$8 sps:$4 sm:$0xff]  }
 0x409   : > { %4108 = vmatpush1.bf16.msra.mxu0 %v8200_v9 }
 0x40a   : > { %4109 = vmatprep.subr.bf16.mxu0 %v8208_v22 }
 0x40d   : > { %4110 = vmatpush1.bf16.msra.mxu0 %v8206_v46  ;;  %v8223_v46 = vld [vmem:[%s10546_s3 + $0x14] ss:$8 sps:$4 sm:$0xff]  }
 0x40e   : > { %4111 = vmatprep.subr.bf16.mxu0 %v8214_v25  ;;  %v8218_v25 = vld [vmem:[%s10546_s3 + $0x280] ss:$8 sps:$4 sm:$0xff]  }
 0x411   : > { %4112 = vmatpush1.bf16.msra.mxu0 %v8212_v44  ;;  %v4497_v44 = vshrl.u32 %v3051_v61, 16 }
 0x412   : > { %4714 = vmatprep.subr.bf16.mxu0 %v8220_v38  ;;  %v8221_v38 = vld [vmem:[%s10546_s3 + $0x10] ss:$8 sps:$4 sm:$0xff]  }
 0x423   : > { %v3475_v8 = vpop.f32.mrb[48].mxu1  ;;  %v3434_v12 = vpop.f32.mrb[48].mxu0 }
 0x424   : > { %v3483_v11 = vadd.f32 %v3475_v8, %v3382_v45  ;;  %v3477_v13 = vpop.f32.mrb[49].mxu1  ;;  %v3481_v18 = vadd.f32 %v3434_v12, %v3380_v37  ;;  %v3436_v14 = vpop.f32.mrb[49].mxu0 }
 0x425   : > { %v3478_v19 = vpop.f32.mrb[50].mxu1  ;;  %v3482_v35 = vadd.f32 %v3436_v14, %v9968_v29  ;;  %v3438_v20 = vpop.f32.mrb[50].mxu0 }
 0x426   : > { %v3479_v48 = vpop.f32.mrb[51].mxu1  ;;  %v3439_v51 = vpop.f32.mrb[51].mxu0 }
 0x44f   : > { %v3576_v43 = vpop.f32.mrb[52].mxu1  ;;  %v3535_v10 = vpop.f32.mrb[52].mxu0 }
 0x450   : > { %v3584_v40 = vadd.f32 %v3576_v43, %v3483_v11  ;;  %v3578_v45 = vpop.f32.mrb[53].mxu1  ;;  %v3582_v36 = vadd.f32 %v3535_v10, %v3481_v18  ;;  %v3537_v16 = vpop.f32.mrb[53].mxu0  ;;  %v4499_v18 = vshll.u32 %v3051_v61, 16  ;;  %v8226_v43 = vld [vmem:[%s10546_s3 + $0x294] ss:$8 sps:$4 sm:$0xff]  }
 0x451   : > { %v3579_v37 = vpop.f32.mrb[54].mxu1  ;;  %v3583_v41 = vadd.f32 %v3537_v16, %v3482_v35  ;;  %v3539_v29 = vpop.f32.mrb[54].mxu0  ;;  %v8229_v10 = vld [vmem:[%s10546_s3 + $0x24] ss:$8 sps:$4 sm:$0xff]   ;;  %v8224_v45 = vld [vmem:[%s10546_s3 + $0x290] ss:$8 sps:$4 sm:$0xff]  }
 0x452   : > { %v3580_v49 = vpop.f32.mrb[55].mxu1  ;;  %v3540_v34 = vpop.f32.mrb[55].mxu0  ;;  %v4501_v31 = vrot.slane %v4499_v18, 1  ;;  %v8232_v16 = vld [vmem:[%s10546_s3 + $0x2a4] ss:$8 sps:$4 sm:$0xff]  }
 0x453   : > { %v8235_v37 = vld [vmem:[%s10546_s3 + $0x34] ss:$8 sps:$4 sm:$0xff]   ;;  %v8233_v49 = vld [vmem:[%s10546_s3 + $0x30] ss:$8 sps:$4 sm:$0xff]   ;;  %v8241_v34 = vld [vmem:[%s10546_s3 + $0x44] ss:$8 sps:$4 sm:$0xff]  }
 0x454   : > { %v8238_v29 = vld [vmem:[%s10546_s3 + $0x2b4] ss:$8 sps:$4 sm:$0xff]  }
 0x455   : > { %v8283_v18 = vld [vmem:[%s10546_s3 + $0xb4] ss:$8 sps:$4 sm:$0xff]  }
 0x47b   : > { %v3677_v33 = vpop.f32.mrb[56].mxu1  ;;  %v3636_v53 = vpop.f32.mrb[56].mxu0 }
 0x47c   : > { %v3685_v56 = vadd.f32 %v3677_v33, %v3584_v40  ;;  %v3679_v47 = vpop.f32.mrb[57].mxu1  ;;  %v3683_v58 = vadd.f32 %v3636_v53, %v3582_v36  ;;  %v3638_v32 = vpop.f32.mrb[57].mxu0  ;;  %v4502_v40 = vor.u32 %v4501_v31, %v4497_v44  ;;  %v8227_v36 = vld [vmem:[%s10546_s3 + $0x20] ss:$8 sps:$4 sm:$0xff]   ;;  %v8236_v33 = vld [vmem:[%s10546_s3 + $0x2b0] ss:$8 sps:$4 sm:$0xff]  }
 0x47d   : > { %v3680_v15 = vpop.f32.mrb[58].mxu1  ;;  %v3684_v54 = vadd.f32 %v3638_v32, %v3583_v41  ;;  %v3640_v59 = vpop.f32.mrb[58].mxu0  ;;  %v8230_v41 = vld [vmem:[%s10546_s3 + $0x2a0] ss:$8 sps:$4 sm:$0xff]   ;;  %v8244_v53 = vld [vmem:[%s10546_s3 + $0x2c4] ss:$8 sps:$4 sm:$0xff]  }
 0x47e   : > { %v3681_v24 = vpop.f32.mrb[59].mxu1  ;;  %v3641_v55 = vpop.f32.mrb[59].mxu0  ;;  %v8247_v47 = vld [vmem:[%s10546_s3 + $0x54] ss:$8 sps:$4 sm:$0xff]   ;;  %v8245_v32 = vld [vmem:[%s10546_s3 + $0x50] ss:$8 sps:$4 sm:$0xff]  }
 0x47f   : > { %v8250_v15 = vld [vmem:[%s10546_s3 + $0x2d4] ss:$8 sps:$4 sm:$0xff]   ;;  %v8248_v24 = vld [vmem:[%s10546_s3 + $0x2d0] ss:$8 sps:$4 sm:$0xff]   ;;  %v8251_v59 = vld [vmem:[%s10546_s3 + $0x60] ss:$8 sps:$4 sm:$0xff]  }
 0x480   : > { %v8256_v55 = vld [vmem:[%s10546_s3 + $0x2e4] ss:$8 sps:$4 sm:$0xff]   ;;  %v8293_v31 = vld [vmem:[%s10546_s3 + $0xd0] ss:$8 sps:$4 sm:$0xff]  }
 0x481   : > { %v8301_v44 = vld [vmem:[%s10546_s3 + $0xe4] ss:$8 sps:$4 sm:$0xff]  }
 0x4a7   : > { %v3778_v30 = vpop.f32.mrb[60].mxu1  ;;  %v3737_v4 = vpop.f32.mrb[60].mxu0 }
 0x4a8   : > { %v3786_v2 = vadd.f32 %v3778_v30, %v3685_v56  ;;  %v3780_v5 = vpop.f32.mrb[61].mxu1  ;;  %v3784_v8 = vadd.f32 %v3737_v4, %v3683_v58  ;;  %v3739_v39 = vpop.f32.mrb[61].mxu0  ;;  %v8239_v56 = vld [vmem:[%s10546_s3 + $0x40] ss:$8 sps:$4 sm:$0xff]   ;;  %v8271_v4 = vld [vmem:[%s10546_s3 + $0x94] ss:$8 sps:$4 sm:$0xff]  }
 0x4a9   : > { %v3781_v9 = vpop.f32.mrb[62].mxu1  ;;  %v3785_v12 = vadd.f32 %v3739_v39, %v3684_v54  ;;  %v3741_v14 = vpop.f32.mrb[62].mxu0  ;;  %v8242_v58 = vld [vmem:[%s10546_s3 + $0x2c0] ss:$8 sps:$4 sm:$0xff]   ;;  %v8253_v54 = vld [vmem:[%s10546_s3 + $0x64] ss:$8 sps:$4 sm:$0xff]  }
 0x4aa   : > { %v3789_v11 = vadd.f32 %v3786_v2, %v10092_v1  ;;  %v3782_v13 = vpop.f32.mrb[63].mxu1  ;;  %v3787_v19 = vadd.f32 %v3784_v8, %v10095_v6  ;;  %v3742_v17 = vpop.f32.mrb[63].mxu0  ;;  %v8263_v30 = vld [vmem:[%s10546_s3 + $0x80] ss:$8 sps:$4 sm:$0xff]   ;;  %v8268_v2 = vld [vmem:[%s10546_s3 + $0x304] ss:$8 sps:$4 sm:$0xff]  }
 0x4ab   : > { %v3788_v48 = vadd.f32 %v3785_v12, %v3036_v60  ;;  %v8257_v60 = vld [vmem:[%s10546_s3 + $0x70] ss:$8 sps:$4 sm:$0xff]   ;;  %v8266_v5 = vld [vmem:[%s10546_s3 + $0x300] ss:$8 sps:$4 sm:$0xff]   ;;  %v8274_v39 = vld [vmem:[%s10546_s3 + $0x314] ss:$8 sps:$4 sm:$0xff]  }
 0x4ac   : > { %v3792_v35 = vmax.f32 %v3789_v11, 0.0  ;;  %v3790_v20 = vmax.f32 %v3787_v19, 0.0  ;;  %v8269_v8 = vld [vmem:[%s10546_s3 + $0x90] ss:$8 sps:$4 sm:$0xff]   ;;  %v8277_v9 = vld [vmem:[%s10546_s3 + $0xa4] ss:$8 sps:$4 sm:$0xff]  }
 0x4ad   : > { %v3791_v22 = vmax.f32 %v3788_v48, 0.0  ;;  %v8272_v11 = vld [vmem:[%s10546_s3 + $0x310] ss:$8 sps:$4 sm:$0xff]   ;;  %v8275_v12 = vld [vmem:[%s10546_s3 + $0xa0] ss:$8 sps:$4 sm:$0xff]  }
 0x4ae   : > { %v10102_v51 = vpack.c.bf16 %v3792_v35, %v3792_v35  ;;  %v10114_v23 = vpack.c.bf16 %v3790_v20, %v3790_v20  ;;  %v8280_v13 = vld [vmem:[%s10546_s3 + $0x324] ss:$8 sps:$4 sm:$0xff]   ;;  %v8278_v14 = vld [vmem:[%s10546_s3 + $0x320] ss:$8 sps:$4 sm:$0xff]   ;;  %v8281_v19 = vld [vmem:[%s10546_s3 + $0xb0] ss:$8 sps:$4 sm:$0xff]   ;;  %v3044_v20 = vadd.f32 %v10095_v6, %v9868_v27 }
 0x4af   : > { %v10107_v28 = vpack.c.bf16 %v3791_v22, %v3791_v22  ;;  %v8286_v17 = vld [vmem:[%s10546_s3 + $0x334] ss:$8 sps:$4 sm:$0xff]   ;;  %v8289_v35 = vld [vmem:[%s10546_s3 + $0xc4] ss:$8 sps:$4 sm:$0xff]   ;;  %v8284_v48 = vld [vmem:[%s10546_s3 + $0x330] ss:$8 sps:$4 sm:$0xff]  }
 0x4b0   : > { %7126 = vmatmul.mubr.msk.bf16.vlgmr.msra.gmra.mrb[64].mxu1 %vm4077_vm1, %v10102_v51  ;;  %v8292_v22 = vld [vmem:[%s10546_s3 + $0x344] ss:$8 sps:$4 sm:$0xff]   ;;  %v8290_v27 = vld [vmem:[%s10546_s3 + $0x340] ss:$8 sps:$4 sm:$0xff]   ;;  %v3047_v6 = vmax.f32 %v3044_v20, 0.0 }
 0x4b1   : > { %4367 = vmatpush1.bf16.msra.mxu1 %v8215_v21  ;;  %4398 = vmatprep.mubr.bf16.mxu1 %v3051_v61  ;;  %v8260_v61 = vld [vmem:[%s10546_s3 + $0x2f0] ss:$8 sps:$4 sm:$0xff]   ;;  %v8287_v21 = vld [vmem:[%s10546_s3 + $0xc0] ss:$8 sps:$4 sm:$0xff]  }
 0x4b2   : > { %4113 = vmatprep.mubr.bf16.mxu0 %v10107_v28  ;;  %4368 = vmatprep.subr.bf16.mxu1 %v8223_v46  ;;  %v8295_v46 = vld [vmem:[%s10546_s3 + $0xd4] ss:$8 sps:$4 sm:$0xff]  }
 0x4b3   : > { %4114 = vmatmul.mubr.bf16.vlgmr.msra.gmra.mrb[64].mxu0 %v10114_v23 }
 0x4b4   : > { %4715 = vmatpush1.bf16.msra.mxu0 %v8218_v25  ;;  %4746 = vmatprep.mubr.bf16.mxu0 %v4502_v40  ;;  %v8298_v25 = vld [vmem:[%s10546_s3 + $0x354] ss:$8 sps:$4 sm:$0xff]   ;;  %v8299_v40 = vld [vmem:[%s10546_s3 + $0xe0] ss:$8 sps:$4 sm:$0xff]  }
 0x4b5   : > { %4369 = vmatpush1.bf16.msra.mxu1 %v8221_v38  ;;  %4716 = vmatprep.subr.bf16.mxu0 %v8226_v43  ;;  %v8296_v38 = vld [vmem:[%s10546_s3 + $0x350] ss:$8 sps:$4 sm:$0xff]   ;;  %v3050_v43 = vpack.c.bf16 %v3047_v6, %v3047_v6  ;;  %v8352_v6 = vld [vmem:[%s10546_s3 + $0x3d4] ss:$8 sps:$4 sm:$0xff]  }
 0x4b6   : > { %4370 = vmatprep.subr.bf16.mxu1 %v8229_v10  ;;  %v8304_v10 = vld [vmem:[%s10546_s3 + $0x364] ss:$8 sps:$4 sm:$0xff]  }
 0x4b8   : > { %4717 = vmatpush1.bf16.msra.mxu0 %v8224_v45  ;;  %v8307_v45 = vld [vmem:[%s10546_s3 + $0xf4] ss:$8 sps:$4 sm:$0xff]  }
 0x4b9   : > { %4371 = vmatpush1.bf16.msra.mxu1 %v8227_v36  ;;  %4718 = vmatprep.subr.bf16.mxu0 %v8232_v16  ;;  %v8302_v36 = vld [vmem:[%s10546_s3 + $0x360] ss:$8 sps:$4 sm:$0xff]   ;;  %v4492_v16 = vshll.u32 %v3050_v43, 16 }
 0x4ba   : > { %4372 = vmatprep.subr.bf16.mxu1 %v8235_v37  ;;  %v8305_v37 = vld [vmem:[%s10546_s3 + $0xf0] ss:$8 sps:$4 sm:$0xff]  }
 0x4bc   : > { %4719 = vmatpush1.bf16.msra.mxu0 %v8230_v41  ;;  %v8310_v41 = vld [vmem:[%s10546_s3 + $0x374] ss:$8 sps:$4 sm:$0xff]  }
 0x4bd   : > { %4373 = vmatpush1.bf16.msra.mxu1 %v8233_v49  ;;  %4720 = vmatprep.subr.bf16.mxu0 %v8238_v29  ;;  %v8313_v49 = vld [vmem:[%s10546_s3 + $0x104] ss:$8 sps:$4 sm:$0xff]   ;;  %v8308_v29 = vld [vmem:[%s10546_s3 + $0x370] ss:$8 sps:$4 sm:$0xff]  }
 0x4be   : > { %4374 = vmatprep.subr.bf16.mxu1 %v8241_v34  ;;  %v4494_v34 = vrot.slane %v4492_v16, 1  ;;  %v8367_v16 = vld [vmem:[%s10546_s3 + $0x424] ss:$8 sps:$4 sm:$0xff]  }
 0x4c0   : > { %4721 = vmatpush1.bf16.msra.mxu0 %v8236_v33  ;;  %v8311_v33 = vld [vmem:[%s10546_s3 + $0x100] ss:$8 sps:$4 sm:$0xff]  }
 0x4c1   : > { %4375 = vmatpush1.bf16.msra.mxu1 %v8239_v56  ;;  %4722 = vmatprep.subr.bf16.mxu0 %v8244_v53  ;;  %v8316_v56 = vld [vmem:[%s10546_s3 + $0x4c4] ss:$8 sps:$4 sm:$0xff]   ;;  %v8319_v53 = vld [vmem:[%s10546_s3 + $0x114] ss:$8 sps:$4 sm:$0xff]  }
 0x4c2   : > { %4376 = vmatprep.subr.bf16.mxu1 %v8247_v47  ;;  %v4490_v47 = vshrl.u32 %v3050_v43, 16 }
 0x4c4   : > { %4723 = vmatpush1.bf16.msra.mxu0 %v8242_v58  ;;  %v8314_v58 = vld [vmem:[%s10546_s3 + $0x4c0] ss:$8 sps:$4 sm:$0xff]  }
 0x4c5   : > { %4377 = vmatpush1.bf16.msra.mxu1 %v8245_v32  ;;  %4724 = vmatprep.subr.bf16.mxu0 %v8250_v15  ;;  %v4495_v32 = vor.u32 %v4494_v34, %v4490_v47  ;;  %v8317_v15 = vld [vmem:[%s10546_s3 + $0x110] ss:$8 sps:$4 sm:$0xff]   ;;  %v8371_v34 = vld [vmem:[%s10546_s3 + $0x440] ss:$8 sps:$4 sm:$0xff]  }
 0x4c6   : > { %4378 = vmatprep.subr.bf16.mxu1 %v8253_v54  ;;  %v8322_v54 = vld [vmem:[%s10546_s3 + $0x4d4] ss:$8 sps:$4 sm:$0xff]   ;;  %v8377_v47 = vld [vmem:[%s10546_s3 + $0x460] ss:$8 sps:$4 sm:$0xff]  }
 0x4c8   : > { %4725 = vmatpush1.bf16.msra.mxu0 %v8248_v24  ;;  %v8325_v24 = vld [vmem:[%s10546_s3 + $0x124] ss:$8 sps:$4 sm:$0xff]  }
 0x4c9   : > { %4379 = vmatpush1.bf16.msra.mxu1 %v8251_v59  ;;  %4726 = vmatprep.subr.bf16.mxu0 %v8256_v55  ;;  %v8320_v59 = vld [vmem:[%s10546_s3 + $0x4d0] ss:$8 sps:$4 sm:$0xff]   ;;  %v8323_v55 = vld [vmem:[%s10546_s3 + $0x120] ss:$8 sps:$4 sm:$0xff]  }
 0x4ca   : > { %4380 = vmatprep.subr.bf16.mxu1 %v8259_v42  ;;  %v8328_v42 = vld [vmem:[%s10546_s3 + $0x4e4] ss:$8 sps:$4 sm:$0xff]  }
 0x4cc   : > { %4727 = vmatpush1.bf16.msra.mxu0 %v8254_v3  ;;  %v3046_v3 = vadd.f32 %v10092_v1, %v9864_v26  ;;  %v8334_v26 = vld [vmem:[%s10546_s3 + $0x4f4] ss:$8 sps:$4 sm:$0xff]  }
 0x4cd   : > { %4381 = vmatpush1.bf16.msra.mxu1 %v8257_v60  ;;  %4728 = vmatprep.subr.bf16.mxu0 %v8262_v62  ;;  %v8331_v60 = vld [vmem:[%s10546_s3 + $0x134] ss:$8 sps:$4 sm:$0xff]   ;;  %v8326_v62 = vld [vmem:[%s10546_s3 + $0x4e0] ss:$8 sps:$4 sm:$0xff]  }
 0x4ce   : > { %4382 = vmatprep.subr.bf16.mxu1 %v8265_v50  ;;  %v4855_v50 = vshll.u32 %v10102_v51, 16  ;;  %v3049_v1 = vmax.f32 %v3046_v3, 0.0  ;;  %v4842_v3 = vshll.u32 %v10114_v23, 16 }
 0x4d0   : > { %4729 = vmatpush1.bf16.msra.mxu0 %v8260_v61  ;;  %v8329_v61 = vld [vmem:[%s10546_s3 + $0x130] ss:$8 sps:$4 sm:$0xff]  }
 0x4d1   : > { %4383 = vmatpush1.bf16.msra.mxu1 %v8263_v30  ;;  %4730 = vmatprep.subr.bf16.mxu0 %v8268_v2  ;;  %v8337_v30 = vld [vmem:[%s10546_s3 + $0x384] ss:$8 sps:$4 sm:$0xff]   ;;  %v8332_v2 = vld [vmem:[%s10546_s3 + $0x4f0] ss:$8 sps:$4 sm:$0xff]  }
 0x4d2   : > { %4384 = vmatprep.subr.bf16.mxu1 %v8271_v4  ;;  %v4857_v4 = vrot.slane %v4855_v50, 1  ;;  %v4844_v50 = vrot.slane %v4842_v3, 1 }
 0x4d4   : > { %4731 = vmatpush1.bf16.msra.mxu0 %v8266_v5  ;;  %v8335_v5 = vld [vmem:[%s10546_s3 + $0x380] ss:$8 sps:$4 sm:$0xff]  }
 0x4d5   : > { %4385 = vmatpush1.bf16.msra.mxu1 %v8269_v8  ;;  %4732 = vmatprep.subr.bf16.mxu0 %v8274_v39  ;;  %v3052_v8 = vpack.c.bf16 %v3049_v1, %v3049_v1  ;;  %v8340_v39 = vld [vmem:[%s10546_s3 + $0x394] ss:$8 sps:$4 sm:$0xff]   ;;  %v8395_v1 = vld [vmem:[#allocation8 + $0x40] sm:$0xff]  }
 0x4d6   : > { %4386 = vmatprep.subr.bf16.mxu1 %v8277_v9  ;;  %v4853_v9 = vshrl.u32 %v10102_v51, 16  ;;  %v8341_v51 = vld [vmem:[%s10546_s3 + $0x3a0] ss:$8 sps:$4 sm:$0xff]  }
 0x4d8   : > { %4733 = vmatpush1.bf16.msra.mxu0 %v8272_v11  ;;  %v4858_v11 = vor.u32 %v4857_v4, %v4853_v9  ;;  %v8398_v4 = vld [vmem:[#allocation8 + $0xc0] sm:$0xff]   ;;  %v8401_v9 = vld [vmem:[#allocation8 + $0x50] sm:$0xff]  }
 0x4d9   : > { %4387 = vmatpush1.bf16.msra.mxu1 %v8275_v12  ;;  %4734 = vmatprep.subr.bf16.mxu0 %v8280_v13  ;;  %v8338_v12 = vld [vmem:[%s10546_s3 + $0x390] ss:$8 sps:$4 sm:$0xff]   ;;  %v8343_v13 = vld [vmem:[%s10546_s3 + $0x3a4] ss:$8 sps:$4 sm:$0xff]  }
 0x4da   : > { %4388 = vmatprep.subr.bf16.mxu1 %v8283_v18  ;;  %v4505_v18 = vshll.u32 %v3052_v8, 16 }
 0x4dc   : > { %4735 = vmatpush1.bf16.msra.mxu0 %v8278_v14  ;;  %v8346_v14 = vld [vmem:[%s10546_s3 + $0x3b4] ss:$8 sps:$4 sm:$0xff]  }
 0x4dd   : > { %4389 = vmatpush1.bf16.msra.mxu1 %v8281_v19  ;;  %4736 = vmatprep.subr.bf16.mxu0 %v8286_v17  ;;  %v4849_v19 = vshll.u32 %v10107_v28, 16  ;;  %v8344_v17 = vld [vmem:[%s10546_s3 + $0x3b0] ss:$8 sps:$4 sm:$0xff]  }
 0x4de   : > { %4390 = vmatprep.subr.bf16.mxu1 %v8289_v35  ;;  %v4507_v35 = vrot.slane %v4505_v18, 1  ;;  %v8410_v18 = vld [vmem:[#allocation8 + $0xd8] sm:$0xff]  }
 0x4df   : > { %v4851_v20 = vrot.slane %v4849_v19, 1  ;;  %v8409_v19 = vld [vmem:[#allocation8 + $0x60] sm:$0xff]  }
 0x4e0   : > { %4737 = vmatpush1.bf16.msra.mxu0 %v8284_v48  ;;  %v8349_v48 = vld [vmem:[%s10546_s3 + $0x3c4] ss:$8 sps:$4 sm:$0xff]  }
 0x4e1   : > { %4391 = vmatpush1.bf16.msra.mxu1 %v8287_v21  ;;  %4738 = vmatprep.subr.bf16.mxu0 %v8292_v22  ;;  %v4503_v21 = vshrl.u32 %v3052_v8, 16  ;;  %v8347_v22 = vld [vmem:[%s10546_s3 + $0x3c0] ss:$8 sps:$4 sm:$0xff]  }
 0x4e2   : > { %4392 = vmatprep.subr.bf16.mxu1 %v8295_v46  ;;  %v4847_v46 = vshrl.u32 %v10107_v28, 16  ;;  %v8355_v28 = vld [vmem:[%s10546_s3 + $0x3e4] ss:$8 sps:$4 sm:$0xff]  }
 0x4e4   : > { %4739 = vmatpush1.bf16.msra.mxu0 %v8290_v27  ;;  %v4508_v27 = vor.u32 %v4507_v35, %v4503_v21  ;;  %v8411_v35 = vld [vmem:[#allocation8 + $0x20] sm:$0xff]  }
 0x4e5   : > { %4393 = vmatpush1.bf16.msra.mxu1 %v8293_v31  ;;  %4740 = vmatprep.subr.bf16.mxu0 %v8298_v25  ;;  %v4852_v31 = vor.u32 %v4851_v20, %v4847_v46  ;;  %v8350_v25 = vld [vmem:[%s10546_s3 + $0x3d0] ss:$8 sps:$4 sm:$0xff]  }
 0x4e6   : > { %4394 = vmatprep.subr.bf16.mxu1 %v8301_v44  ;;  %v8353_v44 = vld [vmem:[%s10546_s3 + $0x3e0] ss:$8 sps:$4 sm:$0xff]  }
 0x4e8   : > { %4741 = vmatpush1.bf16.msra.mxu0 %v8296_v38  ;;  %v8358_v38 = vld [vmem:[%s10546_s3 + $0x3f4] ss:$8 sps:$4 sm:$0xff]  }
 0x4e9   : > { %4395 = vmatpush1.bf16.msra.mxu1 %v8299_v40  ;;  %4742 = vmatprep.subr.bf16.mxu0 %v8304_v10  ;;  %v8361_v40 = vld [vmem:[%s10546_s3 + $0x404] ss:$8 sps:$4 sm:$0xff]   ;;  %v8359_v10 = vld [vmem:[%s10546_s3 + $0x400] ss:$8 sps:$4 sm:$0xff]  }
 0x4ea   : > { %4396 = vmatprep.subr.bf16.mxu1 %v8307_v45  ;;  %v8364_v45 = vld [vmem:[%s10546_s3 + $0x414] ss:$8 sps:$4 sm:$0xff]  }
 0x4ec   : > { %4743 = vmatpush1.bf16.msra.mxu0 %v8302_v36  ;;  %v8362_v36 = vld [vmem:[%s10546_s3 + $0x410] ss:$8 sps:$4 sm:$0xff]  }
 0x4ed   : > { %4397 = vmatpush1.bf16.msra.mxu1 %v8305_v37  ;;  %4744 = vmatprep.subr.bf16.mxu0 %v8310_v41  ;;  %v8365_v37 = vld [vmem:[%s10546_s3 + $0x420] ss:$8 sps:$4 sm:$0xff]   ;;  %v8370_v41 = vld [vmem:[%s10546_s3 + $0x434] ss:$8 sps:$4 sm:$0xff]  }
 0x4ee   : > { %4407 = vmatprep.subr.bf16.mxu1 %v8313_v49  ;;  %v8368_v49 = vld [vmem:[%s10546_s3 + $0x430] ss:$8 sps:$4 sm:$0xff]  }
 0x4f0   : > { %4399 = vmatmul.mubr.bf16.vlgmr.msra.gmra.mrb[68].mxu1 %v3050_v43  ;;  %4745 = vmatpush1.bf16.msra.mxu0 %v8308_v29  ;;  %v8356_v43 = vld [vmem:[%s10546_s3 + $0x3f0] ss:$8 sps:$4 sm:$0xff]   ;;  %v8373_v29 = vld [vmem:[%s10546_s3 + $0x444] ss:$8 sps:$4 sm:$0xff]  }
 0x4f1   : > { %4408 = vmatpush1.bf16.msra.mxu1 %v8311_v33  ;;  %5105 = vmatprep.subr.bf16.mxu0 %v8316_v56  ;;  %v8376_v33 = vld [vmem:[%s10546_s3 + $0x454] ss:$8 sps:$4 sm:$0xff]   ;;  %v8374_v56 = vld [vmem:[%s10546_s3 + $0x450] ss:$8 sps:$4 sm:$0xff]  }
 0x4f2   : > { %4409 = vmatprep.subr.bf16.mxu1 %v8319_v53  ;;  %4439 = vmatprep.mubr.bf16.mxu1 %v9149_v0  ;;  %v8379_v53 = vld [vmem:[%s10546_s3 + $0x464] ss:$8 sps:$4 sm:$0xff]  }
 0x4f3   : > { %4747 = vmatmul.mubr.bf16.vlgmr.msra.gmra.mrb[68].mxu0 %v4495_v32  ;;  %v8380_v32 = vld [vmem:[%s10546_s3 + $0x470] ss:$8 sps:$4 sm:$0xff]  }
 0x4f4   : > { %5106 = vmatpush1.bf16.msra.mxu0 %v8314_v58  ;;  %5137 = vmatprep.mubr.bf16.mxu0 %v9149_v0  ;;  %v8382_v58 = vld [vmem:[%s10546_s3 + $0x474] ss:$8 sps:$4 sm:$0xff]  }
 0x4f5   : > { %4410 = vmatpush1.bf16.msra.mxu1 %v8317_v15  ;;  %5107 = vmatprep.subr.bf16.mxu0 %v8322_v54  ;;  %v8385_v15 = vld [vmem:[%s10546_s3 + $0x484] ss:$8 sps:$4 sm:$0xff]   ;;  %v8383_v54 = vld [vmem:[%s10546_s3 + $0x480] ss:$8 sps:$4 sm:$0xff]  }
 0x4f6   : > { %4411 = vmatprep.subr.bf16.mxu1 %v8325_v24  ;;  %v8388_v24 = vld [vmem:[%s10546_s3 + $0x494] ss:$8 sps:$4 sm:$0xff]  }
 0x4f8   : > { %5108 = vmatpush1.bf16.msra.mxu0 %v8320_v59  ;;  %v8386_v59 = vld [vmem:[%s10546_s3 + $0x490] ss:$8 sps:$4 sm:$0xff]  }
 0x4f9   : > { %4412 = vmatpush1.bf16.msra.mxu1 %v8323_v55  ;;  %5109 = vmatprep.subr.bf16.mxu0 %v8328_v42  ;;  %v8391_v55 = vld [vmem:[%s10546_s3 + $0x4a4] ss:$8 sps:$4 sm:$0xff]   ;;  %v8389_v42 = vld [vmem:[%s10546_s3 + $0x4a0] ss:$8 sps:$4 sm:$0xff]  }
 0x4fa   : > { %4413 = vmatprep.subr.bf16.mxu1 %v8331_v60  ;;  %v8394_v60 = vld [vmem:[%s10546_s3 + $0x4b4] ss:$8 sps:$4 sm:$0xff]  }
 0x4fc   : > { %5110 = vmatpush1.bf16.msra.mxu0 %v8326_v62  ;;  %v8392_v62 = vld [vmem:[%s10546_s3 + $0x4b0] ss:$8 sps:$4 sm:$0xff]  }
 0x4fd   : > { %4414 = vmatpush1.bf16.msra.mxu1 %v8329_v61  ;;  %5111 = vmatprep.subr.bf16.mxu0 %v8334_v26  ;;  %v4840_v61 = vshrl.u32 %v10114_v23, 16  ;;  %v8403_v23 = vld [vmem:[#allocation8 + $0x10] sm:$0xff]  }
 0x4fe   : > { %4755 = vmatprep.subr.bf16.mxu1 %v8337_v30  ;;  %v8396_v30 = vld [vmem:[#allocation8] sm:$0xff]  }
 0x4ff   : > { %v4845_v26 = vor.u32 %v4844_v50, %v4840_v61 }
 0x500   : > { %7167 = vmatmul.mubr.msk.bf16.vlgmr.msra.gmra.mrb[72].mxu1 %vm4077_vm1, %v3052_v8  ;;  %5112 = vmatpush1.bf16.msra.mxu0 %v8332_v2  ;;  %v8397_v2 = vld [vmem:[#allocation8 + $0x48] sm:$0xff]  }
 0x501   : > { %4756 = vmatpush1.bf16.msra.mxu1 %v8335_v5  ;;  %4787 = vmatprep.mubr.bf16.mxu1 %v9149_v0  ;;  %v8400_v5 = vld [vmem:[#allocation8 + $0x80] sm:$0xff]   ;;  %v8402_v8 = vld [vmem:[#allocation8 + $0xc8] sm:$0xff]  }
 0x502   : > { %4757 = vmatprep.subr.bf16.mxu1 %v8340_v39  ;;  %7447 = vmatprep.subr.bf16.mxu0 %v8398_v4  ;;  %v8399_v39 = vld [vmem:[#allocation8 + $0x8] sm:$0xff]  }
 0x503   : > { %7329 = vmatmul.mubr.msk.bf16.vlgmr.msra.gmra.mrb[72].mxu0 %vm4077_vm1, %v4858_v11  ;;  %v8404_v11 = vld [vmem:[#allocation8 + $0x88] sm:$0xff]  }
 0x504   : > { %7448 = vmatpush3.bf16.msra.mxu0 %v8400_v5 }
 0x505   : > { %4758 = vmatpush1.bf16.msra.mxu1 %v8338_v12  ;;  %7449 = vmatprep.subr.bf16.mxu0 %v8402_v8  ;;  %v8406_v12 = vld [vmem:[#allocation8 + $0xd0] sm:$0xff]  }
 0x506   : > { %4759 = vmatprep.subr.bf16.mxu1 %v8343_v13  ;;  %v8405_v13 = vld [vmem:[#allocation8 + $0x58] sm:$0xff]  }
 0x508   : > { %7450 = vmatpush3.bf16.msra.mxu0 %v8404_v11 }
 0x509   : > { %4760 = vmatpush1.bf16.msra.mxu1 %v8341_v51  ;;  %v8408_v51 = vld [vmem:[#allocation8 + $0x90] sm:$0xff]   ;;  %7451 = vmatprep.subr.bf16.mxu0 %v8406_v12 }
 0x50a   : > { %4761 = vmatprep.subr.bf16.mxu1 %v8346_v14  ;;  %v8407_v14 = vld [vmem:[#allocation8 + $0x18] sm:$0xff]  }
 0x50c   : > { %7452 = vmatpush3.bf16.msra.mxu0 %v8408_v51  ;;  %v5148_v51 = vld [vmem:[#allocation7] sm:$0x3] }
 0x50d   : > { %4762 = vmatpush1.bf16.msra.mxu1 %v8344_v17  ;;  %v8412_v17 = vld [vmem:[#allocation8 + $0x98] sm:$0xff]   ;;  %7453 = vmatprep.subr.bf16.mxu0 %v8410_v18 }
 0x50e   : > { %5064 = vmatprep.subr.bf16.mxu1 %v8349_v48 }
 0x510   : > { %7248 = vmatmul.mubr.msk.bf16.vlgmr.msra.gmra.mrb[76].mxu1 %vm4077_vm1, %v4508_v27  ;;  %7454 = vmatpush3.bf16.msra.mxu0 %v8412_v17 }
 0x511   : > { %5065 = vmatpush1.bf16.msra.mxu1 %v8347_v22  ;;  %5096 = vmatprep.mubr.bf16.mxu1 %v4852_v31 }
 0x512   : > { %5066 = vmatprep.subr.bf16.mxu1 %v8352_v6 }
 0x515   : > { %5067 = vmatpush1.bf16.msra.mxu1 %v8350_v25 }
 0x516   : > { %5068 = vmatprep.subr.bf16.mxu1 %v8355_v28 }
 0x519   : > { %5069 = vmatpush1.bf16.msra.mxu1 %v8353_v44  ;;  %v8413_v44 = vld [vmem:[#allocation8 + $0x68] sm:$0xff]  }
 0x51a   : > { %5070 = vmatprep.subr.bf16.mxu1 %v8358_v38  ;;  %v8414_v38 = vld [vmem:[#allocation8 + $0xe0] sm:$0xff]  }
 0x51b   : > { %7455 = vmatprep.subr.bf16.mxu0 %v8414_v38 }
 0x51d   : > { %5071 = vmatpush1.bf16.msra.mxu1 %v8356_v43  ;;  %v8415_v43 = vld [vmem:[#allocation8 + $0x28] sm:$0xff]  }
 0x51e   : > { %5072 = vmatprep.subr.bf16.mxu1 %v8361_v40  ;;  %v8416_v40 = vld [vmem:[#allocation8 + $0xa0] sm:$0xff]  }
 0x51f   : > { %7456 = vmatpush3.bf16.msra.mxu0 %v8416_v40 }
 0x521   : > { %5073 = vmatpush1.bf16.msra.mxu1 %v8359_v10  ;;  %v8417_v10 = vld [vmem:[#allocation8 + $0x70] sm:$0xff]  }
 0x522   : > { %5074 = vmatprep.subr.bf16.mxu1 %v8364_v45  ;;  %v8418_v45 = vld [vmem:[#allocation8 + $0xe8] sm:$0xff]  }
 0x523   : > { %7457 = vmatprep.subr.bf16.mxu0 %v8418_v45 }
 0x525   : > { %5075 = vmatpush1.bf16.msra.mxu1 %v8362_v36  ;;  %v8419_v36 = vld [vmem:[#allocation8 + $0x30] sm:$0xff]  }
 0x526   : > { %5076 = vmatprep.subr.bf16.mxu1 %v8367_v16  ;;  %v8420_v16 = vld [vmem:[#allocation8 + $0xa8] sm:$0xff]  }
 0x527   : > { %7458 = vmatpush3.bf16.msra.mxu0 %v8420_v16 }
 0x529   : > { %5077 = vmatpush1.bf16.msra.mxu1 %v8365_v37  ;;  %v8421_v37 = vld [vmem:[#allocation8 + $0x78] sm:$0xff]  }
 0x52a   : > { %5078 = vmatprep.subr.bf16.mxu1 %v8370_v41  ;;  %v8422_v41 = vld [vmem:[#allocation8 + $0xf0] sm:$0xff]  }
 0x52b   : > { %7459 = vmatprep.subr.bf16.mxu0 %v8422_v41 }
 0x52d   : > { %5079 = vmatpush1.bf16.msra.mxu1 %v8368_v49  ;;  %v8423_v49 = vld [vmem:[#allocation8 + $0x38] sm:$0xff]  }
 0x52e   : > { %5080 = vmatprep.subr.bf16.mxu1 %v8373_v29  ;;  %v8424_v29 = vld [vmem:[#allocation8 + $0xb0] sm:$0xff]  }
 0x52f   : > { %7460 = vmatpush3.bf16.msra.mxu0 %v8424_v29 }
 0x531   : > { %5081 = vmatpush1.bf16.msra.mxu1 %v8371_v34  ;;  %v8425_v34 = vld [vmem:[#allocation8 + $0xf8] sm:$0xff]  }
 0x532   : > { %5082 = vmatprep.subr.bf16.mxu1 %v8376_v33  ;;  %v8426_v33 = vld [vmem:[#allocation8 + $0xb8] sm:$0xff]   ;;  %7461 = vmatprep.subr.bf16.mxu0 %v8425_v34  ;;  %v8430_v34 = vld [vmem:[#allocation8 + $0x108] sm:$0xff]  }
 0x533   : > { %7462 = vmatpush3.bf16.msra.mxu0 %v8426_v33  ;;  %v8431_v33 = vld [vmem:[#allocation8 + $0x150] sm:$0xff]  }
 0x535   : > { %5083 = vmatpush1.bf16.msra.mxu1 %v8374_v56  ;;  %v8427_v56 = vld [vmem:[#allocation8 + $0x140] sm:$0xff]  }
 0x536   : > { %5084 = vmatprep.subr.bf16.mxu1 %v8379_v53  ;;  %7491 = vmatprep.subr.bf16.mxu0 %v8427_v56  ;;  %v8432_v56 = vld [vmem:[#allocation8 + $0x110] sm:$0xff]  }
 0x539   : > { %5085 = vmatpush1.bf16.msra.mxu1 %v8377_v47 }
 0x53a   : > { %5086 = vmatprep.subr.bf16.mxu1 %v8382_v58 }
 0x53d   : > { %5087 = vmatpush1.bf16.msra.mxu1 %v8380_v32 }
 0x53e   : > { %5088 = vmatprep.subr.bf16.mxu1 %v8385_v15 }
 0x541   : > { %5089 = vmatpush1.bf16.msra.mxu1 %v8383_v54 }
 0x542   : > { %5090 = vmatprep.subr.bf16.mxu1 %v8388_v24 }
 0x545   : > { %5091 = vmatpush1.bf16.msra.mxu1 %v8386_v59 }
 0x546   : > { %5092 = vmatprep.subr.bf16.mxu1 %v8391_v55 }
 0x549   : > { %5093 = vmatpush1.bf16.msra.mxu1 %v8389_v42 }
 0x54a   : > { %5094 = vmatprep.subr.bf16.mxu1 %v8394_v60 }
 0x54d   : > { %5095 = vmatpush1.bf16.msra.mxu1 %v8392_v62 }
 0x54e   : > { %7469 = vmatprep.subr.bf16.mxu1 %v8395_v1 }
 0x550   : > { %5097 = vmatmul.mubr.bf16.vlgmr.msra.gmra.mrb[80].mxu1 %v4845_v26 }
 0x551   : > { %7470 = vmatpush3.bf16.msra.mxu1 %v8396_v30 }
 0x552   : > { %7471 = vmatprep.subr.bf16.mxu1 %v8397_v2 }
 0x555   : > { %7472 = vmatpush3.bf16.msra.mxu1 %v8399_v39 }
 0x556   : > { %7473 = vmatprep.subr.bf16.mxu1 %v8401_v9 }
 0x559   : > { %7474 = vmatpush3.bf16.msra.mxu1 %v8403_v23 }
 0x55a   : > { %7475 = vmatprep.subr.bf16.mxu1 %v8405_v13 }
 0x55d   : > { %7476 = vmatpush3.bf16.msra.mxu1 %v8407_v14 }
 0x55e   : > { %7477 = vmatprep.subr.bf16.mxu1 %v8409_v19  ;;  %v5153_v19 = vrot.slane %v5148_v51, %v10088_v63 }
 0x561   : > { %7478 = vmatpush3.bf16.msra.mxu1 %v8411_v35 }
 0x562   : > { %7479 = vmatprep.subr.bf16.mxu1 %v8413_v44 }
 0x565   : > { %7480 = vmatpush3.bf16.msra.mxu1 %v8415_v43 }
 0x566   : > { %7481 = vmatprep.subr.bf16.mxu1 %v8417_v10 }
 0x569   : > { %7482 = vmatpush3.bf16.msra.mxu1 %v8419_v36 }
 0x56a   : > { %7483 = vmatprep.subr.bf16.mxu1 %v8421_v37  ;;  %v8428_v37 = vld [vmem:[#allocation8 + $0x100] sm:$0xff]  }
 0x56d   : > { %7484 = vmatpush3.bf16.msra.mxu1 %v8423_v49  ;;  %v8429_v49 = vld [vmem:[#allocation8 + $0x148] sm:$0xff]  }
 0x583   : > { %v4156_v48 = vpop.f32.mrb[64].mxu1 }
 0x584   : > { %v4158_v20 = vpop.f32.mrb[65].mxu1 }
 0x585   : > { %v4160_v21 = vpop.f32.mrb[66].mxu1 }
 0x586   : > { %v4115_v22 = vpop.f32.mrb[64].mxu0  ;;  %v4161_v46 = vpop.f32.mrb[67].mxu1 }
 0x587   : > { %v4157_v27 = vadd.f32 %v4156_v48, %v4115_v22  ;;  %v4117_v6 = vpop.f32.mrb[65].mxu0  ;;  %v5157_v48 = vrot.slane %v5148_v51, %v10082_v57  ;;  %v8472_v51 = vld [vmem:[#allocation11 + $0x8c] ss:$16 sps:$4 sm:$0xff]  }
 0x588   : > { %v4159_v31 = vadd.f32 %v4158_v20, %v4117_v6  ;;  %v4119_v25 = vpop.f32.mrb[66].mxu0 }
 0x589   : > { %v4120_v28 = vpop.f32.mrb[67].mxu0 }
 0x5c3   : > { %v4400_v53 = vpop.f32.mrb[68].mxu1 }
 0x5c4   : > { %v4401_v47 = vadd.f32 %v4400_v53, %v4157_v27  ;;  %v4402_v58 = vpop.f32.mrb[69].mxu1  ;;  %v8433_v53 = vld [vmem:[#allocation8 + $0x158] sm:$0xff]  }
 0x5c5   : > { %v4403_v32 = vadd.f32 %v4402_v58, %v4159_v31  ;;  %v4404_v15 = vpop.f32.mrb[70].mxu1  ;;  %v8435_v58 = vld [vmem:[#allocation8 + $0x160] sm:$0xff]  }
 0x5c6   : > { %v4405_v54 = vpop.f32.mrb[71].mxu1  ;;  %v4748_v24 = vpop.f32.mrb[68].mxu0  ;;  %v8437_v15 = vld [vmem:[#allocation8 + $0x168] sm:$0xff]  }
 0x5c7   : > { %v4750_v59 = vpop.f32.mrb[69].mxu0  ;;  %v8438_v54 = vld [vmem:[#allocation8 + $0x128] sm:$0xff]  }
 0x5c8   : > { %v4752_v55 = vpop.f32.mrb[70].mxu0 }
 0x5c9   : > { %v4753_v42 = vpop.f32.mrb[71].mxu0  ;;  %v8441_v55 = vld [vmem:[#allocation8 + $0x178] sm:$0xff]  }
 0x5ca   : > { %v8442_v42 = vld [vmem:[#allocation8 + $0x138] sm:$0xff]  }
 0x5d3   : > { %v4441_v3 = vpop.f32.mrb[72].mxu1 }
 0x5d4   : > { %v4442_v60 = vadd.f32 %v4441_v3, %v4401_v47  ;;  %v4443_v62 = vpop.f32.mrb[73].mxu1  ;;  %v8434_v47 = vld [vmem:[#allocation8 + $0x118] sm:$0xff]  }
 0x5d5   : > { %v4444_v50 = vadd.f32 %v4443_v62, %v4403_v32  ;;  %v4445_v61 = vpop.f32.mrb[74].mxu1  ;;  %v8436_v32 = vld [vmem:[#allocation8 + $0x120] sm:$0xff]  }
 0x5d6   : > { %v4446_v26 = vpop.f32.mrb[75].mxu1  ;;  %v5139_v1 = vpop.f32.mrb[72].mxu0  ;;  %v8445_v62 = vld [vmem:[#allocation11 + $0x4] ss:$16 sps:$4 sm:$0xff]   ;;  %v8448_v61 = vld [vmem:[#allocation11 + $0xc] ss:$16 sps:$4 sm:$0xff]  }
 0x5d7   : > { %v5141_v30 = vpop.f32.mrb[73].mxu0  ;;  %v8451_v26 = vld [vmem:[#allocation11 + $0x24] ss:$16 sps:$4 sm:$0xff]   ;;  %5898 = vmatprep.subr.bf16.mxu1 %v8445_v62  ;;  %v8500_v62 = vld [vmem:[#allocation11 + $0x128] ss:$16 sps:$4 sm:$0xff]  }
 0x5d8   : > { %v5143_v2 = vpop.f32.mrb[74].mxu0 }
 0x5d9   : > { %v5144_v4 = vpop.f32.mrb[75].mxu0  ;;  %v8452_v2 = vld [vmem:[#allocation11 + $0x28] ss:$16 sps:$4 sm:$0xff]  }
 0x5da   : > { %v8457_v4 = vld [vmem:[#allocation11 + $0x44] ss:$16 sps:$4 sm:$0xff]  }
 0x5e3   : > { %v4789_v5 = vpop.f32.mrb[76].mxu1 }
 0x5e4   : > { %v4790_v8 = vadd.f32 %v4789_v5, %v4748_v24  ;;  %v4791_v39 = vpop.f32.mrb[77].mxu1  ;;  %v8439_v24 = vld [vmem:[#allocation8 + $0x170] sm:$0xff]  }
 0x5e5   : > { %v4792_v9 = vadd.f32 %v4791_v39, %v4750_v59  ;;  %v4793_v11 = vpop.f32.mrb[78].mxu1  ;;  %v8440_v59 = vld [vmem:[#allocation8 + $0x130] sm:$0xff]   ;;  %v8458_v39 = vld [vmem:[#allocation11 + $0x48] ss:$16 sps:$4 sm:$0xff]  }
 0x5e6   : > { %v4796_v12 = vadd.f32 %v4790_v8, %v4442_v60  ;;  %v4794_v23 = vpop.f32.mrb[79].mxu1  ;;  %v8443_v60 = vld [vmem:[#allocation11] ss:$16 sps:$4 sm:$0xff]   ;;  %v8460_v5 = vld [vmem:[#allocation11 + $0x4c] ss:$16 sps:$4 sm:$0xff]  }
 0x5e7   : > { %v4797_v13 = vadd.f32 %v4792_v9, %v4444_v50  ;;  %v8446_v50 = vld [vmem:[#allocation11 + $0x8] ss:$16 sps:$4 sm:$0xff]   ;;  %v8455_v8 = vld [vmem:[#allocation11 + $0x40] ss:$16 sps:$4 sm:$0xff]   ;;  %v8463_v9 = vld [vmem:[#allocation11 + $0x64] ss:$16 sps:$4 sm:$0xff]  }
 0x5e8   : > { %v8466_v11 = vld [vmem:[#allocation11 + $0x6c] ss:$16 sps:$4 sm:$0xff]   ;;  %v8464_v23 = vld [vmem:[#allocation11 + $0x68] ss:$16 sps:$4 sm:$0xff]  }
 0x623   : > { %v5098_v18 = vpop.f32.mrb[80].mxu1 }
 0x624   : > { %v5140_v14 = vadd.f32 %v5139_v1, %v5098_v18  ;;  %v5100_v17 = vpop.f32.mrb[81].mxu1  ;;  %v8454_v1 = vld [vmem:[#allocation11 + $0x2c] ss:$16 sps:$4 sm:$0xff]   ;;  %v8467_v18 = vld [vmem:[#allocation11 + $0x80] ss:$16 sps:$4 sm:$0xff]  }
 0x625   : > { %v5142_v35 = vadd.f32 %v5141_v30, %v5100_v17  ;;  %v5102_v20 = vpop.f32.mrb[82].mxu1  ;;  %v8449_v30 = vld [vmem:[#allocation11 + $0x20] ss:$16 sps:$4 sm:$0xff]   ;;  %v8478_v17 = vld [vmem:[#allocation11 + $0xac] ss:$16 sps:$4 sm:$0xff]  }
 0x626   : > { %v5146_v21 = vadd.f32 %v5140_v14, %v4796_v12  ;;  %v5103_v22 = vpop.f32.mrb[83].mxu1  ;;  %v8461_v12 = vld [vmem:[#allocation11 + $0x60] ss:$16 sps:$4 sm:$0xff]   ;;  %v8470_v14 = vld [vmem:[#allocation11 + $0x88] ss:$16 sps:$4 sm:$0xff]  }
 0x627   : > { %v5147_v46 = vadd.f32 %v5142_v35, %v4797_v13  ;;  %v8469_v13 = vld [vmem:[#allocation11 + $0x84] ss:$16 sps:$4 sm:$0xff]   ;;  %v8473_v35 = vld [vmem:[#allocation11 + $0xa0] ss:$16 sps:$4 sm:$0xff]  }
 0x628   : > { %v5160_v27 = vadd.f32 %v5153_v19, %v5146_v21  ;;  %v8475_v19 = vld [vmem:[#allocation11 + $0xa4] ss:$16 sps:$4 sm:$0xff]   ;;  %v8484_v21 = vld [vmem:[#allocation11 + $0xcc] ss:$16 sps:$4 sm:$0xff]   ;;  %v8479_v22 = vld [vmem:[#allocation11 + $0xc0] ss:$16 sps:$4 sm:$0xff]  }
 0x629   : > { %v5161_v6 = vadd.f32 %v5157_v48, %v5147_v46  ;;  %v8476_v48 = vld [vmem:[#allocation11 + $0xa8] ss:$16 sps:$4 sm:$0xff]   ;;  %v8481_v20 = vld [vmem:[#allocation11 + $0xc4] ss:$16 sps:$4 sm:$0xff]  }
 0x62a   : > { %v5162_v31 = vmax.f32 %v5160_v27, 0.0  ;;  %v8482_v46 = vld [vmem:[#allocation11 + $0xc8] ss:$16 sps:$4 sm:$0xff]   ;;  %v8487_v27 = vld [vmem:[#allocation11 + $0xe4] ss:$16 sps:$4 sm:$0xff]  }
 0x62b   : > { %v5163_v25 = vmax.f32 %v5161_v6, 0.0  ;;  %v8490_v6 = vld [vmem:[#allocation11 + $0xec] ss:$16 sps:$4 sm:$0xff]  }
 0x62c   : > { %v5164_v28 = vpack.c.bf16 %v5162_v31, %v5162_v31  ;;  %v8485_v31 = vld [vmem:[#allocation11 + $0xe0] ss:$16 sps:$4 sm:$0xff]  }
 0x62d   : > { %v5165_v44 = vpack.c.bf16 %v5163_v25, %v5163_v25  ;;  %v8488_v25 = vld [vmem:[#allocation11 + $0xe8] ss:$16 sps:$4 sm:$0xff]  }
 0x62e   : > { %v5234_v38 = vshll.u32 %v5164_v28, 16  ;;  %v5232_v36 = vshrl.u32 %v5164_v28, 16  ;;  %v5554_v3 = vrot.slane %v5164_v28, 1 }
 0x62f   : > { %5511 = vmatprep.mubr.bf16.mxu1 %v5165_v44  ;;  %v5241_v43 = vshll.u32 %v5165_v44, 16  ;;  %v5239_v10 = vshrl.u32 %v5165_v44, 16  ;;  %v5555_v29 = vrot.slane %v5165_v44, 1  ;;  %v8496_v44 = vld [vmem:[#allocation11 + $0x10c] ss:$16 sps:$4 sm:$0xff]  }
 0x630   : > { %5512 = vmatmul.mubr.bf16.vlgmr.msra.gmra.mrb[84].mxu1 %v5164_v28  ;;  %v5236_v40 = vrot.slane %v5234_v38, 1  ;;  %v8493_v28 = vld [vmem:[#allocation11 + $0x104] ss:$16 sps:$4 sm:$0xff]  }
 0x631   : > { %v5243_v45 = vrot.slane %v5241_v43, 1  ;;  %5930 = vmatprep.mubr.bf16.mxu1 %v9149_v0  ;;  %5899 = vmatpush1.bf16.msra.mxu1 %v8443_v60  ;;  %v8497_v60 = vld [vmem:[#allocation11 + $0x120] ss:$16 sps:$4 sm:$0xff]  }
 0x632   : > { %v5237_v41 = vor.u32 %v5236_v40, %v5232_v36  ;;  %5900 = vmatprep.subr.bf16.mxu1 %v8451_v26  ;;  %v8503_v26 = vld [vmem:[#allocation11 + $0x140] ss:$16 sps:$4 sm:$0xff]  }
 0x633   : > { %v5244_v16 = vor.u32 %v5243_v45, %v5239_v10 }
 0x635   : > { %5375 = vmatprep.mubr.bf16.mxu0 %v5244_v16  ;;  %5901 = vmatpush1.bf16.msra.mxu1 %v8449_v30  ;;  %v8511_v30 = vld [vmem:[#allocation11 + $0x164] ss:$16 sps:$4 sm:$0xff]  }
 0x636   : > { %5376 = vmatmul.mubr.bf16.vlgmr.msra.gmra.mrb[76].mxu0 %v5237_v41  ;;  %5902 = vmatprep.subr.bf16.mxu1 %v8457_v4  ;;  %v8509_v4 = vld [vmem:[#allocation11 + $0x160] ss:$16 sps:$4 sm:$0xff]  }
 0x637   : > { %7492 = vmatpush3.bf16.msra.mxu0 %v8428_v37  ;;  %5686 = vmatprep.mubr.bf16.mxu0 %v5555_v29 }
 0x638   : > { %7493 = vmatprep.subr.bf16.mxu0 %v8429_v49 }
 0x639   : > { %5903 = vmatpush1.bf16.msra.mxu1 %v8455_v8  ;;  %v8517_v8 = vld [vmem:[#allocation11 + $0x184] ss:$16 sps:$4 sm:$0xff]  }
 0x63a   : > { %5904 = vmatprep.subr.bf16.mxu1 %v8463_v9  ;;  %v8515_v9 = vld [vmem:[#allocation11 + $0x180] ss:$16 sps:$4 sm:$0xff]  }
 0x63b   : > { %7494 = vmatpush3.bf16.msra.mxu0 %v8430_v34 }
 0x63c   : > { %7495 = vmatprep.subr.bf16.mxu0 %v8431_v33 }
 0x63d   : > { %5905 = vmatpush1.bf16.msra.mxu1 %v8461_v12  ;;  %v8526_v12 = vld [vmem:[#allocation11 + $0x1ac] ss:$16 sps:$4 sm:$0xff]  }
 0x63e   : > { %5906 = vmatprep.subr.bf16.mxu1 %v8469_v13  ;;  %v8524_v13 = vld [vmem:[#allocation11 + $0x1a8] ss:$16 sps:$4 sm:$0xff]  }
 0x63f   : > { %7496 = vmatpush3.bf16.msra.mxu0 %v8432_v56 }
 0x640   : > { %7497 = vmatprep.subr.bf16.mxu0 %v8433_v53 }
 0x641   : > { %5907 = vmatpush1.bf16.msra.mxu1 %v8467_v18  ;;  %v8532_v18 = vld [vmem:[#allocation11 + $0x1cc] ss:$16 sps:$4 sm:$0xff]  }
 0x642   : > { %5908 = vmatprep.subr.bf16.mxu1 %v8475_v19  ;;  %v8530_v19 = vld [vmem:[#allocation11 + $0x1c8] ss:$16 sps:$4 sm:$0xff]  }
 0x643   : > { %7498 = vmatpush3.bf16.msra.mxu0 %v8434_v47  ;;  %v7378_v47 = vld [vmem:[#allocation10] ss:$0 sm:$0xff] }
 0x644   : > { %7499 = vmatprep.subr.bf16.mxu0 %v8435_v58 }
 0x645   : > { %5909 = vmatpush1.bf16.msra.mxu1 %v8473_v35  ;;  %v8538_v35 = vld [vmem:[#allocation11 + $0x1ec] ss:$16 sps:$4 sm:$0xff]  }
 0x646   : > { %5910 = vmatprep.subr.bf16.mxu1 %v8481_v20  ;;  %v8536_v20 = vld [vmem:[#allocation11 + $0x1e8] ss:$16 sps:$4 sm:$0xff]  }
 0x647   : > { %7500 = vmatpush3.bf16.msra.mxu0 %v8436_v32 }
 0x648   : > { %7501 = vmatprep.subr.bf16.mxu0 %v8437_v15 }
 0x649   : > { %5911 = vmatpush1.bf16.msra.mxu1 %v8479_v22  ;;  %v6336_v22 = vld [vmem:[#allocation14 + $0x80] sm:$0xff] }
 0x64a   : > { %5912 = vmatprep.subr.bf16.mxu1 %v8487_v27  ;;  %v6368_v27 = vld [vmem:[#allocation14 + $0x180] sm:$0xff] }
 0x64b   : > { %7502 = vmatpush3.bf16.msra.mxu0 %v8438_v54 }
 0x64c   : > { %7503 = vmatprep.subr.bf16.mxu0 %v8439_v24  ;;  %v8491_v24 = vld [vmem:[#allocation11 + $0x100] ss:$16 sps:$4 sm:$0xff]  }
 0x64d   : > { %5913 = vmatpush1.bf16.msra.mxu1 %v8485_v31  ;;  %v6369_v31 = vld [vmem:[#allocation14 + $0x188] sm:$0xff] }
 0x64e   : > { %6207 = vmatprep.subr.bf16.mxu1 %v8493_v28  ;;  %v6321_v28 = vld [vmem:[#allocation14 + $0x8] sm:$0xff] }
 0x64f   : > { %7504 = vmatpush3.bf16.msra.mxu0 %v8440_v59  ;;  %v8494_v59 = vld [vmem:[#allocation11 + $0x108] ss:$16 sps:$4 sm:$0xff]  }
 0x650   : > { %7505 = vmatprep.subr.bf16.mxu0 %v8441_v55 }
 0x653   : > { %7506 = vmatpush3.bf16.msra.mxu0 %v8442_v42  ;;  %v8499_v42 = vld [vmem:[#allocation11 + $0x124] ss:$16 sps:$4 sm:$0xff]  }
 0x654   : > { %5939 = vmatprep.subr.bf16.mxu0 %v8448_v61  ;;  %v8508_v61 = vld [vmem:[#allocation11 + $0x14c] ss:$16 sps:$4 sm:$0xff]  }
 0x656   : > { %5687 = vmatmul.mubr.bf16.vlgmr.msra.gmra.mrb[80].mxu0 %v5554_v3  ;;  %v8502_v3 = vld [vmem:[#allocation11 + $0x12c] ss:$16 sps:$4 sm:$0xff]  }
 0x657   : > { %5971 = vmatprep.mubr.bf16.mxu0 %v9149_v0  ;;  %5940 = vmatpush1.bf16.msra.mxu0 %v8446_v50  ;;  %v8505_v50 = vld [vmem:[#allocation11 + $0x144] ss:$16 sps:$4 sm:$0xff]  }
 0x658   : > { %5941 = vmatprep.subr.bf16.mxu0 %v8454_v1  ;;  %v8506_v1 = vld [vmem:[#allocation11 + $0x148] ss:$16 sps:$4 sm:$0xff]  }
 0x65b   : > { %5942 = vmatpush1.bf16.msra.mxu0 %v8452_v2  ;;  %v8514_v2 = vld [vmem:[#allocation11 + $0x16c] ss:$16 sps:$4 sm:$0xff]  }
 0x65c   : > { %5943 = vmatprep.subr.bf16.mxu0 %v8460_v5  ;;  %v8512_v5 = vld [vmem:[#allocation11 + $0x168] ss:$16 sps:$4 sm:$0xff]  }
 0x65f   : > { %5944 = vmatpush1.bf16.msra.mxu0 %v8458_v39  ;;  %v8520_v39 = vld [vmem:[#allocation11 + $0x18c] ss:$16 sps:$4 sm:$0xff]  }
 0x660   : > { %5945 = vmatprep.subr.bf16.mxu0 %v8466_v11  ;;  %v8523_v11 = vld [vmem:[#allocation11 + $0x1a4] ss:$16 sps:$4 sm:$0xff]  }
 0x663   : > { %5946 = vmatpush1.bf16.msra.mxu0 %v8464_v23  ;;  %v8521_v23 = vld [vmem:[#allocation11 + $0x1a0] ss:$16 sps:$4 sm:$0xff]  }
 0x664   : > { %5947 = vmatprep.subr.bf16.mxu0 %v8472_v51  ;;  %v8529_v51 = vld [vmem:[#allocation11 + $0x1c4] ss:$16 sps:$4 sm:$0xff]  }
 0x667   : > { %5948 = vmatpush1.bf16.msra.mxu0 %v8470_v14  ;;  %v8527_v14 = vld [vmem:[#allocation11 + $0x1c0] ss:$16 sps:$4 sm:$0xff]  }
 0x668   : > { %5949 = vmatprep.subr.bf16.mxu0 %v8478_v17  ;;  %v8535_v17 = vld [vmem:[#allocation11 + $0x1e4] ss:$16 sps:$4 sm:$0xff]  }
 0x66b   : > { %5950 = vmatpush1.bf16.msra.mxu0 %v8476_v48  ;;  %v8533_v48 = vld [vmem:[#allocation11 + $0x1e0] ss:$16 sps:$4 sm:$0xff]  }
 0x66c   : > { %5951 = vmatprep.subr.bf16.mxu0 %v8484_v21 }
 0x66f   : > { %5952 = vmatpush1.bf16.msra.mxu0 %v8482_v46  ;;  %v6337_v46 = vld [vmem:[#allocation14 + $0x88] sm:$0xff] }
 0x670   : > { %5953 = vmatprep.subr.bf16.mxu0 %v8490_v6  ;;  %v7583_v6 = vpack.c.bf16 %v6337_v46, %v6336_v22  ;;  %v6346_v22 = vld [vmem:[#allocation14 + $0xd0] sm:$0xff]  ;;  %v6347_v46 = vld [vmem:[#allocation14 + $0xd8] sm:$0xff] }
 0x673   : > { %5954 = vmatpush1.bf16.msra.mxu0 %v8488_v25  ;;  %v6320_v25 = vld [vmem:[#allocation14] sm:$0xff] }
 0x674   : > { %6248 = vmatprep.subr.bf16.mxu0 %v8496_v44  ;;  %v7615_v44 = vpack.c.bf16 %v6369_v31, %v6368_v27  ;;  %v6378_v27 = vld [vmem:[#allocation14 + $0x1d0] sm:$0xff]  ;;  %v6379_v31 = vld [vmem:[#allocation14 + $0x1d8] sm:$0xff] }
 0x703   : > { %v7485_v38 = vpop.f32.mrb[84].mxu1 }
 0x704   : > { %v7486_v43 = vpop.f32.mrb[85].mxu1 }
 0x705   : > { %v7487_v40 = vadd.f32 %v7486_v43, %v7485_v38  ;;  %v7488_v10 = vpop.f32.mrb[86].mxu1  ;;  %v7585_v38 = vpack.c.bf16 %v6321_v28, %v6320_v25  ;;  %v6352_v43 = vld [vmem:[#allocation14 + $0x100] sm:$0xff]  ;;  %v6330_v25 = vld [vmem:[#allocation14 + $0x50] sm:$0xff]  ;;  %v6331_v28 = vld [vmem:[#allocation14 + $0x58] sm:$0xff] }
 0x706   : > { %v7489_v45 = vpop.f32.mrb[87].mxu1  ;;  %v6338_v10 = vld [vmem:[#allocation14 + $0x90] sm:$0xff] }
 0x709   : > { %v7463_v36 = vpop.f32.mrb[76].mxu0 }
 0x70a   : > { %v7464_v16 = vpop.f32.mrb[77].mxu0 }
 0x70b   : > { %v7465_v37 = vadd.f32 %v7464_v16, %v7463_v36  ;;  %v7466_v41 = vpop.f32.mrb[78].mxu0  ;;  %v6339_v36 = vld [vmem:[#allocation14 + $0x98] sm:$0xff]  ;;  %v6370_v16 = vld [vmem:[#allocation14 + $0x190] sm:$0xff] }
 0x70c   : > { %v7467_v49 = vpop.f32.mrb[79].mxu0  ;;  %v7587_v41 = vpack.c.bf16 %v6339_v36, %v6338_v10  ;;  %v6349_v36 = vld [vmem:[#allocation14 + $0xe8] sm:$0xff] }
 0x70d   : > { %v5514_v29 = vadd.f32 %v7487_v40, %v7465_v37  ;;  %v6353_v40 = vld [vmem:[#allocation14 + $0x108] sm:$0xff]  ;;  %v6371_v37 = vld [vmem:[#allocation14 + $0x198] sm:$0xff] }
 0x70e   : > { %v7617_v45 = vpack.c.bf16 %v6353_v40, %v6352_v43  ;;  %v7619_v49 = vpack.c.bf16 %v6371_v37, %v6370_v16  ;;  %v6362_v43 = vld [vmem:[#allocation14 + $0x150] sm:$0xff]  ;;  %v6363_v40 = vld [vmem:[#allocation14 + $0x158] sm:$0xff]  ;;  %v6380_v16 = vld [vmem:[#allocation14 + $0x1e0] sm:$0xff] }
 0x70f   : > { %v7637_v10 = vpack.c.bf16 %v6363_v40, %v6362_v43 }
 0x729   : > { %v7507_v34 = vpop.f32.mrb[80].mxu0 }
 0x72a   : > { %v7508_v33 = vpop.f32.mrb[81].mxu0 }
 0x72b   : > { %v7509_v56 = vadd.f32 %v7508_v33, %v7507_v34  ;;  %v7510_v53 = vpop.f32.mrb[82].mxu0  ;;  %v6323_v34 = vld [vmem:[#allocation14 + $0x18] sm:$0xff]  ;;  %v6354_v33 = vld [vmem:[#allocation14 + $0x110] sm:$0xff] }
 0x72c   : > { %v7511_v58 = vpop.f32.mrb[83].mxu0  ;;  %v6355_v53 = vld [vmem:[#allocation14 + $0x118] sm:$0xff] }
 0x72d   : > { %v5694_v32 = vadd.f32 %v7509_v56, %v5514_v29  ;;  %v6322_v29 = vld [vmem:[#allocation14 + $0x10] sm:$0xff]  ;;  %v6341_v58 = vld [vmem:[#allocation14 + $0xa8] sm:$0xff] }
 0x72e   : > { %v7589_v56 = vpack.c.bf16 %v6323_v34, %v6322_v29  ;;  %v6333_v29 = vld [vmem:[#allocation14 + $0x68] sm:$0xff] }
 0x72f   : > { %v5702_v15 = vadd.f32 %v7378_v47, %v5694_v32  ;;  %v6340_v47 = vld [vmem:[#allocation14 + $0xa0] sm:$0xff]  ;;  %v7621_v32 = vpack.c.bf16 %v6355_v53, %v6354_v33  ;;  %v6365_v53 = vld [vmem:[#allocation14 + $0x168] sm:$0xff] }
 0x731   : > { %v5703_v54 = vmax.f32 %v5702_v15, 0.0  ;;  %v7591_v15 = vpack.c.bf16 %v6341_v58, %v6340_v47  ;;  %v6350_v58 = vld [vmem:[#allocation14 + $0xf0] sm:$0xff] }
 0x733   : > { %v10483_v55 = vpack.c.bf16 %v5703_v54, %v5703_v54  ;;  %v6372_v54 = vld [vmem:[#allocation14 + $0x1a0] sm:$0xff] }
 0x735   : > { %5931 = vmatmul.mubr.bf16.vlgmr.msra.gmra.mrb[88].mxu1 %v10483_v55  ;;  %5972 = vmatmul.mubr.bf16.vlgmr.msra.gmra.mrb[84].mxu0 %v10483_v55  ;;  %v6044_v21 = vshrl.u32 %v10483_v55, 16 }
 0x736   : > { %6208 = vmatpush1.bf16.msra.mxu1 %v8491_v24  ;;  %6249 = vmatpush1.bf16.msra.mxu0 %v8494_v59  ;;  %v6373_v24 = vld [vmem:[#allocation14 + $0x1a8] sm:$0xff]  ;;  %v6324_v59 = vld [vmem:[#allocation14 + $0x20] sm:$0xff] }
 0x737   : > { %6209 = vmatprep.subr.bf16.mxu1 %v8499_v42  ;;  %6250 = vmatprep.subr.bf16.mxu0 %v8502_v3  ;;  %v7623_v55 = vpack.c.bf16 %v6373_v24, %v6372_v54  ;;  %v6325_v42 = vld [vmem:[#allocation14 + $0x28] sm:$0xff]  ;;  %v6356_v3 = vld [vmem:[#allocation14 + $0x120] sm:$0xff]  ;;  %v6383_v24 = vld [vmem:[#allocation14 + $0x1f8] sm:$0xff] }
 0x738   : > { %6239 = vmatprep.mubr.bf16.mxu1 %v9149_v0  ;;  %6280 = vmatprep.mubr.bf16.mxu0 %v9149_v0  ;;  %v8518_v0 = vld [vmem:[#allocation11 + $0x188] ss:$16 sps:$4 sm:$0xff]  }
 0x73a   : > { %6210 = vmatpush1.bf16.msra.mxu1 %v8497_v60  ;;  %6251 = vmatpush1.bf16.msra.mxu0 %v8500_v62  ;;  %v6357_v60 = vld [vmem:[#allocation14 + $0x128] sm:$0xff]  ;;  %v7593_v62 = vpack.c.bf16 %v6325_v42, %v6324_v59  ;;  %v6334_v59 = vld [vmem:[#allocation14 + $0x70] sm:$0xff] }
 0x73b   : > { %6211 = vmatprep.subr.bf16.mxu1 %v8505_v50  ;;  %6252 = vmatprep.subr.bf16.mxu0 %v8508_v61  ;;  %v6342_v50 = vld [vmem:[#allocation14 + $0xb0] sm:$0xff]  ;;  %v6343_v61 = vld [vmem:[#allocation14 + $0xb8] sm:$0xff] }
 0x73e   : > { %6212 = vmatpush1.bf16.msra.mxu1 %v8503_v26  ;;  %6253 = vmatpush1.bf16.msra.mxu0 %v8506_v1  ;;  %v6374_v26 = vld [vmem:[#allocation14 + $0x1b0] sm:$0xff]  ;;  %v7625_v1 = vpack.c.bf16 %v6357_v60, %v6356_v3 }
 0x73f   : > { %6213 = vmatprep.subr.bf16.mxu1 %v8511_v30  ;;  %6254 = vmatprep.subr.bf16.mxu0 %v8514_v2  ;;  %v7595_v30 = vpack.c.bf16 %v6343_v61, %v6342_v50  ;;  %v6375_v2 = vld [vmem:[#allocation14 + $0x1b8] sm:$0xff]  ;;  %v6366_v60 = vld [vmem:[#allocation14 + $0x170] sm:$0xff]  ;;  %v9150_v61 = vmov 1966171168  }
 0x742   : > { %6214 = vmatpush1.bf16.msra.mxu1 %v8509_v4  ;;  %6255 = vmatpush1.bf16.msra.mxu0 %v8512_v5  ;;  %v6326_v4 = vld [vmem:[#allocation14 + $0x30] sm:$0xff]  ;;  %v6327_v5 = vld [vmem:[#allocation14 + $0x38] sm:$0xff] }
 0x743   : > { %6215 = vmatprep.subr.bf16.mxu1 %v8517_v8  ;;  %6256 = vmatprep.subr.bf16.mxu0 %v8520_v39  ;;  %v7627_v8 = vpack.c.bf16 %v6375_v2, %v6374_v26  ;;  %v6358_v39 = vld [vmem:[#allocation14 + $0x130] sm:$0xff]  ;;  %v5987_v26 = vunpack.c.l.s4 %v9150_v61 }
 0x746   : > { %6216 = vmatpush1.bf16.msra.mxu1 %v8515_v9  ;;  %6257 = vmatpush1.bf16.msra.mxu0 %v8518_v0  ;;  %v6359_v9 = vld [vmem:[#allocation14 + $0x138] sm:$0xff]  ;;  %v7597_v0 = vpack.c.bf16 %v6327_v5, %v6326_v4 }
 0x747   : > { %6217 = vmatprep.subr.bf16.mxu1 %v8523_v11  ;;  %6258 = vmatprep.subr.bf16.mxu0 %v8526_v12  ;;  %v7629_v11 = vpack.c.bf16 %v6359_v9, %v6358_v39  ;;  %v6344_v12 = vld [vmem:[#allocation14 + $0xc0] sm:$0xff] }
 0x74a   : > { %6218 = vmatpush1.bf16.msra.mxu1 %v8521_v23  ;;  %6259 = vmatpush1.bf16.msra.mxu0 %v8524_v13  ;;  %v6345_v23 = vld [vmem:[#allocation14 + $0xc8] sm:$0xff]  ;;  %v6376_v13 = vld [vmem:[#allocation14 + $0x1c0] sm:$0xff] }
 0x74b   : > { %6219 = vmatprep.subr.bf16.mxu1 %v8529_v51  ;;  %6260 = vmatprep.subr.bf16.mxu0 %v8532_v18  ;;  %v7599_v51 = vpack.c.bf16 %v6345_v23, %v6344_v12  ;;  %v6377_v18 = vld [vmem:[#allocation14 + $0x1c8] sm:$0xff] }
 0x74e   : > { %6220 = vmatpush1.bf16.msra.mxu1 %v8527_v14  ;;  %6261 = vmatpush1.bf16.msra.mxu0 %v8530_v19  ;;  %v6328_v14 = vld [vmem:[#allocation14 + $0x40] sm:$0xff]  ;;  %v6329_v19 = vld [vmem:[#allocation14 + $0x48] sm:$0xff] }
 0x74f   : > { %6221 = vmatprep.subr.bf16.mxu1 %v8535_v17  ;;  %6262 = vmatprep.subr.bf16.mxu0 %v8538_v35  ;;  %v7631_v17 = vpack.c.bf16 %v6377_v18, %v6376_v13  ;;  %v7601_v35 = vpack.c.bf16 %v6329_v19, %v6328_v14 }
 0x752   : > { %6222 = vmatpush1.bf16.msra.mxu1 %v8533_v48  ;;  %6263 = vmatpush1.bf16.msra.mxu0 %v8536_v20  ;;  %v6360_v48 = vld [vmem:[#allocation14 + $0x140] sm:$0xff]  ;;  %v6361_v20 = vld [vmem:[#allocation14 + $0x148] sm:$0xff] }
 0x753   : > { %7584 = vmatprep.subr.bf16.mxu1 %v7583_v6  ;;  %7616 = vmatprep.subr.bf16.mxu0 %v7615_v44  ;;  %v7603_v6 = vpack.c.bf16 %v6347_v46, %v6346_v22  ;;  %v7635_v44 = vpack.c.bf16 %v6379_v31, %v6378_v27 }
 0x755   : > { %6240 = vmatmul.mubr.bf16.vlgmr.msra.gmra.mrb[92].mxu1 %v6044_v21  ;;  %6281 = vmatmul.mubr.bf16.vlgmr.msra.gmra.mrb[88].mxu0 %v6044_v21  ;;  %v7633_v21 = vpack.c.bf16 %v6361_v20, %v6360_v48 }
 0x756   : > { %7586 = vmatpush3.bf16.msra.mxu1 %v7585_v38  ;;  %7618 = vmatpush3.bf16.msra.mxu0 %v7617_v45  ;;  %v7605_v38 = vpack.c.bf16 %v6331_v28, %v6330_v25  ;;  %v6348_v45 = vld [vmem:[#allocation14 + $0xe0] sm:$0xff]  ;;  %v5705_v28 = vld [vmem:[#allocation13] sm:$0xf] }
 0x757   : > { %7588 = vmatprep.subr.bf16.mxu1 %v7587_v41  ;;  %7620 = vmatprep.subr.bf16.mxu0 %v7619_v49  ;;  %v7607_v37 = vpack.c.bf16 %v6349_v36, %v6348_v45  ;;  %v6381_v41 = vld [vmem:[#allocation14 + $0x1e8] sm:$0xff]  ;;  %v6332_v49 = vld [vmem:[#allocation14 + $0x60] sm:$0xff] }
 0x758   : > { %v7639_v34 = vpack.c.bf16 %v6381_v41, %v6380_v16  ;;  %v7609_v33 = vpack.c.bf16 %v6333_v29, %v6332_v49 }
 0x75a   : > { %7590 = vmatpush3.bf16.msra.mxu1 %v7589_v56  ;;  %7622 = vmatpush3.bf16.msra.mxu0 %v7621_v32  ;;  %v6364_v56 = vld [vmem:[#allocation14 + $0x160] sm:$0xff]  ;;  %v6351_v32 = vld [vmem:[#allocation14 + $0xf8] sm:$0xff] }
 0x75b   : > { %7592 = vmatprep.subr.bf16.mxu1 %v7591_v15  ;;  %7624 = vmatprep.subr.bf16.mxu0 %v7623_v55  ;;  %v7641_v47 = vpack.c.bf16 %v6365_v53, %v6364_v56  ;;  %v6382_v15 = vld [vmem:[#allocation14 + $0x1f0] sm:$0xff]  ;;  %v7611_v54 = vpack.c.bf16 %v6351_v32, %v6350_v58  ;;  %v6335_v55 = vld [vmem:[#allocation14 + $0x78] sm:$0xff] }
 0x75c   : > { %v7643_v42 = vpack.c.bf16 %v6383_v24, %v6382_v15  ;;  %v7613_v3 = vpack.c.bf16 %v6335_v55, %v6334_v59 }
 0x75e   : > { %7594 = vmatpush3.bf16.msra.mxu1 %v7593_v62  ;;  %7626 = vmatpush3.bf16.msra.mxu0 %v7625_v1  ;;  %v6367_v62 = vld [vmem:[#allocation14 + $0x178] sm:$0xff]  ;;  %v5988_v1 = vunpack.c.0.s8 %v5987_v26 }
 0x75f   : > { %7596 = vmatprep.subr.bf16.mxu1 %v7595_v30  ;;  %7628 = vmatprep.subr.bf16.mxu0 %v7627_v8  ;;  %v7645_v50 = vpack.c.bf16 %v6367_v62, %v6366_v60 }
 0x760   : > { %v5991_v4 = vsub.s32 %v5988_v1, %v10079_v52 }
 0x762   : > { %7598 = vmatpush3.bf16.msra.mxu1 %v7597_v0  ;;  %7630 = vmatpush3.bf16.msra.mxu0 %v7629_v11 }
 0x763   : > { %7600 = vmatprep.subr.bf16.mxu1 %v7599_v51  ;;  %7632 = vmatprep.subr.bf16.mxu0 %v7631_v17 }
 0x766   : > { %7602 = vmatpush3.bf16.msra.mxu1 %v7601_v35  ;;  %7634 = vmatpush3.bf16.msra.mxu0 %v7633_v21 }
 0x767   : > { %7604 = vmatprep.subr.bf16.mxu1 %v7603_v6  ;;  %7636 = vmatprep.subr.bf16.mxu0 %v7635_v44 }
 0x76a   : > { %7606 = vmatpush3.bf16.msra.mxu1 %v7605_v38  ;;  %7638 = vmatpush3.bf16.msra.mxu0 %v7637_v10  ;;  %v6400_v10 = vsub.s32 3, %v10079_v52 }
 0x76b   : > { %7608 = vmatprep.subr.bf16.mxu1 %v7607_v37  ;;  %7640 = vmatprep.subr.bf16.mxu0 %v7639_v34  ;;  %v6384_v34 = vld [vmem:[#allocation16] sm:$0x1] }
 0x76e   : > { %7610 = vmatpush3.bf16.msra.mxu1 %v7609_v33  ;;  %7642 = vmatpush3.bf16.msra.mxu0 %v7641_v47 }
 0x76f   : > { %7612 = vmatprep.subr.bf16.mxu1 %v7611_v54  ;;  %7644 = vmatprep.subr.bf16.mxu0 %v7643_v42 }
 0x772   : > { %7614 = vmatpush3.bf16.msra.mxu1 %v7613_v3  ;;  %7646 = vmatpush3.bf16.msra.mxu0 %v7645_v50 }
 0x808   : > { %v5932_v30 = vpop.f32.mrb[88].mxu1  ;;  %v5973_v2 = vpop.f32.mrb[84].mxu0 }
 0x809   : > { %v5934_v5 = vpop.f32.mrb[89].mxu1  ;;  %v5975_v8 = vpop.f32.mrb[85].mxu0 }
 0x80a   : > { %v5984_v39 = vcombine.low %v5932_v30, %v5934_v5  ;;  %v5985_v9 = vcombine.low %v5973_v2, %v5975_v8  ;;  %v5936_v0 = vpop.f32.mrb[90].mxu1  ;;  %v5977_v11 = vpop.f32.mrb[86].mxu0 }
 0x80b   : > { %v5937_v12 = vpop.f32.mrb[91].mxu1  ;;  %v5978_v23 = vpop.f32.mrb[87].mxu0 }
 0x80c   : > { %v5992_v13 = vrot.slane %v5984_v39, %v5991_v4  ;;  %v5999_v51 = vrot.slane %v5985_v9, %v5991_v4 }
 0x80e   : > { %v6000_v18 = vcombine.low %v5992_v13, %v5999_v51 }
 0x810   : > { %v6007_v6 = vrot.slane %v6000_v18, %v5991_v4 }
 0x812   : > { %v6009_v38 = vadd.f32 %v6007_v6, %v5705_v28 }
 0x828   : > { %v6241_v14 = vpop.f32.mrb[92].mxu1  ;;  %v6282_v19 = vpop.f32.mrb[88].mxu0 }
 0x829   : > { %v6243_v17 = vpop.f32.mrb[93].mxu1  ;;  %v6284_v35 = vpop.f32.mrb[89].mxu0 }
 0x82a   : > { %v6293_v48 = vcombine.low %v6241_v14, %v6243_v17  ;;  %v6294_v20 = vcombine.low %v6282_v19, %v6284_v35  ;;  %v6245_v21 = vpop.f32.mrb[94].mxu1  ;;  %v6286_v22 = vpop.f32.mrb[90].mxu0 }
 0x82b   : > { %v6246_v46 = vpop.f32.mrb[95].mxu1  ;;  %v6287_v27 = vpop.f32.mrb[91].mxu0 }
 0x82c   : > { %v6301_v31 = vrot.slane %v6293_v48, %v5991_v4  ;;  %v6308_v25 = vrot.slane %v6294_v20, %v5991_v4 }
 0x82e   : > { %v6309_v44 = vcombine.low %v6301_v31, %v6308_v25 }
 0x830   : > { %v6316_v43 = vrot.slane %v6309_v44, %v5991_v4 }
 0x832   : > { %v6318_v40 = vadd.f32 %v6316_v43, %v6009_v38 }
 0x834   : > { %v6319_v45 = vmax.f32 %v6318_v40, 0.0 }
 0x836   : > { %v6393_v36 = vrot.slane %v6319_v45, %v10082_v57  ;;  %v6401_v16 = vrot.slane %v6319_v45, %v6400_v10  ;;  %v6389_v37 = vrot.slane %v6319_v45, %v10088_v63  ;;  %v6397_v41 = vrot.slane %v6319_v45, %v3039_v7 }
 0x838   : > { %6470 = vmatprep.mubr.f32.mxu1 %v6393_v36  ;;  %6540 = vmatprep.mubr.f32.mxu0 %v6401_v16 }
 0x839   : > { %6471 = vmatmul.mubr.f32.vlgmr.msra.gmra.mrb[96].mxu1 %v6389_v37  ;;  %6541 = vmatmul.mubr.f32.vlgmr.msra.gmra.mrb[92].mxu0 %v6397_v41 }
 0x90c   : > { %v7545_v49 = vpop.f32.mrb[96].mxu1  ;;  %v7580_v29 = vpop.f32.mrb[92].mxu0 }
 0x90d   : > { %v7546_v33 = vpop.f32.mrb[97].mxu1  ;;  %v7581_v56 = vpop.f32.mrb[93].mxu0 }
 0x90e   : > { %v7547_v53 = vadd.f32 %v7546_v33, %v7545_v49  ;;  %v7582_v57 = vadd.f32 %v7581_v56, %v7580_v29 }
 0x910   : > { %v6473_v63 = vadd.f32 %v7547_v53, %v6384_v34 }
 0x912   : > { %v6543_v47 = vadd.f32 %v7582_v57, %v6473_v63 }
 0x914   : > { %6546 = vst [vmem:[%s499_s19] sm:$0x1] %v6543_v47 }
 0x915   : > { %9061 = shalt.err (!%p9058_p9)
}
 0x916   : > { %s9062_s9 = scalar_lea.hbm %s10501_s26, 16  ;;  %s9066_s25 = scalar_lea.hbm %s10554_s11, 32 }
 0x917   : > { %p9063_p12 = scmp.ne.s32.totalorder %s10501_s26, %s9062_s9  ;;  %p9067_p3 = scmp.lt.u32.totalorder %s10501_s26, %s10554_s11 }
 0x918   : > { %p9068_p4 = scmp.lt.u32.totalorder %s9066_s25, %s9062_s9  ;;  %p9070_p8 = scmp.lt.u32.totalorder %s9062_s9, %s10501_s26 }
 0x919   : > { %p9064_p10 = pnand %p9063_p12, %p10592_p11 }
 0x91a   : > { %p9069_p7 = por %p9068_p4, %p9067_p3 }
 0x91b   : > { %p9065_p2 = pneg %p9064_p10 }
 0x91c   : > { %p9071_p13 = por %p9070_p8, %p9069_p7 }
 0x91e   : > { %p9072_p1 = pnand %p9071_p13, %p9065_p2 }
 0x920   : > { %9075 = shalt.err (!%p9072_p1)
}
 0x921   : > { %7683 = dma.vmem_to_hbm [thread:$0]  (%p10592_p11), %s10503_s24, 16, %s10501_s26, %s6548_s22  }
 0x922 PF: > { %s10593_s29 = sld [smem:[#allocation24_spill]]  ;;  %s10594_s15 = sld [smem:[#allocation28_spill]] }
 0x923   : > { %p7735_p0 = scmp.ge.s32.totalorder %s9130_s20, 2 }
 0x928   : > { %s6572_s13 = sand.u32 1, %s10593_s29   ;;  %p10595_p6 = scmp.ne.s32.totalorder %s10594_s15, 0 }
 0x929   : > { %s6573_s17 = scalar_lea.sflag [#allocation4], %s6572_s13 }
 0x92a   : > { %p7714_p5 = pnand %p7735_p0, %p10595_p6 }
 0x92c   : > { %9113 = dma.done.wait (!%p7714_p5), %s6573_s17, 16  }
 0x92d   : > { %9115 = vsyncadd (!%p7714_p5), %s6573_s17, 4294967280  ;;  %s10596_s20 = sld [smem:[#allocation26_spill]]  ;;  %s10597_s19 = sld [smem:[#allocation25_spill]] }
 0x92e   : > { %s10598_s12 = sld [smem:[#allocation27_spill]]  ;;  %s10599_s17 = smov %s9122_s18 }
 0x933   : > { %p26_p9 = scmp.ge.s32.totalorder %s10596_s20, 4   ;;  %s10600_s18 = smov %s10597_s19 }
 0x934   : > { %s10601_s19 = smov %s10598_s12 }
 0x935   :  { %28 = sbr.rel (!%p26_p9) target bundleno = 13 (0xd), region = 156 }
 0x93c   :  { %6577 = vsyncpa [#allocation3], 1 }
 0x93d   :  { %6579 = vsyncpa [#allocation3 + $0x1], 1 }
 0x93e   :  { %6580 = vsyncpa [#allocation6], 1 }
 0x93f   :  { %6581 = vsyncpa [#allocation9], 1 }
 0x940   :  { %6582 = vsyncpa [#allocation12], 1 }
 0x941   :  { %6583 = vsyncpa [#allocation15], 1 }
 0x942   :  { %6584 = vsyncpa [#allocation4], 1 }
 0x943   :  { %6586 = vsyncpa [#allocation4 + $0x1], 1 }

</bundles_post_ra>
